<compile_context>
chip_gen: v5e
topology: v5e:2x2
jax: 0.10.0
libtpu: 0.0.40
codegen_flags: <defaults>
</compile_context>

<pallas_src>
import functools

import jax
import jax.numpy as jnp
import numpy as np
from jax import lax
from jax.experimental import pallas as pl
from jax.experimental.pallas import tpu as pltpu


def _bottleneck_kernel(x_ref, w1_ref, b1_ref, w2_ref, b2_ref, w3_ref, b3_ref,
                       o_ref, pad_ref):
    """One grid step = Nb images.  Activations are (Nb*H*W, C), channels on lanes."""
    Nb, Hp2, Wp2, P = pad_ref.shape
    H, W = Hp2 - 2, Wp2 - 2
    Cin = x_ref.shape[-1]
    M = Nb * H * W
    mxu_dtype = w1_ref.dtype                     # bf16 (default) or f32

    # ---- conv1 (1x1, BN scale pre-folded) + bias + relu ---------------------
    a = jnp.dot(x_ref[...].reshape(M, Cin).astype(mxu_dtype), w1_ref[...],
                preferred_element_type=jnp.float32)
    a = jnp.maximum(a + b1_ref[...], 0.0)                         # (M, P) f32

    # ---- conv2 (3x3, padding=1, stride=1) + bias + relu ---------------------
    # Stage the activation into the padded scratch, cast ONCE to the matmul
    # dtype.  The left/right zero columns are folded into the interior store
    # (full-width rows, column 0 start); only the top/bottom border rows are
    # zeroed each step.  (Border zeroing must stay per-step: the scratch is
    # per-core and the grid axis is "parallel".)
    a_mx = a.reshape(Nb, H, W, P).astype(pad_ref.dtype)
    zcol = jnp.zeros((Nb, H, 1, P), pad_ref.dtype)
    pad_ref[:, 1:H + 1, :, :] = jnp.concatenate([zcol, a_mx, zcol], axis=2)
    zrow = jnp.zeros((Nb, 1, W + 2, P), pad_ref.dtype)
    pad_ref[:, 0:1, :, :] = zrow
    pad_ref[:, H + 1:H + 2, :, :] = zrow

    # Nine shifted-window matmuls accumulated in f32 (no lane-axis im2col
    # concatenate, no (M, 9P) transient).  Static unroll.
    def tap(t):
        dy, dx = divmod(t, 3)
        win = pad_ref[:, dy:dy + H, dx:dx + W, :].reshape(M, P)
        return jnp.dot(win, w2_ref[t], preferred_element_type=jnp.float32)

    acc = tap(0)
    for t in range(1, 9):
        acc = acc + tap(t)
    b = jnp.maximum(acc + b2_ref[...], 0.0)                       # (M, P) f32

    # ---- conv3 (1x1, BN scale pre-folded) + bias ----------------------------
    c = jnp.dot(b.astype(mxu_dtype), w3_ref[...],
                preferred_element_type=jnp.float32) + b3_ref[...]  # (M, 4P)

    # ---- residual add + relu (re-read x late to shorten its live range) -----
    identity = x_ref[...].reshape(M, Cin)
    o_ref[...] = jnp.maximum(c + identity, 0.0).reshape(o_ref.shape).astype(
        o_ref.dtype)


def fold_params(params, matmul_dtype=jnp.bfloat16):
    """Fold BN scales into conv weights; w2 -> (9, P, P) tap-major layout."""
    w1, s1, b1, w2, s2, b2, w3, s3, b3 = params
    P = w1.shape[1]
    w1f = (w1 * s1).astype(matmul_dtype)                               # (Cin, P)
    w2f = (w2 * s2.reshape(1, 1, 1, P)).reshape(9, P, P).astype(matmul_dtype)
    w3f = (w3 * s3).astype(matmul_dtype)                               # (P, 4P)
    return w1f, b1, w2f, b2, w3f, b3


def _invariant_spec(arr):
    """Full-array, grid-invariant, single-buffered BlockSpec (weights/biases)."""
    nd = arr.ndim
    return pl.BlockSpec(arr.shape, lambda *_: (0,) * nd,
                        pipeline_mode=pl.Buffered(1))


def bottleneck_forward_nhwc(x_nhwc, params, matmul_dtype=jnp.bfloat16,
                            images_per_step=1):
    """x_nhwc: (N, H, W, C) f32 -> (N, H, W, C) f32.  No layout transposes."""
    N, H, W, Cin = x_nhwc.shape
    assert N % images_per_step == 0
    Nb = images_per_step
    w1f, b1, w2f, b2, w3f, b3 = fold_params(params, matmul_dtype)
    P = w1f.shape[1]
    Cout = w3f.shape[1]
    assert Cout == Cin, "downsample=None requires inplanes == planes * 4"

    # Metadata-only reshape: activations presented 2-D, channels on lanes.
    x2 = x_nhwc.reshape(N, H * W, Cin)

    # VMEM budget from the actual sizes (in/out double-buffered by the
    # pipeline, weights single-buffered, plus the conv2 scratch and headroom),
    # clamped to a range that is safe on v5e / v6e / v7x (64 MiB physical/TC).
    mx_itemsize = np.dtype(matmul_dtype).itemsize
    blk_bytes = Nb * H * W * (Cin + Cout) * 4
    w_bytes = sum(int(np.prod(a.shape)) * a.dtype.itemsize
                  for a in (w1f, b1, w2f, b2, w3f, b3))
    scratch_bytes = Nb * (H + 2) * (W + 2) * P * mx_itemsize
    est = 2 * blk_bytes + w_bytes + scratch_bytes + (8 << 20)
    vmem_limit = int(min(max(est, 32 << 20), 64 << 20))

    out2 = pl.pallas_call(
        _bottleneck_kernel,
        out_shape=jax.ShapeDtypeStruct((N, H * W, Cout), jnp.float32),
        grid_spec=pltpu.PrefetchScalarGridSpec(
            num_scalar_prefetch=0,
            grid=(N // Nb,),
            in_specs=[
                pl.BlockSpec((Nb, H * W, Cin), lambda n: (n, 0, 0)),
                _invariant_spec(w1f), _invariant_spec(b1),
                _invariant_spec(w2f), _invariant_spec(b2),
                _invariant_spec(w3f), _invariant_spec(b3),
            ],
            out_specs=pl.BlockSpec((Nb, H * W, Cout), lambda n: (n, 0, 0)),
            scratch_shapes=[pltpu.VMEM((Nb, H + 2, W + 2, P), matmul_dtype)],
        ),
        compiler_params=pltpu.CompilerParams(
            dimension_semantics=("parallel",),
            vmem_limit_bytes=vmem_limit),
    )(x2, w1f, b1, w2f, b2, w3f, b3)

    return out2.reshape(N, H, W, Cout)


def bottleneck_forward(x_nchw, params, matmul_dtype=jnp.bfloat16,
                       images_per_step=1):
    """PyTorch-interface wrapper: (N, C, H, W) in / out.

    NOTE: the two transposes here are separate full-tensor HBM round-trips;
    callers that already hold NHWC data should call bottleneck_forward_nhwc
    directly to avoid them.
    """
    x = jnp.transpose(x_nchw, (0, 2, 3, 1))       # -> NHWC
    out = bottleneck_forward_nhwc(x, params, matmul_dtype, images_per_step)
    return jnp.transpose(out, (0, 3, 1, 2))       # -> NCHW


def make_params(key, inplanes, planes, eps=1e-5):
    """Deterministic parameter construction (conv weights + inference BN)."""
    exp = 4
    ks = jax.random.split(key, 12)

    def conv_w(k, cout, cin, kh, kw):
        fan_in = cin * kh * kw
        std = float(np.sqrt(2.0 / fan_in))        # kaiming-normal-ish scale
        return jax.random.normal(k, (cout, cin, kh, kw), jnp.float32) * std

    def bn(k1, k2, k3, c):
        gamma = 1.0 + 0.1 * jax.random.normal(k1, (c,), jnp.float32)
        beta = 0.1 * jax.random.normal(k2, (c,), jnp.float32)
        mean = 0.1 * jax.random.normal(k3, (c,), jnp.float32)
        var = jnp.ones((c,), jnp.float32)
        scale = gamma / jnp.sqrt(var + eps)
        bias = beta - mean * scale
        return scale.reshape(1, c), bias.reshape(1, c)

    w1_t = conv_w(ks[0], planes, inplanes, 1, 1)           # (P, Cin, 1, 1)
    w2_t = conv_w(ks[1], planes, planes, 3, 3)             # (P, P, 3, 3)
    w3_t = conv_w(ks[2], planes * exp, planes, 1, 1)       # (4P, P, 1, 1)

    # reshape to NHWC matmul form
    w1 = jnp.transpose(w1_t[:, :, 0, 0], (1, 0))           # (Cin, P)
    w2 = jnp.transpose(w2_t, (2, 3, 1, 0))                 # (3, 3, P, P)  [ky,kx,cin,cout]
    w3 = jnp.transpose(w3_t[:, :, 0, 0], (1, 0))           # (P, 4P)

    s1, b1 = bn(ks[3], ks[4], ks[5], planes)
    s2, b2 = bn(ks[6], ks[7], ks[8], planes)
    s3, b3 = bn(ks[9], ks[10], ks[11], planes * exp)
    return (w1, s1, b1, w2, s2, b2, w3, s3, b3)


def reference_forward(x_nchw, params):
    """Plain-JAX (lax.conv) reference of the same math, for sanity checking."""
    w1, s1, b1, w2, s2, b2, w3, s3, b3 = params
    x = jnp.transpose(x_nchw, (0, 2, 3, 1))

    def conv1x1(a, w):
        return jnp.einsum('nhwc,cd->nhwd', a, w)

    def conv3x3(a, w):  # w: (ky, kx, cin, cout)
        return lax.conv_general_dilated(
            a, w, window_strides=(1, 1), padding=((1, 1), (1, 1)),
            dimension_numbers=('NHWC', 'HWIO', 'NHWC'))

    out = jnp.maximum(conv1x1(x, w1) * s1[0] + b1[0], 0.0)
    out = jnp.maximum(conv3x3(out, w2) * s2[0] + b2[0], 0.0)
    out = conv1x1(out, w3) * s3[0] + b3[0]
    out = jnp.maximum(out + x, 0.0)
    return jnp.transpose(out, (0, 3, 1, 2))


if __name__ == "__main__":
    key = jax.random.PRNGKey(0)
    k_x, k_p = jax.random.split(key)

    inplanes, planes = 16, 4          # inplanes == planes * expansion
    N, H, W = 2, 16, 16
    x = jax.random.normal(k_x, (N, inplanes, H, W), jnp.float32)  # NCHW input
    params = make_params(k_p, inplanes, planes)

    ref = jax.block_until_ready(reference_forward(x, params))

    # f32 MXU operands: tight check of the kernel math, one image per step
    # (grid of 2 parallel steps -> both v7x TensorCores get work).
    fwd_f32 = jax.jit(functools.partial(
        bottleneck_forward, matmul_dtype=jnp.float32, images_per_step=1))
    out_f32 = jax.block_until_ready(fwd_f32(x, params))
    np.testing.assert_allclose(np.asarray(out_f32), np.asarray(ref),
                               atol=1e-2, rtol=1e-2)

    # Production default: bf16 MXU operands (f32 accumulation), two images per
    # grid step (bigger matmul M-dim at these tiny channel counts).
    fwd_bf16 = jax.jit(functools.partial(
        bottleneck_forward, matmul_dtype=jnp.bfloat16, images_per_step=2))
    out_bf16 = jax.block_until_ready(fwd_bf16(x, params))
    np.testing.assert_allclose(np.asarray(out_bf16), np.asarray(ref),
                               atol=5e-2, rtol=5e-2)

    print("KERNEL_OK")
</pallas_src>

<mosaic_0001>
module attributes {stable_mosaic.version = 11 : i64} {
  func.func @_bottleneck_kernel(%arg0: i32, %arg1: memref<1x256x16xf32, #tpu.memory_space<vmem>>, %arg2: memref<16x4xf32, #tpu.memory_space<vmem>>, %arg3: memref<1x4xf32, #tpu.memory_space<vmem>>, %arg4: memref<9x4x4xf32, #tpu.memory_space<vmem>>, %arg5: memref<1x4xf32, #tpu.memory_space<vmem>>, %arg6: memref<4x16xf32, #tpu.memory_space<vmem>>, %arg7: memref<1x16xf32, #tpu.memory_space<vmem>>, %arg8: memref<1x256x16xf32, #tpu.memory_space<vmem>>, %arg9: memref<1x18x18x4xf32, #tpu.memory_space<vmem>>) attributes {dimension_semantics = [#tpu.dimension_semantics<parallel>], iteration_bounds = array<i64: 2>, scalar_prefetch = 0 : i64, scratch_operands = 1 : i64, tpu.core_type = #tpu.core_type<tc>, window_params = [{transform_indices = @transform_0, window_bounds = array<i64: 1, 256, 16>}, {pipeline_mode = #tpu.pipeline_mode<synchronous>, transform_indices = @transform_1, window_bounds = array<i64: 16, 4>}, {pipeline_mode = #tpu.pipeline_mode<synchronous>, transform_indices = @transform_2, window_bounds = array<i64: 1, 4>}, {pipeline_mode = #tpu.pipeline_mode<synchronous>, transform_indices = @transform_3, window_bounds = array<i64: 9, 4, 4>}, {pipeline_mode = #tpu.pipeline_mode<synchronous>, transform_indices = @transform_4, window_bounds = array<i64: 1, 4>}, {pipeline_mode = #tpu.pipeline_mode<synchronous>, transform_indices = @transform_5, window_bounds = array<i64: 4, 16>}, {pipeline_mode = #tpu.pipeline_mode<synchronous>, transform_indices = @transform_6, window_bounds = array<i64: 1, 16>}, {transform_indices = @transform_7, window_bounds = array<i64: 1, 256, 16>}]} {
    %c0 = arith.constant 0 : index
    %c0_0 = arith.constant 0 : index
    %c0_1 = arith.constant 0 : index
    %0 = vector.load %arg1[%c0, %c0_0, %c0_1] : memref<1x256x16xf32, #tpu.memory_space<vmem>>, vector<1x256x16xf32>
    %1 = vector.shape_cast %0 : vector<1x256x16xf32> to vector<256x16xf32>
    %c0_2 = arith.constant 0 : index
    %c0_3 = arith.constant 0 : index
    %2 = vector.load %arg2[%c0_2, %c0_3] : memref<16x4xf32, #tpu.memory_space<vmem>>, vector<16x4xf32>
    %cst = arith.constant dense<0.000000e+00> : vector<256x4xf32>
    %3 = tpu.matmul %1, %2, %cst {dimension_numbers = #tpu.dot_dimension_numbers<[1], [0], [0], [1], [0, 0, 1, 1], [], []>} : vector<256x16xf32>, vector<16x4xf32>, vector<256x4xf32> -> vector<256x4xf32>
    %c0_4 = arith.constant 0 : index
    %c0_5 = arith.constant 0 : index
    %4 = vector.load %arg3[%c0_4, %c0_5] : memref<1x4xf32, #tpu.memory_space<vmem>>, vector<1x4xf32>
    %5 = vector.broadcast %4 : vector<1x4xf32> to vector<256x4xf32>
    %6 = arith.addf %3, %5 : vector<256x4xf32>
    %cst_6 = arith.constant 0.000000e+00 : f32
    %7 = vector.broadcast %cst_6 : f32 to vector<256x4xf32>
    %8 = arith.maximumf %6, %7 : vector<256x4xf32>
    %9 = vector.shape_cast %8 : vector<256x4xf32> to vector<1x16x16x4xf32>
    %cst_7 = arith.constant 0.000000e+00 : f32
    %10 = vector.broadcast %cst_7 : f32 to vector<1x16x1x4xf32>
    %11 = tpu.concatenate %10, %9, %10 in 2 : vector<1x16x1x4xf32>, vector<1x16x16x4xf32>, vector<1x16x1x4xf32> -> vector<1x16x18x4xf32>
    %c0_8 = arith.constant 0 : index
    %c1 = arith.constant 1 : index
    %c0_9 = arith.constant 0 : index
    %c0_10 = arith.constant 0 : index
    %12 = vector.load %arg9[%c0_8, %c1, %c0_9, %c0_10] : memref<1x18x18x4xf32, #tpu.memory_space<vmem>>, vector<1x16x18x4xf32>
    tpu.vector_store %arg9[%c0_8, %c1, %c0_9, %c0_10], %11 {strides = array<i32>} : memref<1x18x18x4xf32, #tpu.memory_space<vmem>>, vector<1x16x18x4xf32>,
    %cst_11 = arith.constant 0.000000e+00 : f32
    %13 = vector.broadcast %cst_11 : f32 to vector<1x1x18x4xf32>
    %c0_12 = arith.constant 0 : index
    %c0_13 = arith.constant 0 : index
    %c0_14 = arith.constant 0 : index
    %c0_15 = arith.constant 0 : index
    %14 = vector.load %arg9[%c0_12, %c0_13, %c0_14, %c0_15] : memref<1x18x18x4xf32, #tpu.memory_space<vmem>>, vector<1x1x18x4xf32>
    tpu.vector_store %arg9[%c0_12, %c0_13, %c0_14, %c0_15], %13 {strides = array<i32>} : memref<1x18x18x4xf32, #tpu.memory_space<vmem>>, vector<1x1x18x4xf32>,
    %c0_16 = arith.constant 0 : index
    %c17 = arith.constant 17 : index
    %c0_17 = arith.constant 0 : index
    %c0_18 = arith.constant 0 : index
    %15 = vector.load %arg9[%c0_16, %c17, %c0_17, %c0_18] : memref<1x18x18x4xf32, #tpu.memory_space<vmem>>, vector<1x1x18x4xf32>
    tpu.vector_store %arg9[%c0_16, %c17, %c0_17, %c0_18], %13 {strides = array<i32>} : memref<1x18x18x4xf32, #tpu.memory_space<vmem>>, vector<1x1x18x4xf32>,
    %c0_19 = arith.constant 0 : index
    %c0_20 = arith.constant 0 : index
    %c0_21 = arith.constant 0 : index
    %c0_22 = arith.constant 0 : index
    %16 = vector.load %arg9[%c0_19, %c0_20, %c0_21, %c0_22] : memref<1x18x18x4xf32, #tpu.memory_space<vmem>>, vector<1x16x16x4xf32>
    %17 = vector.shape_cast %16 : vector<1x16x16x4xf32> to vector<256x4xf32>
    %c0_23 = arith.constant 0 : index
    %c0_24 = arith.constant 0 : index
    %c0_25 = arith.constant 0 : index
    %18 = vector.load %arg4[%c0_23, %c0_24, %c0_25] : memref<9x4x4xf32, #tpu.memory_space<vmem>>, vector<1x4x4xf32>
    %19 = vector.shape_cast %18 : vector<1x4x4xf32> to vector<4x4xf32>
    %cst_26 = arith.constant dense<0.000000e+00> : vector<256x4xf32>
    %20 = tpu.matmul %17, %19, %cst_26 {dimension_numbers = #tpu.dot_dimension_numbers<[1], [0], [0], [1], [0, 0, 1, 1], [], []>} : vector<256x4xf32>, vector<4x4xf32>, vector<256x4xf32> -> vector<256x4xf32>
    %c0_27 = arith.constant 0 : index
    %c0_28 = arith.constant 0 : index
    %c1_29 = arith.constant 1 : index
    %c0_30 = arith.constant 0 : index
    %21 = vector.load %arg9[%c0_27, %c0_28, %c1_29, %c0_30] : memref<1x18x18x4xf32, #tpu.memory_space<vmem>>, vector<1x16x16x4xf32>
    %22 = vector.shape_cast %21 : vector<1x16x16x4xf32> to vector<256x4xf32>
    %c1_31 = arith.constant 1 : index
    %c0_32 = arith.constant 0 : index
    %c0_33 = arith.constant 0 : index
    %23 = vector.load %arg4[%c1_31, %c0_32, %c0_33] : memref<9x4x4xf32, #tpu.memory_space<vmem>>, vector<1x4x4xf32>
    %24 = vector.shape_cast %23 : vector<1x4x4xf32> to vector<4x4xf32>
    %cst_34 = arith.constant dense<0.000000e+00> : vector<256x4xf32>
    %25 = tpu.matmul %22, %24, %cst_34 {dimension_numbers = #tpu.dot_dimension_numbers<[1], [0], [0], [1], [0, 0, 1, 1], [], []>} : vector<256x4xf32>, vector<4x4xf32>, vector<256x4xf32> -> vector<256x4xf32>
    %26 = arith.addf %20, %25 : vector<256x4xf32>
    %c0_35 = arith.constant 0 : index
    %c0_36 = arith.constant 0 : index
    %c2 = arith.constant 2 : index
    %c0_37 = arith.constant 0 : index
    %27 = vector.load %arg9[%c0_35, %c0_36, %c2, %c0_37] : memref<1x18x18x4xf32, #tpu.memory_space<vmem>>, vector<1x16x16x4xf32>
    %28 = vector.shape_cast %27 : vector<1x16x16x4xf32> to vector<256x4xf32>
    %c2_38 = arith.constant 2 : index
    %c0_39 = arith.constant 0 : index
    %c0_40 = arith.constant 0 : index
    %29 = vector.load %arg4[%c2_38, %c0_39, %c0_40] : memref<9x4x4xf32, #tpu.memory_space<vmem>>, vector<1x4x4xf32>
    %30 = vector.shape_cast %29 : vector<1x4x4xf32> to vector<4x4xf32>
    %cst_41 = arith.constant dense<0.000000e+00> : vector<256x4xf32>
    %31 = tpu.matmul %28, %30, %cst_41 {dimension_numbers = #tpu.dot_dimension_numbers<[1], [0], [0], [1], [0, 0, 1, 1], [], []>} : vector<256x4xf32>, vector<4x4xf32>, vector<256x4xf32> -> vector<256x4xf32>
    %32 = arith.addf %26, %31 : vector<256x4xf32>
    %c0_42 = arith.constant 0 : index
    %c1_43 = arith.constant 1 : index
    %c0_44 = arith.constant 0 : index
    %c0_45 = arith.constant 0 : index
    %33 = vector.load %arg9[%c0_42, %c1_43, %c0_44, %c0_45] : memref<1x18x18x4xf32, #tpu.memory_space<vmem>>, vector<1x16x16x4xf32>
    %34 = vector.shape_cast %33 : vector<1x16x16x4xf32> to vector<256x4xf32>
    %c3 = arith.constant 3 : index
    %c0_46 = arith.constant 0 : index
    %c0_47 = arith.constant 0 : index
    %35 = vector.load %arg4[%c3, %c0_46, %c0_47] : memref<9x4x4xf32, #tpu.memory_space<vmem>>, vector<1x4x4xf32>
    %36 = vector.shape_cast %35 : vector<1x4x4xf32> to vector<4x4xf32>
    %cst_48 = arith.constant dense<0.000000e+00> : vector<256x4xf32>
    %37 = tpu.matmul %34, %36, %cst_48 {dimension_numbers = #tpu.dot_dimension_numbers<[1], [0], [0], [1], [0, 0, 1, 1], [], []>} : vector<256x4xf32>, vector<4x4xf32>, vector<256x4xf32> -> vector<256x4xf32>
    %38 = arith.addf %32, %37 : vector<256x4xf32>
    %c0_49 = arith.constant 0 : index
    %c1_50 = arith.constant 1 : index
    %c1_51 = arith.constant 1 : index
    %c0_52 = arith.constant 0 : index
    %39 = vector.load %arg9[%c0_49, %c1_50, %c1_51, %c0_52] : memref<1x18x18x4xf32, #tpu.memory_space<vmem>>, vector<1x16x16x4xf32>
    %40 = vector.shape_cast %39 : vector<1x16x16x4xf32> to vector<256x4xf32>
    %c4 = arith.constant 4 : index
    %c0_53 = arith.constant 0 : index
    %c0_54 = arith.constant 0 : index
    %41 = vector.load %arg4[%c4, %c0_53, %c0_54] : memref<9x4x4xf32, #tpu.memory_space<vmem>>, vector<1x4x4xf32>
    %42 = vector.shape_cast %41 : vector<1x4x4xf32> to vector<4x4xf32>
    %cst_55 = arith.constant dense<0.000000e+00> : vector<256x4xf32>
    %43 = tpu.matmul %40, %42, %cst_55 {dimension_numbers = #tpu.dot_dimension_numbers<[1], [0], [0], [1], [0, 0, 1, 1], [], []>} : vector<256x4xf32>, vector<4x4xf32>, vector<256x4xf32> -> vector<256x4xf32>
    %44 = arith.addf %38, %43 : vector<256x4xf32>
    %c0_56 = arith.constant 0 : index
    %c1_57 = arith.constant 1 : index
    %c2_58 = arith.constant 2 : index
    %c0_59 = arith.constant 0 : index
    %45 = vector.load %arg9[%c0_56, %c1_57, %c2_58, %c0_59] : memref<1x18x18x4xf32, #tpu.memory_space<vmem>>, vector<1x16x16x4xf32>
    %46 = vector.shape_cast %45 : vector<1x16x16x4xf32> to vector<256x4xf32>
    %c5 = arith.constant 5 : index
    %c0_60 = arith.constant 0 : index
    %c0_61 = arith.constant 0 : index
    %47 = vector.load %arg4[%c5, %c0_60, %c0_61] : memref<9x4x4xf32, #tpu.memory_space<vmem>>, vector<1x4x4xf32>
    %48 = vector.shape_cast %47 : vector<1x4x4xf32> to vector<4x4xf32>
    %cst_62 = arith.constant dense<0.000000e+00> : vector<256x4xf32>
    %49 = tpu.matmul %46, %48, %cst_62 {dimension_numbers = #tpu.dot_dimension_numbers<[1], [0], [0], [1], [0, 0, 1, 1], [], []>} : vector<256x4xf32>, vector<4x4xf32>, vector<256x4xf32> -> vector<256x4xf32>
    %50 = arith.addf %44, %49 : vector<256x4xf32>
    %c0_63 = arith.constant 0 : index
    %c2_64 = arith.constant 2 : index
    %c0_65 = arith.constant 0 : index
    %c0_66 = arith.constant 0 : index
    %51 = vector.load %arg9[%c0_63, %c2_64, %c0_65, %c0_66] : memref<1x18x18x4xf32, #tpu.memory_space<vmem>>, vector<1x16x16x4xf32>
    %52 = vector.shape_cast %51 : vector<1x16x16x4xf32> to vector<256x4xf32>
    %c6 = arith.constant 6 : index
    %c0_67 = arith.constant 0 : index
    %c0_68 = arith.constant 0 : index
    %53 = vector.load %arg4[%c6, %c0_67, %c0_68] : memref<9x4x4xf32, #tpu.memory_space<vmem>>, vector<1x4x4xf32>
    %54 = vector.shape_cast %53 : vector<1x4x4xf32> to vector<4x4xf32>
    %cst_69 = arith.constant dense<0.000000e+00> : vector<256x4xf32>
    %55 = tpu.matmul %52, %54, %cst_69 {dimension_numbers = #tpu.dot_dimension_numbers<[1], [0], [0], [1], [0, 0, 1, 1], [], []>} : vector<256x4xf32>, vector<4x4xf32>, vector<256x4xf32> -> vector<256x4xf32>
    %56 = arith.addf %50, %55 : vector<256x4xf32>
    %c0_70 = arith.constant 0 : index
    %c2_71 = arith.constant 2 : index
    %c1_72 = arith.constant 1 : index
    %c0_73 = arith.constant 0 : index
    %57 = vector.load %arg9[%c0_70, %c2_71, %c1_72, %c0_73] : memref<1x18x18x4xf32, #tpu.memory_space<vmem>>, vector<1x16x16x4xf32>
    %58 = vector.shape_cast %57 : vector<1x16x16x4xf32> to vector<256x4xf32>
    %c7 = arith.constant 7 : index
    %c0_74 = arith.constant 0 : index
    %c0_75 = arith.constant 0 : index
    %59 = vector.load %arg4[%c7, %c0_74, %c0_75] : memref<9x4x4xf32, #tpu.memory_space<vmem>>, vector<1x4x4xf32>
    %60 = vector.shape_cast %59 : vector<1x4x4xf32> to vector<4x4xf32>
    %cst_76 = arith.constant dense<0.000000e+00> : vector<256x4xf32>
    %61 = tpu.matmul %58, %60, %cst_76 {dimension_numbers = #tpu.dot_dimension_numbers<[1], [0], [0], [1], [0, 0, 1, 1], [], []>} : vector<256x4xf32>, vector<4x4xf32>, vector<256x4xf32> -> vector<256x4xf32>
    %62 = arith.addf %56, %61 : vector<256x4xf32>
    %c0_77 = arith.constant 0 : index
    %c2_78 = arith.constant 2 : index
    %c2_79 = arith.constant 2 : index
    %c0_80 = arith.constant 0 : index
    %63 = vector.load %arg9[%c0_77, %c2_78, %c2_79, %c0_80] : memref<1x18x18x4xf32, #tpu.memory_space<vmem>>, vector<1x16x16x4xf32>
    %64 = vector.shape_cast %63 : vector<1x16x16x4xf32> to vector<256x4xf32>
    %c8 = arith.constant 8 : index
    %c0_81 = arith.constant 0 : index
    %c0_82 = arith.constant 0 : index
    %65 = vector.load %arg4[%c8, %c0_81, %c0_82] : memref<9x4x4xf32, #tpu.memory_space<vmem>>, vector<1x4x4xf32>
    %66 = vector.shape_cast %65 : vector<1x4x4xf32> to vector<4x4xf32>
    %cst_83 = arith.constant dense<0.000000e+00> : vector<256x4xf32>
    %67 = tpu.matmul %64, %66, %cst_83 {dimension_numbers = #tpu.dot_dimension_numbers<[1], [0], [0], [1], [0, 0, 1, 1], [], []>} : vector<256x4xf32>, vector<4x4xf32>, vector<256x4xf32> -> vector<256x4xf32>
    %68 = arith.addf %62, %67 : vector<256x4xf32>
    %c0_84 = arith.constant 0 : index
    %c0_85 = arith.constant 0 : index
    %69 = vector.load %arg5[%c0_84, %c0_85] : memref<1x4xf32, #tpu.memory_space<vmem>>, vector<1x4xf32>
    %70 = vector.broadcast %69 : vector<1x4xf32> to vector<256x4xf32>
    %71 = arith.addf %68, %70 : vector<256x4xf32>
    %cst_86 = arith.constant 0.000000e+00 : f32
    %72 = vector.broadcast %cst_86 : f32 to vector<256x4xf32>
    %73 = arith.maximumf %71, %72 : vector<256x4xf32>
    %c0_87 = arith.constant 0 : index
    %c0_88 = arith.constant 0 : index
    %74 = vector.load %arg6[%c0_87, %c0_88] : memref<4x16xf32, #tpu.memory_space<vmem>>, vector<4x16xf32>
    %cst_89 = arith.constant dense<0.000000e+00> : vector<256x16xf32>
    %75 = tpu.matmul %73, %74, %cst_89 {dimension_numbers = #tpu.dot_dimension_numbers<[1], [0], [0], [1], [0, 0, 1, 1], [], []>} : vector<256x4xf32>, vector<4x16xf32>, vector<256x16xf32> -> vector<256x16xf32>
    %c0_90 = arith.constant 0 : index
    %c0_91 = arith.constant 0 : index
    %76 = vector.load %arg7[%c0_90, %c0_91] : memref<1x16xf32, #tpu.memory_space<vmem>>, vector<1x16xf32>
    %77 = vector.broadcast %76 : vector<1x16xf32> to vector<256x16xf32>
    %78 = arith.addf %75, %77 : vector<256x16xf32>
    %c0_92 = arith.constant 0 : index
    %c0_93 = arith.constant 0 : index
    %c0_94 = arith.constant 0 : index
    %79 = vector.load %arg1[%c0_92, %c0_93, %c0_94] : memref<1x256x16xf32, #tpu.memory_space<vmem>>, vector<1x256x16xf32>
    %80 = vector.shape_cast %79 : vector<1x256x16xf32> to vector<256x16xf32>
    %81 = arith.addf %78, %80 : vector<256x16xf32>
    %cst_95 = arith.constant 0.000000e+00 : f32
    %82 = vector.broadcast %cst_95 : f32 to vector<256x16xf32>
    %83 = arith.maximumf %81, %82 : vector<256x16xf32>
    %84 = vector.shape_cast %83 : vector<256x16xf32> to vector<1x256x16xf32>
    %c0_96 = arith.constant 0 : index
    %c0_97 = arith.constant 0 : index
    %c0_98 = arith.constant 0 : index
    %85 = vector.load %arg8[%c0_96, %c0_97, %c0_98] : memref<1x256x16xf32, #tpu.memory_space<vmem>>, vector<1x256x16xf32>
    tpu.vector_store %arg8[%c0_96, %c0_97, %c0_98], %84 {strides = array<i32>} : memref<1x256x16xf32, #tpu.memory_space<vmem>>, vector<1x256x16xf32>,
    return
  }
  func.func @transform_0(%arg0: i32) -> (i32, i32, i32) {
    %c0_i32 = arith.constant 0 : i32
    %c0_i32_0 = arith.constant 0 : i32
    %c0_i32_1 = arith.constant 0 : i32
    return %arg0, %c0_i32, %c0_i32_0 : i32, i32, i32
  }
  func.func @transform_1(%arg0: i32) -> (i32, i32) {
    %c0_i32 = arith.constant 0 : i32
    %c0_i32_0 = arith.constant 0 : i32
    %c0_i32_1 = arith.constant 0 : i32
    return %c0_i32, %c0_i32_0 : i32, i32
  }
  func.func @transform_2(%arg0: i32) -> (i32, i32) {
    %c0_i32 = arith.constant 0 : i32
    %c0_i32_0 = arith.constant 0 : i32
    %c0_i32_1 = arith.constant 0 : i32
    return %c0_i32, %c0_i32_0 : i32, i32
  }
  func.func @transform_3(%arg0: i32) -> (i32, i32, i32) {
    %c0_i32 = arith.constant 0 : i32
    %c0_i32_0 = arith.constant 0 : i32
    %c0_i32_1 = arith.constant 0 : i32
    %c0_i32_2 = arith.constant 0 : i32
    return %c0_i32, %c0_i32_0, %c0_i32_1 : i32, i32, i32
  }
  func.func @transform_4(%arg0: i32) -> (i32, i32) {
    %c0_i32 = arith.constant 0 : i32
    %c0_i32_0 = arith.constant 0 : i32
    %c0_i32_1 = arith.constant 0 : i32
    return %c0_i32, %c0_i32_0 : i32, i32
  }
  func.func @transform_5(%arg0: i32) -> (i32, i32) {
    %c0_i32 = arith.constant 0 : i32
    %c0_i32_0 = arith.constant 0 : i32
    %c0_i32_1 = arith.constant 0 : i32
    return %c0_i32, %c0_i32_0 : i32, i32
  }
  func.func @transform_6(%arg0: i32) -> (i32, i32) {
    %c0_i32 = arith.constant 0 : i32
    %c0_i32_0 = arith.constant 0 : i32
    %c0_i32_1 = arith.constant 0 : i32
    return %c0_i32, %c0_i32_0 : i32, i32
  }
  func.func @transform_7(%arg0: i32) -> (i32, i32, i32) {
    %c0_i32 = arith.constant 0 : i32
    %c0_i32_0 = arith.constant 0 : i32
    %c0_i32_1 = arith.constant 0 : i32
    return %arg0, %c0_i32, %c0_i32_0 : i32, i32, i32
  }
}

</mosaic_0001>

<bundles_post_ra>
// kernel: bottleneck_forward.1
= control target key start
LH: loop header
LB: loop body
LE: loop exit
PB: predicated region body
PF: predicated region fallthrough
CT: control target
= control target key end

     0   :  { %s4132_s24 = smov 0   ;;  %s5615_s0 = inlined_call_operand.vmem [shape: f32[2,256,16], index: 0, kind: input, shape index: {}]   ;;  %s5616_s1 = inlined_call_operand.vmem [shape: f32[16,4], index: 1, kind: input, shape index: {}]   ;;  %s5617_s2 = inlined_call_operand.vmem [shape: f32[1,4], index: 2, kind: input, shape index: {}]   ;;  %s5618_s3 = inlined_call_operand.vmem [shape: f32[9,4,4], index: 3, kind: input, shape index: {}]   ;;  %s5619_s4 = inlined_call_operand.vmem [shape: f32[1,4], index: 4, kind: input, shape index: {}]   ;;  %s5620_s5 = inlined_call_operand.vmem [shape: f32[4,16], index: 5, kind: input, shape index: {}]   ;;  %s5621_s6 = inlined_call_operand.vmem [shape: f32[1,16], index: 6, kind: input, shape index: {}]   ;;  %s5622_s7 = inlined_call_operand.vmem [shape: f32[2,256,16], index: 7, kind: output, shape index: {}]  }
   0x1 LB: > { %s3685_s25 = sadd.s32 4294967295, %s4089_s24   ;;  %p3689_p0 = scmp.ge.s32.totalorder %s4089_s24, 1  ;;  %s4089_s24 = sphi %s4132_s24, %s17_s24  }
   0x2   : > { %p237_p1 = scmp.lt.s32.totalorder %s4089_s24, 3 }
   0x4   : > { %p238_p2 = pnand %p3689_p0, %p237_p1 }
   0x6   : > { %241 = sbr.rel (%p238_p2) target bundleno = 1185 (0x4a1), region = 48 }
   0xb   : > { %v312_v0 = vld [vmem:[%s5616_s1 + $0x8] sm:$0xff]  ;;  %v311_v1 = vld [vmem:[%s5616_s1] sm:$0xff]  ;;  %p269_p3 = scmp.lt.s32.totalorder %s3685_s25, 1  ;;  %vm317_vm0 = vcmask 130048   ;;  %vm591_vm1 = vcmask 1040384   ;;  %vm721_vm2 = vcmask 31744  }
   0xc   : > { %428 = vmatpush.msra.mxu0 %v312_v0  ;;  %v4191_v18 = vld [vmem:[%s5617_s2] ss:$0 sm:$0xff]  ;;  %vm724_vm3 = vcmask 25600   ;;  %vm941_vm4 = vcmask 1043456   ;;  %v3726_v52 = vld [vmem:[%s5618_s3 + $0x4] sm:$0xf] }
   0xd   : > { %s5756_s25 = smov (!%p269_p3, %s3685_s25), 1  ;;  %v810_v45 = vld [vmem:[%s5618_s3] sm:$0xf]  ;;  %v4231_v53 = vld [vmem:[%s5618_s3 + $0x8] sm:$0xf]  ;;  %4068 = vmatpush.msk.msra.mxu1 %vm941_vm4, %v3726_v52 }
   0xe   : > { %429 = vmatpush.msra.mxu0 %v311_v1  ;;  %s4066_s30 = sshll.u32 %s5756_s25, 8  ;;  %4069 = vmatpush.msk.msra.mxu2 %vm941_vm4, %v810_v45  ;;  %v3861_v56 = vld [vmem:[%s5618_s3 + $0x10] sm:$0xf]  ;;  %v3827_v1 = vld [vmem:[%s5618_s3 + $0xc] sm:$0xf] }
   0xf   : > { %s4154_s10 = scalar_lea.vmem %s5615_s0, %s4066_s30  ;;  %4070 = vmatpush.msk.msra.mxu3 %vm941_vm4, %v4231_v53  ;;  %3828 = vmatpush.msk.msrb.mxu1 %vm941_vm4, %v3827_v1  ;;  %s5429_s20 = scalar_lea.vmem %s5622_s7, %s4066_s30 }
  0x10   : > { %v279_v2 = vld [vmem:[%s4154_s10] sm:$0xff]  ;;  %v280_v3 = vld [vmem:[%s4154_s10 + $0x8] sm:$0xff]  ;;  %v281_v4 = vld [vmem:[%s4154_s10 + $0x10] sm:$0xff]  ;;  %3727 = vmatpush.msk.msrb.mxu0 %vm941_vm4, %v3726_v52  ;;  %3862 = vmatpush.msk.msrb.mxu2 %vm941_vm4, %v3861_v56 }
  0x11   : > { %3694 = vmatmul.msk.f32.vlgmr.msra.gmra.mxu0 %vm317_vm0, %v279_v2  ;;  %v282_v5 = vld [vmem:[%s4154_s10 + $0x18] sm:$0xff]  ;;  %v283_v6 = vld [vmem:[%s4154_s10 + $0x20] sm:$0xff]  ;;  %v284_v7 = vld [vmem:[%s4154_s10 + $0x28] sm:$0xff] }
  0x12   : > { %v285_v8 = vld [vmem:[%s4154_s10 + $0x30] sm:$0xff]  ;;  %v286_v9 = vld [vmem:[%s4154_s10 + $0x38] sm:$0xff]  ;;  %v287_v10 = vld [vmem:[%s4154_s10 + $0x40] sm:$0xff]  ;;  %3760 = vmatpush.msk.msra.mxu0 %vm941_vm4, %v810_v45 }
  0x13   : > { %v288_v11 = vld [vmem:[%s4154_s10 + $0x48] sm:$0xff]  ;;  %v289_v12 = vld [vmem:[%s4154_s10 + $0x50] sm:$0xff]  ;;  %v290_v13 = vld [vmem:[%s4154_s10 + $0x58] sm:$0xff] }
  0x14   : > { %v291_v14 = vld [vmem:[%s4154_s10 + $0x60] sm:$0xff]  ;;  %v292_v15 = vld [vmem:[%s4154_s10 + $0x68] sm:$0xff]  ;;  %v293_v16 = vld [vmem:[%s4154_s10 + $0x70] sm:$0xff] }
  0x15   : > { %v294_v17 = vld [vmem:[%s4154_s10 + $0x78] sm:$0xff]  ;;  %v295_v20 = vld [vmem:[%s4154_s10 + $0x80] sm:$0xff]  ;;  %v296_v26 = vld [vmem:[%s4154_s10 + $0x88] sm:$0xff] }
  0x16   : > { %v297_v33 = vld [vmem:[%s4154_s10 + $0x90] sm:$0xff]  ;;  %v298_v39 = vld [vmem:[%s4154_s10 + $0x98] sm:$0xff]  ;;  %v299_v47 = vld [vmem:[%s4154_s10 + $0xa0] sm:$0xff] }
  0x17   : > { %v300_v55 = vld [vmem:[%s4154_s10 + $0xa8] sm:$0xff]  ;;  %v301_v63 = vld [vmem:[%s4154_s10 + $0xb0] sm:$0xff] }
  0x19   : > { %3695 = vmatmul.msk.f32.gmra.mxu0 %vm317_vm0, %v280_v3 }
  0x21   : > { %3696 = vmatmul.msk.f32.gmra.mxu0 %vm317_vm0, %v281_v4 }
  0x29   : > { %3697 = vmatmul.msk.f32.gmra.mxu0 %vm317_vm0, %v282_v5 }
  0x31   : > { %3698 = vmatmul.msk.f32.gmra.mxu0 %vm317_vm0, %v283_v6  ;;  %v302_v6 = vld [vmem:[%s4154_s10 + $0xb8] sm:$0xff] }
  0x39   : > { %3699 = vmatmul.msk.f32.gmra.mxu0 %vm317_vm0, %v284_v7 }
  0x41   : > { %3700 = vmatmul.msk.f32.gmra.mxu0 %vm317_vm0, %v285_v8 }
  0x49   : > { %3701 = vmatmul.msk.f32.gmra.mxu0 %vm317_vm0, %v286_v9 }
  0x51   : > { %3702 = vmatmul.msk.f32.gmra.mxu0 %vm317_vm0, %v287_v10 }
  0x59   : > { %3703 = vmatmul.msk.f32.gmra.mxu0 %vm317_vm0, %v288_v11 }
  0x61   : > { %3704 = vmatmul.msk.f32.gmra.mxu0 %vm317_vm0, %v289_v12 }
  0x69   : > { %3705 = vmatmul.msk.f32.gmra.mxu0 %vm317_vm0, %v290_v13 }
  0x71   : > { %3706 = vmatmul.msk.f32.gmra.mxu0 %vm317_vm0, %v291_v14  ;;  %v303_v14 = vld [vmem:[%s4154_s10 + $0xc0] sm:$0xff] }
  0x79   : > { %3707 = vmatmul.msk.f32.gmra.mxu0 %vm317_vm0, %v292_v15 }
  0x81   : > { %3708 = vmatmul.msk.f32.gmra.mxu0 %vm317_vm0, %v293_v16 }
  0x89   : > { %3709 = vmatmul.msk.f32.gmra.mxu0 %vm317_vm0, %v294_v17 }
  0x8e   : > { %v431_v19 = vpop.f32.mrf.mxu0 }
  0x8f   : > { %v432_v21 = vadd.f32 %v4191_v18, %v431_v19 }
  0x91   : > { %v527_v22 = vmax.f32 %v432_v21, 0.0  ;;  %3710 = vmatmul.msk.f32.gmra.mxu0 %vm317_vm0, %v295_v20 }
  0x93   : > { %v592_v23 = vrot.slane %v527_v22, 7 }
  0x95   : > { %v688_v24 = vsel %vm591_vm1, 0.0, %v592_v23 }
  0x96   : > { %722 = vst.msk [vmem:[#allocation2 + $0x18] sm:$0xff] %vm721_vm2, %v688_v24  ;;  %v434_v25 = vpop.f32.mrf.mxu0  ;;  %v304_v24 = vld [vmem:[%s4154_s10 + $0xc8] sm:$0xff] }
  0x97   : > { %v435_v27 = vadd.f32 %v4191_v18, %v434_v25 }
  0x99   : > { %v528_v28 = vmax.f32 %v435_v27, 0.0  ;;  %3711 = vmatmul.msk.f32.gmra.mxu0 %vm317_vm0, %v296_v26 }
  0x9b   : > { %v593_v29 = vrot.slane %v528_v28, 7 }
  0x9d   : > { %v594_v30 = vsel %vm591_vm1, %v592_v23, %v593_v29  ;;  %v704_v31 = vsel %vm591_vm1, %v593_v29, 0.0 }
  0x9e   : > { %723 = vst.msk [vmem:[#allocation2 + $0x20] sm:$0xff] %vm721_vm2, %v594_v30  ;;  %v437_v32 = vpop.f32.mrf.mxu0 }
  0x9f   : > { %725 = vst.msk [vmem:[#allocation2 + $0x28] sm:$0x3] %vm724_vm3, %v704_v31  ;;  %v438_v34 = vadd.f32 %v4191_v18, %v437_v32 }
  0xa1   : > { %v529_v35 = vmax.f32 %v438_v34, 0.0  ;;  %3712 = vmatmul.msk.f32.gmra.mxu0 %vm317_vm0, %v297_v33  ;;  %v305_v34 = vld [vmem:[%s4154_s10 + $0xd0] sm:$0xff] }
  0xa3   : > { %v595_v36 = vrot.slane %v529_v35, 7 }
  0xa5   : > { %v689_v37 = vsel %vm591_vm1, 0.0, %v595_v36 }
  0xa6   : > { %726 = vst.msk [vmem:[#allocation2 + $0x30] sm:$0xff] %vm721_vm2, %v689_v37  ;;  %v440_v38 = vpop.f32.mrf.mxu0 }
  0xa7   : > { %v441_v40 = vadd.f32 %v4191_v18, %v440_v38 }
  0xa9   : > { %v530_v41 = vmax.f32 %v441_v40, 0.0  ;;  %3713 = vmatmul.msk.f32.gmra.mxu0 %vm317_vm0, %v298_v39 }
  0xab   : > { %v596_v42 = vrot.slane %v530_v41, 7 }
  0xad   : > { %v597_v43 = vsel %vm591_vm1, %v595_v36, %v596_v42  ;;  %v705_v44 = vsel %vm591_vm1, %v596_v42, 0.0 }
  0xae   : > { %727 = vst.msk [vmem:[#allocation2 + $0x38] sm:$0xff] %vm721_vm2, %v597_v43  ;;  %v443_v46 = vpop.f32.mrf.mxu0  ;;  %v306_v43 = vld [vmem:[%s4154_s10 + $0xd8] sm:$0xff] }
  0xaf   : > { %728 = vst.msk [vmem:[#allocation2 + $0x40] sm:$0x3] %vm724_vm3, %v705_v44  ;;  %v444_v48 = vadd.f32 %v4191_v18, %v443_v46  ;;  %v4091_v46 = vmov 0.0  }
  0xb0   : > { %771 = vst.msk [vmem:[#allocation2] sm:$0xff] %vm721_vm2, %v4091_v46 }
  0xb1   : > { %v531_v49 = vmax.f32 %v444_v48, 0.0  ;;  %3714 = vmatmul.msk.f32.gmra.mxu0 %vm317_vm0, %v299_v47  ;;  %772 = vst.msk [vmem:[#allocation2 + $0x8] sm:$0xff] %vm721_vm2, %v4091_v46 }
  0xb2   : > { %773 = vst.msk [vmem:[#allocation2 + $0x10] sm:$0x3] %vm724_vm3, %v4091_v46 }
  0xb3   : > { %v598_v50 = vrot.slane %v531_v49, 7  ;;  %775 = vst.msk [vmem:[#allocation2 + $0x198] sm:$0xff] %vm721_vm2, %v4091_v46 }
  0xb4   : > { %776 = vst.msk [vmem:[#allocation2 + $0x1a0] sm:$0xff] %vm721_vm2, %v4091_v46 }
  0xb5   : > { %v690_v51 = vsel %vm591_vm1, 0.0, %v598_v50  ;;  %777 = vst.msk [vmem:[#allocation2 + $0x1a8] sm:$0x3] %vm724_vm3, %v4091_v46 }
  0xb6   : > { %729 = vst.msk [vmem:[#allocation2 + $0x48] sm:$0xff] %vm721_vm2, %v690_v51  ;;  %v446_v54 = vpop.f32.mrf.mxu0 }
  0xb7   : > { %v447_v57 = vadd.f32 %v4191_v18, %v446_v54 }
  0xb9   : > { %v532_v58 = vmax.f32 %v447_v57, 0.0  ;;  %3715 = vmatmul.msk.f32.gmra.mxu0 %vm317_vm0, %v300_v55  ;;  %v307_v55 = vld [vmem:[%s4154_s10 + $0xe0] sm:$0xff] }
  0xbb   : > { %v599_v59 = vrot.slane %v532_v58, 7 }
  0xbd   : > { %v600_v60 = vsel %vm591_vm1, %v598_v50, %v599_v59  ;;  %v706_v61 = vsel %vm591_vm1, %v599_v59, 0.0 }
  0xbe   : > { %730 = vst.msk [vmem:[#allocation2 + $0x50] sm:$0xff] %vm721_vm2, %v600_v60  ;;  %v449_v62 = vpop.f32.mrf.mxu0 }
  0xbf   : > { %731 = vst.msk [vmem:[#allocation2 + $0x58] sm:$0x3] %vm724_vm3, %v706_v61  ;;  %v450_v0 = vadd.f32 %v4191_v18, %v449_v62 }
  0xc1   : > { %v533_v2 = vmax.f32 %v450_v0, 0.0  ;;  %3716 = vmatmul.msk.f32.gmra.mxu0 %vm317_vm0, %v301_v63  ;;  %v308_v0 = vld [vmem:[%s4154_s10 + $0xe8] sm:$0xff] }
  0xc3   : > { %v601_v3 = vrot.slane %v533_v2, 7 }
  0xc5   : > { %v691_v4 = vsel %vm591_vm1, 0.0, %v601_v3 }
  0xc6   : > { %732 = vst.msk [vmem:[#allocation2 + $0x60] sm:$0xff] %vm721_vm2, %v691_v4  ;;  %v452_v5 = vpop.f32.mrf.mxu0 }
  0xc7   : > { %v453_v7 = vadd.f32 %v4191_v18, %v452_v5 }
  0xc9   : > { %v534_v8 = vmax.f32 %v453_v7, 0.0  ;;  %3717 = vmatmul.msk.f32.gmra.mxu0 %vm317_vm0, %v302_v6 }
  0xcb   : > { %v602_v9 = vrot.slane %v534_v8, 7 }
  0xcd   : > { %v603_v10 = vsel %vm591_vm1, %v601_v3, %v602_v9  ;;  %v707_v11 = vsel %vm591_vm1, %v602_v9, 0.0  ;;  %v4264_v12 = vld [vmem:[#allocation2 + $0x60] sm:$0xff] }
  0xce   : > { %733 = vst.msk [vmem:[#allocation2 + $0x68] sm:$0xff] %vm721_vm2, %v603_v10  ;;  %v455_v13 = vpop.f32.mrf.mxu0  ;;  %3769 = vmatmul.msk.f32.vlgmr.msra.gmra.mxu2 %vm721_vm2, %v4264_v12  ;;  %v309_v10 = vld [vmem:[%s4154_s10 + $0xf0] sm:$0xff] }
  0xcf   : > { %734 = vst.msk [vmem:[#allocation2 + $0x70] sm:$0x3] %vm724_vm3, %v707_v11  ;;  %v456_v15 = vadd.f32 %v4191_v18, %v455_v13 }
  0xd1   : > { %v535_v16 = vmax.f32 %v456_v15, 0.0  ;;  %3718 = vmatmul.msk.f32.gmra.mxu0 %vm317_vm0, %v303_v14 }
  0xd3   : > { %v604_v17 = vrot.slane %v535_v16, 7 }
  0xd5   : > { %v692_v19 = vsel %vm591_vm1, 0.0, %v604_v17  ;;  %v4274_v20 = vld [vmem:[#allocation2 + $0x61] sm:$0xff] }
  0xd6   : > { %v4276_v21 = vld [vmem:[#allocation2 + $0x68] sm:$0xff]  ;;  %735 = vst.msk [vmem:[#allocation2 + $0x78] sm:$0xff] %vm721_vm2, %v692_v19  ;;  %v458_v23 = vpop.f32.mrf.mxu0  ;;  %3736 = vmatmul.msk.f32.vlgmr.msra.gmra.mxu1 %vm721_vm2, %v4274_v20 }
  0xd7   : > { %v4278_v22 = vld [vmem:[#allocation2 + $0x62] sm:$0xff]  ;;  %3770 = vmatmul.msk.f32.gmra.mxu2 %vm721_vm2, %v4276_v21  ;;  %v459_v25 = vadd.f32 %v4191_v18, %v458_v23  ;;  %v4301_v33 = vld [vmem:[#allocation2 + $0x6a] sm:$0xff] }
  0xd8   : > { %3803 = vmatmul.msk.f32.vlgmr.msra.gmra.mxu3 %vm721_vm2, %v4278_v22  ;;  %v4292_v30 = vld [vmem:[#allocation2 + $0x69] sm:$0xff] }
  0xd9   : > { %v536_v26 = vmax.f32 %v459_v25, 0.0  ;;  %3719 = vmatmul.msk.f32.gmra.mxu0 %vm317_vm0, %v304_v24  ;;  %v310_v24 = vld [vmem:[%s4154_s10 + $0xf8] sm:$0xff] }
  0xdb   : > { %v605_v27 = vrot.slane %v536_v26, 7 }
  0xdd   : > { %v606_v28 = vsel %vm591_vm1, %v604_v17, %v605_v27  ;;  %v708_v29 = vsel %vm591_vm1, %v605_v27, 0.0  ;;  %v4294_v31 = vld [vmem:[#allocation2 + $0x78] sm:$0xff] }
  0xde   : > { %736 = vst.msk [vmem:[#allocation2 + $0x80] sm:$0xff] %vm721_vm2, %v606_v28  ;;  %v461_v32 = vpop.f32.mrf.mxu0  ;;  %3737 = vmatmul.msk.f32.gmra.mxu1 %vm721_vm2, %v4292_v30 }
  0xdf   : > { %3771 = vmatmul.msk.f32.gmra.mxu2 %vm721_vm2, %v4294_v31  ;;  %737 = vst.msk [vmem:[#allocation2 + $0x88] sm:$0x3] %vm724_vm3, %v708_v29  ;;  %v462_v35 = vadd.f32 %v4191_v18, %v461_v32 }
  0xe0   : > { %3804 = vmatmul.msk.f32.gmra.mxu3 %vm721_vm2, %v4301_v33 }
  0xe1   : > { %v537_v36 = vmax.f32 %v462_v35, 0.0  ;;  %3720 = vmatmul.msk.f32.gmra.mxu0 %vm317_vm0, %v305_v34 }
  0xe3   : > { %v607_v37 = vrot.slane %v537_v36, 7 }
  0xe5   : > { %v693_v38 = vsel %vm591_vm1, 0.0, %v607_v37  ;;  %v4310_v39 = vld [vmem:[#allocation2 + $0x79] sm:$0xff] }
  0xe6   : > { %v4312_v40 = vld [vmem:[#allocation2 + $0x80] sm:$0xff]  ;;  %738 = vst.msk [vmem:[#allocation2 + $0x90] sm:$0xff] %vm721_vm2, %v693_v38  ;;  %v464_v42 = vpop.f32.mrf.mxu0  ;;  %3738 = vmatmul.msk.f32.gmra.mxu1 %vm721_vm2, %v4310_v39 }
  0xe7   : > { %v4314_v41 = vld [vmem:[#allocation2 + $0x7a] sm:$0xff]  ;;  %3772 = vmatmul.msk.f32.gmra.mxu2 %vm721_vm2, %v4312_v40  ;;  %v465_v44 = vadd.f32 %v4191_v18, %v464_v42  ;;  %v4341_v54 = vld [vmem:[#allocation2 + $0x82] sm:$0xff] }
  0xe8   : > { %3805 = vmatmul.msk.f32.gmra.mxu3 %vm721_vm2, %v4314_v41  ;;  %v4331_v50 = vld [vmem:[#allocation2 + $0x81] sm:$0xff] }
  0xe9   : > { %v538_v45 = vmax.f32 %v465_v44, 0.0  ;;  %3721 = vmatmul.msk.f32.gmra.mxu0 %vm317_vm0, %v306_v43 }
  0xeb   : > { %v608_v47 = vrot.slane %v538_v45, 7 }
  0xed   : > { %v609_v48 = vsel %vm591_vm1, %v607_v37, %v608_v47  ;;  %v709_v49 = vsel %vm591_vm1, %v608_v47, 0.0  ;;  %v4333_v51 = vld [vmem:[#allocation2 + $0x90] sm:$0xff]  ;;  %v811_v37 = vld [vmem:[#allocation2 + $0x1] sm:$0xff] }
  0xee   : > { %739 = vst.msk [vmem:[#allocation2 + $0x98] sm:$0xff] %vm721_vm2, %v609_v48  ;;  %v467_v52 = vpop.f32.mrf.mxu0  ;;  %3739 = vmatmul.msk.f32.gmra.mxu1 %vm721_vm2, %v4331_v50 }
  0xef   : > { %3773 = vmatmul.msk.f32.gmra.mxu2 %vm721_vm2, %v4333_v51  ;;  %740 = vst.msk [vmem:[#allocation2 + $0xa0] sm:$0x3] %vm724_vm3, %v709_v49  ;;  %v468_v56 = vadd.f32 %v4191_v18, %v467_v52  ;;  %v812_v49 = vld [vmem:[#allocation2 + $0x9] sm:$0xff] }
  0xf0   : > { %3806 = vmatmul.msk.f32.gmra.mxu3 %vm721_vm2, %v4341_v54 }
  0xf1   : > { %v539_v57 = vmax.f32 %v468_v56, 0.0  ;;  %3722 = vmatmul.msk.f32.gmra.mxu0 %vm317_vm0, %v307_v55 }
  0xf3   : > { %v610_v58 = vrot.slane %v539_v57, 7 }
  0xf5   : > { %v694_v59 = vsel %vm591_vm1, 0.0, %v610_v58  ;;  %v4352_v60 = vld [vmem:[#allocation2 + $0x91] sm:$0xff] }
  0xf6   : > { %v4354_v61 = vld [vmem:[#allocation2 + $0x98] sm:$0xff]  ;;  %741 = vst.msk [vmem:[#allocation2 + $0xa8] sm:$0xff] %vm721_vm2, %v694_v59  ;;  %v470_v63 = vpop.f32.mrf.mxu0  ;;  %3740 = vmatmul.msk.f32.gmra.mxu1 %vm721_vm2, %v4352_v60 }
  0xf7   : > { %v4356_v62 = vld [vmem:[#allocation2 + $0x92] sm:$0xff]  ;;  %3774 = vmatmul.msk.f32.gmra.mxu2 %vm721_vm2, %v4354_v61  ;;  %v471_v1 = vadd.f32 %v4191_v18, %v470_v63  ;;  %v4379_v9 = vld [vmem:[#allocation2 + $0x9a] sm:$0xff] }
  0xf8   : > { %3807 = vmatmul.msk.f32.gmra.mxu3 %vm721_vm2, %v4356_v62  ;;  %v4370_v6 = vld [vmem:[#allocation2 + $0x99] sm:$0xff] }
  0xf9   : > { %v540_v2 = vmax.f32 %v471_v1, 0.0  ;;  %3723 = vmatmul.msk.f32.gmra.mxu0 %vm317_vm0, %v308_v0 }
  0xfb   : > { %v611_v3 = vrot.slane %v540_v2, 7  ;;  %v4457_v2 = vld [vmem:[#allocation2 + $0x19] sm:$0xff] }
  0xfd   : > { %v612_v4 = vsel %vm591_vm1, %v610_v58, %v611_v3  ;;  %v710_v5 = vsel %vm591_vm1, %v611_v3, 0.0  ;;  %v4372_v7 = vld [vmem:[#allocation2 + $0xa8] sm:$0xff] }
  0xfe   : > { %742 = vst.msk [vmem:[#allocation2 + $0xb0] sm:$0xff] %vm721_vm2, %v612_v4  ;;  %v473_v8 = vpop.f32.mrf.mxu0  ;;  %3741 = vmatmul.msk.f32.gmra.mxu1 %vm721_vm2, %v4370_v6 }
  0xff   : > { %3775 = vmatmul.msk.f32.gmra.mxu2 %vm721_vm2, %v4372_v7  ;;  %743 = vst.msk [vmem:[#allocation2 + $0xb8] sm:$0x3] %vm724_vm3, %v710_v5  ;;  %v474_v11 = vadd.f32 %v4191_v18, %v473_v8 }
 0x100   : > { %3808 = vmatmul.msk.f32.gmra.mxu3 %vm721_vm2, %v4379_v9 }
 0x101   : > { %v541_v13 = vmax.f32 %v474_v11, 0.0  ;;  %3724 = vmatmul.msk.f32.gmra.mxu0 %vm317_vm0, %v309_v10 }
 0x103   : > { %v613_v14 = vrot.slane %v541_v13, 7 }
 0x105   : > { %v695_v15 = vsel %vm591_vm1, 0.0, %v613_v14  ;;  %v4388_v16 = vld [vmem:[#allocation2 + $0xa9] sm:$0xff] }
 0x106   : > { %v4390_v17 = vld [vmem:[#allocation2 + $0xb0] sm:$0xff]  ;;  %744 = vst.msk [vmem:[#allocation2 + $0xc0] sm:$0xff] %vm721_vm2, %v695_v15  ;;  %v476_v23 = vpop.f32.mrf.mxu0  ;;  %3742 = vmatmul.msk.f32.gmra.mxu1 %vm721_vm2, %v4388_v16  ;;  %v4476_v15 = vld [vmem:[#allocation2 + $0x21] sm:$0xff] }
 0x107   : > { %v4392_v19 = vld [vmem:[#allocation2 + $0xaa] sm:$0xff]  ;;  %3776 = vmatmul.msk.f32.gmra.mxu2 %vm721_vm2, %v4390_v17  ;;  %v477_v25 = vadd.f32 %v4191_v18, %v476_v23  ;;  %v4415_v36 = vld [vmem:[#allocation2 + $0xb2] sm:$0xff] }
 0x108   : > { %3809 = vmatmul.msk.f32.gmra.mxu3 %vm721_vm2, %v4392_v19  ;;  %v4406_v32 = vld [vmem:[#allocation2 + $0xb1] sm:$0xff] }
 0x109   : > { %v542_v26 = vmax.f32 %v477_v25, 0.0  ;;  %3725 = vmatmul.msk.f32.gmra.mxu0 %vm317_vm0, %v310_v24 }
 0x10b   : > { %v614_v27 = vrot.slane %v542_v26, 7 }
 0x10d   : > { %v615_v28 = vsel %vm591_vm1, %v613_v14, %v614_v27  ;;  %v711_v29 = vsel %vm591_vm1, %v614_v27, 0.0  ;;  %v4408_v34 = vld [vmem:[#allocation2 + $0xc0] sm:$0xff] }
 0x10e   : > { %745 = vst.msk [vmem:[#allocation2 + $0xc8] sm:$0xff] %vm721_vm2, %v615_v28  ;;  %v479_v35 = vpop.f32.mrf.mxu0  ;;  %3743 = vmatmul.msk.f32.gmra.mxu1 %vm721_vm2, %v4406_v32 }
 0x10f   : > { %3777 = vmatmul.msk.f32.gmra.mxu2 %vm721_vm2, %v4408_v34  ;;  %746 = vst.msk [vmem:[#allocation2 + $0xd0] sm:$0x3] %vm724_vm3, %v711_v29  ;;  %v480_v38 = vadd.f32 %v4191_v18, %v479_v35 }
 0x110   : > { %3810 = vmatmul.msk.f32.gmra.mxu3 %vm721_vm2, %v4415_v36 }
 0x111   : > { %v543_v42 = vmax.f32 %v480_v38, 0.0  ;;  %3728 = vmatmul.msk.f32.vlgmr.msrb.gmra.mxu0 %vm721_vm2, %v811_v37  ;;  %v4497_v38 = vld [vmem:[#allocation2 + $0x31] sm:$0xff] }
 0x112   : > { %3794 = vmatpush.msk.msrb.mxu0 %vm941_vm4, %v4231_v53 }
 0x113   : > { %v616_v43 = vrot.slane %v543_v42, 7 }
 0x115   : > { %v696_v44 = vsel %vm591_vm1, 0.0, %v616_v43  ;;  %v4425_v45 = vld [vmem:[#allocation2 + $0xc1] sm:$0xff] }
 0x116   : > { %v4427_v46 = vld [vmem:[#allocation2 + $0xc8] sm:$0xff]  ;;  %747 = vst.msk [vmem:[#allocation2 + $0xd8] sm:$0xff] %vm721_vm2, %v696_v44  ;;  %v482_v48 = vpop.f32.mrf.mxu0  ;;  %3744 = vmatmul.msk.f32.gmra.mxu1 %vm721_vm2, %v4425_v45 }
 0x117   : > { %v4429_v47 = vld [vmem:[#allocation2 + $0xc2] sm:$0xff]  ;;  %3778 = vmatmul.msk.f32.gmra.mxu2 %vm721_vm2, %v4427_v46  ;;  %v483_v53 = vadd.f32 %v4191_v18, %v482_v48  ;;  %v4451_v0 = vld [vmem:[#allocation2 + $0xca] sm:$0xff] }
 0x118   : > { %3811 = vmatmul.msk.f32.gmra.mxu3 %vm721_vm2, %v4429_v47  ;;  %v4442_v58 = vld [vmem:[#allocation2 + $0xc9] sm:$0xff] }
 0x119   : > { %v544_v52 = vmax.f32 %v483_v53, 0.0  ;;  %3729 = vmatmul.msk.f32.gmra.mxu0 %vm721_vm2, %v812_v49 }
 0x11b   : > { %v617_v55 = vrot.slane %v544_v52, 7 }
 0x11d   : > { %v618_v56 = vsel %vm591_vm1, %v616_v43, %v617_v55  ;;  %v712_v57 = vsel %vm591_vm1, %v617_v55, 0.0  ;;  %v4444_v59 = vld [vmem:[#allocation2 + $0xd8] sm:$0xff] }
 0x11e   : > { %748 = vst.msk [vmem:[#allocation2 + $0xe0] sm:$0xff] %vm721_vm2, %v618_v56  ;;  %v485_v63 = vpop.f32.mrf.mxu0  ;;  %3745 = vmatmul.msk.f32.gmra.mxu1 %vm721_vm2, %v4442_v58  ;;  %v4516_v56 = vld [vmem:[#allocation2 + $0x39] sm:$0xff] }
 0x11f   : > { %3779 = vmatmul.msk.f32.gmra.mxu2 %vm721_vm2, %v4444_v59  ;;  %749 = vst.msk [vmem:[#allocation2 + $0xe8] sm:$0x3] %vm724_vm3, %v712_v57  ;;  %v486_v1 = vadd.f32 %v4191_v18, %v485_v63 }
 0x120   : > { %3812 = vmatmul.msk.f32.gmra.mxu3 %vm721_vm2, %v4451_v0 }
 0x121   : > { %v545_v3 = vmax.f32 %v486_v1, 0.0  ;;  %3730 = vmatmul.msk.f32.gmra.mxu0 %vm721_vm2, %v4457_v2 }
 0x123   : > { %v619_v4 = vrot.slane %v545_v3, 7 }
 0x125   : > { %v697_v5 = vsel %vm591_vm1, 0.0, %v619_v4  ;;  %v4462_v8 = vld [vmem:[#allocation2 + $0xd9] sm:$0xff] }
 0x126   : > { %v4464_v10 = vld [vmem:[#allocation2 + $0xe0] sm:$0xff]  ;;  %750 = vst.msk [vmem:[#allocation2 + $0xf0] sm:$0xff] %vm721_vm2, %v697_v5  ;;  %v488_v13 = vpop.f32.mrf.mxu0  ;;  %3746 = vmatmul.msk.f32.gmra.mxu1 %vm721_vm2, %v4462_v8 }
 0x127   : > { %v4466_v11 = vld [vmem:[#allocation2 + $0xda] sm:$0xff]  ;;  %3780 = vmatmul.msk.f32.gmra.mxu2 %vm721_vm2, %v4464_v10  ;;  %v489_v14 = vadd.f32 %v4191_v18, %v488_v13  ;;  %v4491_v35 = vld [vmem:[#allocation2 + $0xe2] sm:$0xff] }
 0x128   : > { %3813 = vmatmul.msk.f32.gmra.mxu3 %vm721_vm2, %v4466_v11  ;;  %v4482_v27 = vld [vmem:[#allocation2 + $0xe1] sm:$0xff] }
 0x129   : > { %v546_v23 = vmax.f32 %v489_v14, 0.0  ;;  %3731 = vmatmul.msk.f32.gmra.mxu0 %vm721_vm2, %v4476_v15 }
 0x12b   : > { %v620_v24 = vrot.slane %v546_v23, 7 }
 0x12d   : > { %v621_v25 = vsel %vm591_vm1, %v619_v4, %v620_v24  ;;  %v713_v26 = vsel %vm591_vm1, %v620_v24, 0.0  ;;  %v4484_v28 = vld [vmem:[#allocation2 + $0xf0] sm:$0xff] }
 0x12e   : > { %5657 = vst [vmem:[#allocation3_spill] sm:$0xff] %v4484_v28  ;;  %v491_v29 = vpop.f32.mrf.mxu0  ;;  %3747 = vmatmul.msk.f32.gmra.mxu1 %vm721_vm2, %v4482_v27  ;;  %v3895_v24 = vld [vmem:[%s5618_s3 + $0x14] sm:$0xf] }
 0x12f   : > { %751 = vst.msk [vmem:[#allocation2 + $0xf8] sm:$0xff] %vm721_vm2, %v621_v25  ;;  %3781 = vmatmul.msk.f32.gmra.mxu2 %vm721_vm2, %v4484_v28  ;;  %v492_v37 = vadd.f32 %v4191_v18, %v491_v29  ;;  %v4540_v25 = vld [vmem:[#allocation2 + $0x49] sm:$0xff]  ;;  %3896 = vmatpush.msk.msrb.mxu3 %vm941_vm4, %v3895_v24 }
 0x130   : > { %752 = vst.msk [vmem:[#allocation2 + $0x100] sm:$0x3] %vm724_vm3, %v713_v26  ;;  %3814 = vmatmul.msk.f32.gmra.mxu3 %vm721_vm2, %v4491_v35 }
 0x131   : > { %v547_v42 = vmax.f32 %v492_v37, 0.0  ;;  %3732 = vmatmul.msk.f32.gmra.mxu0 %vm721_vm2, %v4497_v38 }
 0x133   : > { %v622_v43 = vrot.slane %v547_v42, 7 }
 0x135   : > { %v698_v44 = vsel %vm591_vm1, 0.0, %v622_v43 }
 0x136   : > { %v4502_v48 = vld [vmem:[#allocation2 + $0xf1] sm:$0xff]  ;;  %753 = vst.msk [vmem:[#allocation2 + $0x108] sm:$0xff] %vm721_vm2, %v698_v44  ;;  %v494_v52 = vpop.f32.mrf.mxu0 }
 0x137   : > { %v4504_v49 = vld [vmem:[#allocation2 + $0xf8] sm:$0xff]  ;;  %3748 = vmatmul.msk.f32.gmra.mxu1 %vm721_vm2, %v4502_v48  ;;  %v495_v55 = vadd.f32 %v4191_v18, %v494_v52 }
 0x138   : > { %5658 = vst [vmem:[#allocation4_spill] sm:$0xff] %v4504_v49  ;;  %v4506_v53 = vld [vmem:[#allocation2 + $0xf2] sm:$0xff]  ;;  %3782 = vmatmul.msk.f32.gmra.mxu2 %vm721_vm2, %v4504_v49  ;;  %v4531_v14 = vld [vmem:[#allocation2 + $0xfa] sm:$0xff] }
 0x139   : > { %5659 = vst [vmem:[#allocation5_spill] sm:$0xff] %v4506_v53  ;;  %3815 = vmatmul.msk.f32.gmra.mxu3 %vm721_vm2, %v4506_v53  ;;  %v548_v57 = vmax.f32 %v495_v55, 0.0  ;;  %3733 = vmatmul.msk.f32.gmra.mxu0 %vm721_vm2, %v4516_v56  ;;  %v4522_v4 = vld [vmem:[#allocation2 + $0xf9] sm:$0xff] }
 0x13a   : > { %5660 = vst [vmem:[#allocation6_spill] sm:$0xff] %v4522_v4 }
 0x13b   : > { %v623_v63 = vrot.slane %v548_v57, 7  ;;  %5662 = vst [vmem:[#allocation8_spill] sm:$0xff] %v4531_v14  ;;  %v4560_v57 = vld [vmem:[#allocation2 + $0x51] sm:$0xff] }
 0x13d   : > { %v624_v1 = vsel %vm591_vm1, %v622_v43, %v623_v63  ;;  %v714_v3 = vsel %vm591_vm1, %v623_v63, 0.0  ;;  %v4524_v5 = vld [vmem:[#allocation2 + $0x108] sm:$0xff] }
 0x13e   : > { %5661 = vst [vmem:[#allocation7_spill] sm:$0xff] %v4524_v5  ;;  %v497_v13 = vpop.f32.mrf.mxu0 }
 0x13f   : > { %754 = vst.msk [vmem:[#allocation2 + $0x110] sm:$0xff] %vm721_vm2, %v624_v1  ;;  %3749 = vmatmul.msk.f32.gmra.mxu1 %vm721_vm2, %v4522_v4  ;;  %v498_v23 = vadd.f32 %v4191_v18, %v497_v13 }
 0x140   : > { %3783 = vmatmul.msk.f32.gmra.mxu2 %vm721_vm2, %v4524_v5  ;;  %755 = vst.msk [vmem:[#allocation2 + $0x118] sm:$0x3] %vm724_vm3, %v714_v3 }
 0x141   : > { %3816 = vmatmul.msk.f32.gmra.mxu3 %vm721_vm2, %v4531_v14  ;;  %v549_v26 = vmax.f32 %v498_v23, 0.0  ;;  %3734 = vmatmul.msk.f32.gmra.mxu0 %vm721_vm2, %v4540_v25 }
 0x143   : > { %v625_v29 = vrot.slane %v549_v26, 7 }
 0x145   : > { %v699_v37 = vsel %vm591_vm1, 0.0, %v625_v29 }
 0x146   : > { %v4546_v42 = vld [vmem:[#allocation2 + $0x109] sm:$0xff]  ;;  %756 = vst.msk [vmem:[#allocation2 + $0x120] sm:$0xff] %vm721_vm2, %v699_v37  ;;  %v500_v52 = vpop.f32.mrf.mxu0 }
 0x147   : > { %5663 = vst [vmem:[#allocation9_spill] sm:$0xff] %v4546_v42  ;;  %v4548_v43 = vld [vmem:[#allocation2 + $0x110] sm:$0xff]  ;;  %3750 = vmatmul.msk.f32.gmra.mxu1 %vm721_vm2, %v4546_v42  ;;  %v501_v55 = vadd.f32 %v4191_v18, %v500_v52  ;;  %v778_v52 = vld [vmem:[#allocation2] sm:$0xff] }
 0x148   : > { %5664 = vst [vmem:[#allocation10_spill] sm:$0xff] %v4548_v43  ;;  %v4550_v44 = vld [vmem:[#allocation2 + $0x10a] sm:$0xff]  ;;  %3784 = vmatmul.msk.f32.gmra.mxu2 %vm721_vm2, %v4548_v43  ;;  %v4575_v37 = vld [vmem:[#allocation2 + $0x112] sm:$0xff] }
 0x149   : > { %5665 = vst [vmem:[#allocation11_spill] sm:$0xff] %v4550_v44  ;;  %3817 = vmatmul.msk.f32.gmra.mxu3 %vm721_vm2, %v4550_v44  ;;  %v550_v63 = vmax.f32 %v501_v55, 0.0  ;;  %3735 = vmatmul.msk.f32.gmra.mxu0 %vm721_vm2, %v4560_v57  ;;  %v4566_v23 = vld [vmem:[#allocation2 + $0x111] sm:$0xff] }
 0x14a   : > { %5666 = vst [vmem:[#allocation12_spill] sm:$0xff] %v4566_v23 }
 0x14b   : > { %v626_v1 = vrot.slane %v550_v63, 7  ;;  %5668 = vst [vmem:[#allocation14_spill] sm:$0xff] %v4575_v37 }
 0x14d   : > { %v627_v3 = vsel %vm591_vm1, %v625_v29, %v626_v1  ;;  %v715_v13 = vsel %vm591_vm1, %v626_v1, 0.0  ;;  %v4568_v24 = vld [vmem:[#allocation2 + $0x120] sm:$0xff] }
 0x14e   : > { %5667 = vst [vmem:[#allocation13_spill] sm:$0xff] %v4568_v24  ;;  %v503_v26 = vpop.f32.mrf.mxu0 }
 0x14f   : > { %757 = vst.msk [vmem:[#allocation2 + $0x128] sm:$0xff] %vm721_vm2, %v627_v3  ;;  %3751 = vmatmul.msk.f32.gmra.mxu1 %vm721_vm2, %v4566_v23  ;;  %v504_v29 = vadd.f32 %v4191_v18, %v503_v26  ;;  %v779_v26 = vld [vmem:[#allocation2 + $0x8] sm:$0xff] }
 0x150   : > { %3785 = vmatmul.msk.f32.gmra.mxu2 %vm721_vm2, %v4568_v24  ;;  %758 = vst.msk [vmem:[#allocation2 + $0x130] sm:$0x3] %vm724_vm3, %v715_v13 }
 0x151   : > { %3818 = vmatmul.msk.f32.gmra.mxu3 %vm721_vm2, %v4575_v37  ;;  %v551_v55 = vmax.f32 %v504_v29, 0.0  ;;  %3761 = vmatmul.msk.f32.vlgmr.msra.gmra.mxu0 %vm721_vm2, %v778_v52  ;;  %v1198_v63 = vpop.f32.mrf.mxu2 }
 0x153   : > { %v628_v1 = vrot.slane %v551_v55, 7  ;;  %v986_v3 = vpop.f32.mrf.mxu1 }
 0x154   : > { %v1199_v29 = vadd.f32 %v1198_v63, %v986_v3  ;;  %v4617_v3 = vld [vmem:[#allocation2 + $0x18] sm:$0xff] }
 0x155   : > { %v700_v43 = vsel %vm591_vm1, 0.0, %v628_v1 }
 0x156   : > { %v4583_v44 = vld [vmem:[#allocation2 + $0x121] sm:$0xff]  ;;  %759 = vst.msk [vmem:[#allocation2 + $0x138] sm:$0xff] %vm721_vm2, %v700_v43  ;;  %v506_v13 = vpop.f32.mrf.mxu0 }
 0x157   : > { %5669 = vst [vmem:[#allocation15_spill] sm:$0xff] %v4583_v44  ;;  %v4585_v24 = vld [vmem:[#allocation2 + $0x128] sm:$0xff]  ;;  %3752 = vmatmul.msk.f32.gmra.mxu1 %vm721_vm2, %v4583_v44  ;;  %v507_v52 = vadd.f32 %v4191_v18, %v506_v13 }
 0x158   : > { %5670 = vst [vmem:[#allocation16_spill] sm:$0xff] %v4585_v24  ;;  %v4587_v23 = vld [vmem:[#allocation2 + $0x122] sm:$0xff]  ;;  %3786 = vmatmul.msk.f32.gmra.mxu2 %vm721_vm2, %v4585_v24 }
 0x159   : > { %5671 = vst [vmem:[#allocation17_spill] sm:$0xff] %v4587_v23  ;;  %3819 = vmatmul.msk.f32.gmra.mxu3 %vm721_vm2, %v4587_v23  ;;  %v552_v55 = vmax.f32 %v507_v52, 0.0  ;;  %3762 = vmatmul.msk.f32.gmra.mxu0 %vm721_vm2, %v779_v26  ;;  %v4602_v49 = vld [vmem:[#allocation2 + $0x129] sm:$0xff] }
 0x15a   : > { %v1201_v37 = vpop.f32.mrf.mxu2  ;;  %5673 = vst [vmem:[#allocation19_spill] sm:$0xff] %v4602_v49 }
 0x15b   : > { %v1444_v5 = vpop.f32.mrf.mxu3  ;;  %v629_v43 = vrot.slane %v552_v55, 7  ;;  %v989_v42 = vpop.f32.mrf.mxu1 }
 0x15c   : > { %v4598_v14 = vadd.f32 %v1444_v5, %v1199_v29  ;;  %v4611_v5 = vld [vmem:[#allocation2 + $0x12a] sm:$0xff]  ;;  %v1202_v26 = vadd.f32 %v1201_v37, %v989_v42 }
 0x15d   : > { %v630_v44 = vsel %vm591_vm1, %v628_v1, %v629_v43  ;;  %v716_v24 = vsel %vm591_vm1, %v629_v43, 0.0  ;;  %v4604_v13 = vld [vmem:[#allocation2 + $0x138] sm:$0xff]  ;;  %5675 = vst [vmem:[#allocation21_spill] sm:$0xff] %v4611_v5 }
 0x15e   : > { %5672 = vst [vmem:[#allocation18_spill] sm:$0xff] %v4598_v14  ;;  %v509_v63 = vpop.f32.mrf.mxu0 }
 0x15f   : > { %5674 = vst [vmem:[#allocation20_spill] sm:$0xff] %v4604_v13  ;;  %3753 = vmatmul.msk.f32.gmra.mxu1 %vm721_vm2, %v4602_v49  ;;  %v510_v1 = vadd.f32 %v4191_v18, %v509_v63 }
 0x160   : > { %760 = vst.msk [vmem:[#allocation2 + $0x140] sm:$0xff] %vm721_vm2, %v630_v44  ;;  %3787 = vmatmul.msk.f32.gmra.mxu2 %vm721_vm2, %v4604_v13 }
 0x161   : > { %761 = vst.msk [vmem:[#allocation2 + $0x148] sm:$0x3] %vm724_vm3, %v716_v24  ;;  %3820 = vmatmul.msk.f32.gmra.mxu3 %vm721_vm2, %v4611_v5  ;;  %v553_v44 = vmax.f32 %v510_v1, 0.0  ;;  %3763 = vmatmul.msk.f32.gmra.mxu0 %vm721_vm2, %v4617_v3  ;;  %v4638_v1 = vld [vmem:[#allocation2 + $0x20] sm:$0xff] }
 0x162   : > { %v1204_v52 = vpop.f32.mrf.mxu2 }
 0x163   : > { %v1447_v29 = vpop.f32.mrf.mxu3  ;;  %v631_v55 = vrot.slane %v553_v44, 7  ;;  %v992_v13 = vpop.f32.mrf.mxu1 }
 0x164   : > { %v4621_v43 = vadd.f32 %v1447_v29, %v1202_v26  ;;  %v1205_v26 = vadd.f32 %v1204_v52, %v992_v13 }
 0x165   : > { %v701_v24 = vsel %vm591_vm1, 0.0, %v631_v55 }
 0x166   : > { %5676 = vst [vmem:[#allocation22_spill] sm:$0xff] %v4621_v43  ;;  %v512_v42 = vpop.f32.mrf.mxu0 }
 0x167   : > { %v4624_v14 = vld [vmem:[#allocation2 + $0x139] sm:$0xff]  ;;  %762 = vst.msk [vmem:[#allocation2 + $0x150] sm:$0xff] %vm721_vm2, %v701_v24  ;;  %v513_v37 = vadd.f32 %v4191_v18, %v512_v42 }
 0x168   : > { %5677 = vst [vmem:[#allocation23_spill] sm:$0xff] %v4624_v14  ;;  %v4626_v63 = vld [vmem:[#allocation2 + $0x140] sm:$0xff]  ;;  %3754 = vmatmul.msk.f32.gmra.mxu1 %vm721_vm2, %v4624_v14 }
 0x169   : > { %5678 = vst [vmem:[#allocation24_spill] sm:$0xff] %v4626_v63  ;;  %v4628_v5 = vld [vmem:[#allocation2 + $0x13a] sm:$0xff]  ;;  %3788 = vmatmul.msk.f32.gmra.mxu2 %vm721_vm2, %v4626_v63  ;;  %v554_v44 = vmax.f32 %v513_v37, 0.0  ;;  %3764 = vmatmul.msk.f32.gmra.mxu0 %vm721_vm2, %v4638_v1  ;;  %v4655_v52 = vld [vmem:[#allocation2 + $0x142] sm:$0xff] }
 0x16a   : > { %5679 = vst [vmem:[#allocation25_spill] sm:$0xff] %v4628_v5  ;;  %3821 = vmatmul.msk.f32.gmra.mxu3 %vm721_vm2, %v4628_v5  ;;  %v1207_v29 = vpop.f32.mrf.mxu2  ;;  %v4646_v49 = vld [vmem:[#allocation2 + $0x141] sm:$0xff] }
 0x16b   : > { %v1450_v24 = vpop.f32.mrf.mxu3  ;;  %v632_v43 = vrot.slane %v554_v44, 7  ;;  %v995_v14 = vpop.f32.mrf.mxu1  ;;  %5681 = vst [vmem:[#allocation27_spill] sm:$0xff] %v4646_v49 }
 0x16c   : > { %v4642_v23 = vadd.f32 %v1450_v24, %v1205_v26  ;;  %5683 = vst [vmem:[#allocation29_spill] sm:$0xff] %v4655_v52  ;;  %v1208_v37 = vadd.f32 %v1207_v29, %v995_v14 }
 0x16d   : > { %v633_v63 = vsel %vm591_vm1, %v631_v55, %v632_v43  ;;  %v717_v42 = vsel %vm591_vm1, %v632_v43, 0.0  ;;  %v4661_v43 = vld [vmem:[#allocation2 + $0x30] sm:$0xff] }
 0x16e   : > { %5680 = vst [vmem:[#allocation26_spill] sm:$0xff] %v4642_v23  ;;  %v4648_v5 = vld [vmem:[#allocation2 + $0x150] sm:$0xff]  ;;  %v515_v13 = vpop.f32.mrf.mxu0 }
 0x16f   : > { %5682 = vst [vmem:[#allocation28_spill] sm:$0xff] %v4648_v5  ;;  %v516_v55 = vadd.f32 %v4191_v18, %v515_v13 }
 0x170   : > { %763 = vst.msk [vmem:[#allocation2 + $0x158] sm:$0xff] %vm721_vm2, %v633_v63  ;;  %3755 = vmatmul.msk.f32.gmra.mxu1 %vm721_vm2, %v4646_v49 }
 0x171   : > { %3789 = vmatmul.msk.f32.gmra.mxu2 %vm721_vm2, %v4648_v5  ;;  %764 = vst.msk [vmem:[#allocation2 + $0x160] sm:$0x3] %vm724_vm3, %v717_v42  ;;  %v555_v63 = vmax.f32 %v516_v55, 0.0  ;;  %3765 = vmatmul.msk.f32.gmra.mxu0 %vm721_vm2, %v4661_v43  ;;  %v3997_v42 = vld [vmem:[%s5618_s3 + $0x20] sm:$0xf] }
 0x172   : > { %3822 = vmatmul.msk.f32.gmra.mxu3 %vm721_vm2, %v4655_v52  ;;  %v1210_v26 = vpop.f32.mrf.mxu2  ;;  %3998 = vmatpush.msk.msra.mxu2 %vm941_vm4, %v3997_v42 }
 0x173   : > { %v1453_v44 = vpop.f32.mrf.mxu3  ;;  %v634_v24 = vrot.slane %v555_v63, 7  ;;  %v998_v23 = vpop.f32.mrf.mxu1  ;;  %v3963_v63 = vld [vmem:[%s5618_s3 + $0x1c] sm:$0xf] }
 0x174   : > { %v4665_v5 = vadd.f32 %v1453_v44, %v1208_v37  ;;  %v4689_v44 = vld [vmem:[#allocation2 + $0x38] sm:$0xff]  ;;  %3964 = vmatpush.msk.msra.mxu1 %vm941_vm4, %v3963_v63  ;;  %v1211_v42 = vadd.f32 %v1210_v26, %v998_v23 }
 0x175   : > { %v702_v13 = vsel %vm591_vm1, 0.0, %v634_v24 }
 0x176   : > { %5684 = vst [vmem:[#allocation30_spill] sm:$0xff] %v4665_v5  ;;  %v518_v55 = vpop.f32.mrf.mxu0 }
 0x177   : > { %v4672_v52 = vld [vmem:[#allocation2 + $0x151] sm:$0xff]  ;;  %765 = vst.msk [vmem:[#allocation2 + $0x168] sm:$0xff] %vm721_vm2, %v702_v13  ;;  %v519_v37 = vadd.f32 %v4191_v18, %v518_v55 }
 0x178   : > { %5685 = vst [vmem:[#allocation31_spill] sm:$0xff] %v4672_v52  ;;  %v4674_v14 = vld [vmem:[#allocation2 + $0x158] sm:$0xff]  ;;  %3756 = vmatmul.msk.f32.gmra.mxu1 %vm721_vm2, %v4672_v52 }
 0x179   : > { %5686 = vst [vmem:[#allocation32_spill] sm:$0xff] %v4674_v14  ;;  %v4676_v29 = vld [vmem:[#allocation2 + $0x152] sm:$0xff]  ;;  %3790 = vmatmul.msk.f32.gmra.mxu2 %vm721_vm2, %v4674_v14  ;;  %v556_v13 = vmax.f32 %v519_v37, 0.0  ;;  %3766 = vmatmul.msk.f32.gmra.mxu0 %vm721_vm2, %v4689_v44  ;;  %v4707_v26 = vld [vmem:[#allocation2 + $0x15a] sm:$0xff] }
 0x17a   : > { %5687 = vst [vmem:[#allocation33_spill] sm:$0xff] %v4676_v29  ;;  %3823 = vmatmul.msk.f32.gmra.mxu3 %vm721_vm2, %v4676_v29  ;;  %v1213_v5 = vpop.f32.mrf.mxu2  ;;  %v4698_v4 = vld [vmem:[#allocation2 + $0x159] sm:$0xff] }
 0x17b   : > { %v1456_v14 = vpop.f32.mrf.mxu3  ;;  %v635_v52 = vrot.slane %v556_v13, 7  ;;  %v1001_v49 = vpop.f32.mrf.mxu1  ;;  %5689 = vst [vmem:[#allocation35_spill] sm:$0xff] %v4698_v4 }
 0x17c   : > { %v4694_v55 = vadd.f32 %v1456_v14, %v1211_v42  ;;  %5691 = vst [vmem:[#allocation37_spill] sm:$0xff] %v4707_v26  ;;  %v1214_v14 = vadd.f32 %v1213_v5, %v1001_v49 }
 0x17d   : > { %v636_v29 = vsel %vm591_vm1, %v634_v24, %v635_v52  ;;  %v718_v53 = vsel %vm591_vm1, %v635_v52, 0.0  ;;  %v4713_v52 = vld [vmem:[#allocation2 + $0x48] sm:$0xff] }
 0x17e   : > { %5688 = vst [vmem:[#allocation34_spill] sm:$0xff] %v4694_v55  ;;  %v4700_v28 = vld [vmem:[#allocation2 + $0x168] sm:$0xff]  ;;  %v521_v23 = vpop.f32.mrf.mxu0 }
 0x17f   : > { %5690 = vst [vmem:[#allocation36_spill] sm:$0xff] %v4700_v28  ;;  %v522_v24 = vadd.f32 %v4191_v18, %v521_v23 }
 0x180   : > { %766 = vst.msk [vmem:[#allocation2 + $0x170] sm:$0xff] %vm721_vm2, %v636_v29  ;;  %3757 = vmatmul.msk.f32.gmra.mxu1 %vm721_vm2, %v4698_v4 }
 0x181   : > { %3791 = vmatmul.msk.f32.gmra.mxu2 %vm721_vm2, %v4700_v28  ;;  %767 = vst.msk [vmem:[#allocation2 + $0x178] sm:$0x3] %vm724_vm3, %v718_v53  ;;  %v557_v29 = vmax.f32 %v522_v24, 0.0  ;;  %3767 = vmatmul.msk.f32.gmra.mxu0 %vm721_vm2, %v4713_v52  ;;  %v4734_v24 = vld [vmem:[#allocation2 + $0x50] sm:$0xff] }
 0x182   : > { %3824 = vmatmul.msk.f32.gmra.mxu3 %vm721_vm2, %v4707_v26  ;;  %v1216_v37 = vpop.f32.mrf.mxu2 }
 0x183   : > { %v1459_v63 = vpop.f32.mrf.mxu3  ;;  %v637_v42 = vrot.slane %v557_v29, 7  ;;  %v1004_v28 = vpop.f32.mrf.mxu1 }
 0x184   : > { %v4717_v13 = vadd.f32 %v1459_v63, %v1214_v14  ;;  %v1217_v14 = vadd.f32 %v1216_v37, %v1004_v28  ;;  %v1270_v37 = vld [vmem:[#allocation2 + $0x2] sm:$0xff] }
 0x185   : > { %v703_v53 = vsel %vm591_vm1, 0.0, %v637_v42 }
 0x186   : > { %5692 = vst [vmem:[#allocation38_spill] sm:$0xff] %v4717_v13  ;;  %v524_v49 = vpop.f32.mrf.mxu0 }
 0x187   : > { %v4720_v55 = vld [vmem:[#allocation2 + $0x169] sm:$0xff]  ;;  %768 = vst.msk [vmem:[#allocation2 + $0x180] sm:$0xff] %vm721_vm2, %v703_v53  ;;  %v525_v5 = vadd.f32 %v4191_v18, %v524_v49 }
 0x188   : > { %5693 = vst [vmem:[#allocation39_spill] sm:$0xff] %v4720_v55  ;;  %v4722_v23 = vld [vmem:[#allocation2 + $0x170] sm:$0xff]  ;;  %3758 = vmatmul.msk.f32.gmra.mxu1 %vm721_vm2, %v4720_v55 }
 0x189   : > { %5694 = vst [vmem:[#allocation40_spill] sm:$0xff] %v4722_v23  ;;  %v4724_v26 = vld [vmem:[#allocation2 + $0x16a] sm:$0xff]  ;;  %3792 = vmatmul.msk.f32.gmra.mxu2 %vm721_vm2, %v4722_v23  ;;  %v558_v29 = vmax.f32 %v525_v5, 0.0  ;;  %3768 = vmatmul.msk.f32.gmra.mxu0 %vm721_vm2, %v4734_v24  ;;  %v4749_v28 = vld [vmem:[#allocation2 + $0x172] sm:$0xff] }
 0x18a   : > { %5695 = vst [vmem:[#allocation41_spill] sm:$0xff] %v4724_v26  ;;  %3825 = vmatmul.msk.f32.gmra.mxu3 %vm721_vm2, %v4724_v26  ;;  %v1219_v63 = vpop.f32.mrf.mxu2  ;;  %v4742_v49 = vld [vmem:[#allocation2 + $0x171] sm:$0xff] }
 0x18b   : > { %v1462_v53 = vpop.f32.mrf.mxu3  ;;  %v638_v13 = vrot.slane %v558_v29, 7  ;;  %v1007_v55 = vpop.f32.mrf.mxu1 }
 0x18c   : > { %v4738_v4 = vadd.f32 %v1462_v53, %v1217_v14  ;;  %v1271_v53 = vld [vmem:[#allocation2 + $0xa] sm:$0xff] }
 0x18d   : > { %v639_v23 = vsel %vm591_vm1, %v637_v42, %v638_v13  ;;  %v719_v18 = vsel %vm591_vm1, %v638_v13, 0.0  ;;  %v1220_v42 = vadd.f32 %v1219_v63, %v1007_v55 }
 0x18e   : > { %769 = vst.msk [vmem:[#allocation2 + $0x188] sm:$0xff] %vm721_vm2, %v639_v23  ;;  %v4745_v26 = vpop.f32.mrf.mxu0 }
 0x18f   : > { %770 = vst.msk [vmem:[#allocation2 + $0x190] sm:$0x3] %vm724_vm3, %v719_v18 }
 0x190   : > { %3759 = vmatmul.msk.f32.gmra.mxu1 %vm721_vm2, %v4742_v49 }
 0x191   : > { %3863 = vmatmul.msk.f32.vlgmr.msrb.gmra.mxu2 %vm721_vm2, %v4457_v2  ;;  %3795 = vmatmul.msk.f32.vlgmr.msrb.gmra.mxu0 %vm721_vm2, %v1270_v37  ;;  %v2104_v2 = vld [vmem:[#allocation2 + $0x1a] sm:$0xff] }
 0x192   : > { %3826 = vmatmul.msk.f32.gmra.mxu3 %vm721_vm2, %v4749_v28  ;;  %v1222_v13 = vpop.f32.mrf.mxu2 }
 0x193   : > { %v1465_v23 = vpop.f32.mrf.mxu3  ;;  %v1010_v14 = vpop.f32.mrf.mxu1 }
 0x194   : > { %v4757_v5 = vadd.f32 %v1465_v23, %v1220_v42  ;;  %v1223_v55 = vadd.f32 %v1222_v13, %v1010_v14 }
 0x196   : > { %v4759_v29 = vpop.f32.mrf.mxu0 }
 0x198   : > { %3829 = vmatmul.msk.f32.vlgmr.msrb.gmra.mxu1 %vm721_vm2, %v4617_v3 }
 0x199   : > { %3864 = vmatmul.msk.f32.gmra.mxu2 %vm721_vm2, %v4476_v15  ;;  %3796 = vmatmul.msk.f32.gmra.mxu0 %vm721_vm2, %v1271_v53  ;;  %v2105_v15 = vld [vmem:[#allocation2 + $0x22] sm:$0xff] }
 0x19a   : > { %3897 = vmatmul.msk.f32.vlgmr.msrb.gmra.mxu3 %vm721_vm2, %v2104_v2  ;;  %v1225_v63 = vpop.f32.mrf.mxu2 }
 0x19b   : > { %v1468_v18 = vpop.f32.mrf.mxu3  ;;  %v1013_v42 = vpop.f32.mrf.mxu1 }
 0x19c   : > { %v4767_v37 = vadd.f32 %v1468_v18, %v1223_v55  ;;  %v1226_v3 = vadd.f32 %v1225_v63, %v1013_v42 }
 0x19e   : > { %v4769_v23 = vpop.f32.mrf.mxu0 }
 0x1a0   : > { %3830 = vmatmul.msk.f32.gmra.mxu1 %vm721_vm2, %v4638_v1 }
 0x1a1   : > { %3865 = vmatmul.msk.f32.gmra.mxu2 %vm721_vm2, %v4497_v38  ;;  %3797 = vmatmul.msk.f32.gmra.mxu0 %vm721_vm2, %v2104_v2  ;;  %v4785_v38 = vld [vmem:[#allocation2 + $0x32] sm:$0xff] }
 0x1a2   : > { %3898 = vmatmul.msk.f32.gmra.mxu3 %vm721_vm2, %v2105_v15  ;;  %v1228_v13 = vpop.f32.mrf.mxu2 }
 0x1a3   : > { %v1471_v14 = vpop.f32.mrf.mxu3  ;;  %v1016_v55 = vpop.f32.mrf.mxu1 }
 0x1a4   : > { %v4777_v53 = vadd.f32 %v1471_v14, %v1226_v3  ;;  %v1229_v1 = vadd.f32 %v1228_v13, %v1016_v55 }
 0x1a6   : > { %5696 = vst [vmem:[#allocation42_spill] sm:$0xff] %v4777_v53  ;;  %v4779_v18 = vpop.f32.mrf.mxu0  ;;  %v4816_v53 = vld [vmem:[#allocation2 + $0x4a] sm:$0xff] }
 0x1a8   : > { %3831 = vmatmul.msk.f32.gmra.mxu1 %vm721_vm2, %v4661_v43 }
 0x1a9   : > { %3866 = vmatmul.msk.f32.gmra.mxu2 %vm721_vm2, %v4516_v56  ;;  %3798 = vmatmul.msk.f32.gmra.mxu0 %vm721_vm2, %v2105_v15  ;;  %v4798_v56 = vld [vmem:[#allocation2 + $0x3a] sm:$0xff] }
 0x1aa   : > { %3899 = vmatmul.msk.f32.gmra.mxu3 %vm721_vm2, %v4785_v38  ;;  %v1231_v63 = vpop.f32.mrf.mxu2  ;;  %5698 = vst [vmem:[#allocation44_spill] sm:$0xff] %v4798_v56  ;;  %v3929_v15 = vld [vmem:[%s5618_s3 + $0x18] sm:$0xf] }
 0x1ab   : > { %v1474_v2 = vpop.f32.mrf.mxu3  ;;  %v1019_v3 = vpop.f32.mrf.mxu1  ;;  %3930 = vmatpush.msk.msra.mxu0 %vm941_vm4, %v3929_v15 }
 0x1ac   : > { %v4790_v42 = vadd.f32 %v1474_v2, %v1229_v1  ;;  %v1232_v13 = vadd.f32 %v1231_v63, %v1019_v3 }
 0x1ae   : > { %5697 = vst [vmem:[#allocation43_spill] sm:$0xff] %v4790_v42  ;;  %v4792_v14 = vpop.f32.mrf.mxu0 }
 0x1b0   : > { %3832 = vmatmul.msk.f32.gmra.mxu1 %vm721_vm2, %v4689_v44 }
 0x1b1   : > { %3867 = vmatmul.msk.f32.gmra.mxu2 %vm721_vm2, %v4540_v25  ;;  %3799 = vmatmul.msk.f32.gmra.mxu0 %vm721_vm2, %v4785_v38 }
 0x1b2   : > { %3900 = vmatmul.msk.f32.gmra.mxu3 %vm721_vm2, %v4798_v56  ;;  %v1234_v55 = vpop.f32.mrf.mxu2 }
 0x1b3   : > { %v1477_v1 = vpop.f32.mrf.mxu3 }
 0x1b4   : > { %v4808_v2 = vadd.f32 %v1477_v1, %v1232_v13  ;;  %v1022_v25 = vpop.f32.mrf.mxu1 }
 0x1b5   : > { %v1235_v63 = vadd.f32 %v1234_v55, %v1022_v25 }
 0x1b6   : > { %5699 = vst [vmem:[#allocation45_spill] sm:$0xff] %v4808_v2  ;;  %v4810_v42 = vpop.f32.mrf.mxu0 }
 0x1b8   : > { %3833 = vmatmul.msk.f32.gmra.mxu1 %vm721_vm2, %v4713_v52 }
 0x1b9   : > { %3868 = vmatmul.msk.f32.gmra.mxu2 %vm721_vm2, %v4560_v57  ;;  %3800 = vmatmul.msk.f32.gmra.mxu0 %vm721_vm2, %v4798_v56  ;;  %v4830_v57 = vld [vmem:[#allocation2 + $0x52] sm:$0xff] }
 0x1ba   : > { %3901 = vmatmul.msk.f32.gmra.mxu3 %vm721_vm2, %v4816_v53 }
 0x1bb   : > { %v1237_v3 = vpop.f32.mrf.mxu2 }
 0x1bc   : > { %v1480_v15 = vpop.f32.mrf.mxu3  ;;  %v1025_v1 = vpop.f32.mrf.mxu1 }
 0x1bd   : > { %v4822_v13 = vadd.f32 %v1480_v15, %v1235_v63  ;;  %v1238_v55 = vadd.f32 %v1237_v3, %v1025_v1 }
 0x1be   : > { %v4824_v2 = vpop.f32.mrf.mxu0 }
 0x1bf   : > { %5700 = vst [vmem:[#allocation46_spill] sm:$0xff] %v4822_v13 }
 0x1c0   : > { %3834 = vmatmul.msk.f32.gmra.mxu1 %vm721_vm2, %v4734_v24 }
 0x1c1   : > { %3869 = vmatmul.msk.f32.gmra.mxu2 %vm721_vm2, %v4274_v20  ;;  %3801 = vmatmul.msk.f32.gmra.mxu0 %vm721_vm2, %v4816_v53 }
 0x1c2   : > { %3902 = vmatmul.msk.f32.gmra.mxu3 %vm721_vm2, %v4830_v57 }
 0x1c3   : > { %v1240_v25 = vpop.f32.mrf.mxu2 }
 0x1c4   : > { %v1483_v63 = vpop.f32.mrf.mxu3  ;;  %v1028_v13 = vpop.f32.mrf.mxu1 }
 0x1c5   : > { %v4836_v15 = vadd.f32 %v1483_v63, %v1238_v55  ;;  %v1241_v20 = vadd.f32 %v1240_v25, %v1028_v13 }
 0x1c6   : > { %v4838_v56 = vpop.f32.mrf.mxu0 }
 0x1c7   : > { %5701 = vst [vmem:[#allocation47_spill] sm:$0xff] %v4836_v15 }
 0x1c8   : > { %3835 = vmatmul.msk.f32.gmra.mxu1 %vm721_vm2, %v4264_v12 }
 0x1c9   : > { %3870 = vmatmul.msk.f32.gmra.mxu2 %vm721_vm2, %v4292_v30  ;;  %3802 = vmatmul.msk.f32.gmra.mxu0 %vm721_vm2, %v4830_v57 }
 0x1ca   : > { %3903 = vmatmul.msk.f32.gmra.mxu3 %vm721_vm2, %v4278_v22 }
 0x1cb   : > { %v1243_v3 = vpop.f32.mrf.mxu2 }
 0x1cc   : > { %v1486_v1 = vpop.f32.mrf.mxu3  ;;  %v1031_v63 = vpop.f32.mrf.mxu1 }
 0x1cd   : > { %v4848_v55 = vadd.f32 %v1486_v1, %v1241_v20  ;;  %v1244_v12 = vadd.f32 %v1243_v3, %v1031_v63 }
 0x1ce   : > { %v4850_v15 = vpop.f32.mrf.mxu0 }
 0x1d0   : > { %3836 = vmatmul.msk.f32.gmra.mxu1 %vm721_vm2, %v4276_v21 }
 0x1d1   : > { %3871 = vmatmul.msk.f32.gmra.mxu2 %vm721_vm2, %v4310_v39  ;;  %3931 = vmatmul.msk.f32.vlgmr.msra.gmra.mxu0 %vm721_vm2, %v4661_v43 }
 0x1d2   : > { %3904 = vmatmul.msk.f32.gmra.mxu3 %vm721_vm2, %v4301_v33 }
 0x1d3   : > { %v1246_v22 = vpop.f32.mrf.mxu2 }
 0x1d4   : > { %v1489_v30 = vpop.f32.mrf.mxu3  ;;  %v1034_v25 = vpop.f32.mrf.mxu1 }
 0x1d5   : > { %v4860_v13 = vadd.f32 %v1489_v30, %v1244_v12  ;;  %v1247_v21 = vadd.f32 %v1246_v22, %v1034_v25 }
 0x1d6   : > { %v4862_v20 = vpop.f32.mrf.mxu0 }
 0x1d8   : > { %3837 = vmatmul.msk.f32.gmra.mxu1 %vm721_vm2, %v4294_v31 }
 0x1d9   : > { %3872 = vmatmul.msk.f32.gmra.mxu2 %vm721_vm2, %v4331_v50  ;;  %3932 = vmatmul.msk.f32.gmra.mxu0 %vm721_vm2, %v4689_v44 }
 0x1da   : > { %3905 = vmatmul.msk.f32.gmra.mxu3 %vm721_vm2, %v4314_v41 }
 0x1db   : > { %v1249_v33 = vpop.f32.mrf.mxu2 }
 0x1dc   : > { %v1492_v39 = vpop.f32.mrf.mxu3  ;;  %v1037_v3 = vpop.f32.mrf.mxu1 }
 0x1dd   : > { %v4872_v43 = vadd.f32 %v1492_v39, %v1247_v21  ;;  %v1250_v31 = vadd.f32 %v1249_v33, %v1037_v3 }
 0x1de   : > { %v4874_v1 = vpop.f32.mrf.mxu0 }
 0x1e0   : > { %3838 = vmatmul.msk.f32.gmra.mxu1 %vm721_vm2, %v4312_v40 }
 0x1e1   : > { %3873 = vmatmul.msk.f32.gmra.mxu2 %vm721_vm2, %v4352_v60  ;;  %3933 = vmatmul.msk.f32.gmra.mxu0 %vm721_vm2, %v4713_v52 }
 0x1e2   : > { %3906 = vmatmul.msk.f32.gmra.mxu3 %vm721_vm2, %v4341_v54 }
 0x1e3   : > { %v1252_v41 = vpop.f32.mrf.mxu2 }
 0x1e4   : > { %v1495_v50 = vpop.f32.mrf.mxu3 }
 0x1e5   : > { %v4884_v44 = vadd.f32 %v1495_v50, %v1250_v31  ;;  %v1040_v63 = vpop.f32.mrf.mxu1 }
 0x1e6   : > { %v4886_v12 = vpop.f32.mrf.mxu0  ;;  %v1253_v40 = vadd.f32 %v1252_v41, %v1040_v63  ;;  %v3285_v41 = vld [vmem:[%s5620_s5] sm:$0xf] }
 0x1e7   : > { %4031 = vmatpush.msk.msra.mxu3 %vm941_vm4, %v3285_v41 }
 0x1e8   : > { %3839 = vmatmul.msk.f32.gmra.mxu1 %vm721_vm2, %v4333_v51  ;;  %v2387_v51 = vld [vmem:[#allocation2 + $0x60] sm:$0xff] }
 0x1e9   : > { %3874 = vmatmul.msk.f32.gmra.mxu2 %vm721_vm2, %v4370_v6  ;;  %3934 = vmatmul.msk.f32.gmra.mxu0 %vm721_vm2, %v4734_v24 }
 0x1ea   : > { %3907 = vmatmul.msk.f32.gmra.mxu3 %vm721_vm2, %v4356_v62 }
 0x1ec   : > { %v1255_v54 = vpop.f32.mrf.mxu2 }
 0x1ed   : > { %v1498_v60 = vpop.f32.mrf.mxu3  ;;  %v1043_v22 = vpop.f32.mrf.mxu1 }
 0x1ee   : > { %v4896_v52 = vadd.f32 %v1498_v60, %v1253_v40  ;;  %v4898_v30 = vpop.f32.mrf.mxu0  ;;  %v1256_v62 = vadd.f32 %v1255_v54, %v1043_v22 }
 0x1f0   : > { %3840 = vmatmul.msk.f32.gmra.mxu1 %vm721_vm2, %v4354_v61  ;;  %v2388_v61 = vld [vmem:[#allocation2 + $0x68] sm:$0xff] }
 0x1f1   : > { %3875 = vmatmul.msk.f32.gmra.mxu2 %vm721_vm2, %v4388_v16  ;;  %3935 = vmatmul.msk.f32.gmra.mxu0 %vm721_vm2, %v2387_v51 }
 0x1f2   : > { %3908 = vmatmul.msk.f32.gmra.mxu3 %vm721_vm2, %v4379_v9 }
 0x1f4   : > { %v1258_v6 = vpop.f32.mrf.mxu2 }
 0x1f5   : > { %v1501_v24 = vpop.f32.mrf.mxu3  ;;  %v1046_v21 = vpop.f32.mrf.mxu1 }
 0x1f6   : > { %v4907_v25 = vadd.f32 %v1501_v24, %v1256_v62  ;;  %v4909_v33 = vpop.f32.mrf.mxu0  ;;  %v1259_v9 = vadd.f32 %v1258_v6, %v1046_v21  ;;  %v1175_v6 = vadd.f32 %v4850_v15, %v4745_v26  ;;  %v1178_v15 = vadd.f32 %v4862_v20, %v4759_v29 }
 0x1f8   : > { %3841 = vmatmul.msk.f32.gmra.mxu1 %vm721_vm2, %v4372_v7 }
 0x1f9   : > { %3876 = vmatmul.msk.f32.gmra.mxu2 %vm721_vm2, %v4406_v32  ;;  %3936 = vmatmul.msk.f32.gmra.mxu0 %vm721_vm2, %v2388_v61 }
 0x1fa   : > { %3909 = vmatmul.msk.f32.gmra.mxu3 %vm721_vm2, %v4392_v19  ;;  %v2389_v19 = vld [vmem:[#allocation2 + $0x78] sm:$0xff] }
 0x1fc   : > { %v1261_v16 = vpop.f32.mrf.mxu2 }
 0x1fd   : > { %v1504_v39 = vpop.f32.mrf.mxu3  ;;  %v1049_v31 = vpop.f32.mrf.mxu1 }
 0x1fe   : > { %v4918_v3 = vadd.f32 %v1504_v39, %v1259_v9  ;;  %v4924_v7 = vpop.f32.mrf.mxu0  ;;  %v1262_v32 = vadd.f32 %v1261_v16, %v1049_v31  ;;  %v2392_v39 = vld [vmem:[#allocation2 + $0x98] sm:$0xff] }
 0x200   : > { %3842 = vmatmul.msk.f32.gmra.mxu1 %vm721_vm2, %v4390_v17  ;;  %v2390_v17 = vld [vmem:[#allocation2 + $0x80] sm:$0xff] }
 0x201   : > { %3877 = vmatmul.msk.f32.gmra.mxu2 %vm721_vm2, %v4425_v45  ;;  %3937 = vmatmul.msk.f32.gmra.mxu0 %vm721_vm2, %v2389_v19 }
 0x202   : > { %3910 = vmatmul.msk.f32.gmra.mxu3 %vm721_vm2, %v4415_v36 }
 0x204   : > { %v1264_v50 = vpop.f32.mrf.mxu2 }
 0x205   : > { %v1507_v63 = vpop.f32.mrf.mxu3  ;;  %v1052_v54 = vpop.f32.mrf.mxu1 }
 0x206   : > { %v4933_v40 = vadd.f32 %v1507_v63, %v1262_v32  ;;  %v4935_v60 = vpop.f32.mrf.mxu0  ;;  %v1265_v36 = vadd.f32 %v1264_v50, %v1052_v54 }
 0x208   : > { %3843 = vmatmul.msk.f32.gmra.mxu1 %vm721_vm2, %v4408_v34 }
 0x209   : > { %3878 = vmatmul.msk.f32.gmra.mxu2 %vm721_vm2, %v4442_v58  ;;  %3938 = vmatmul.msk.f32.gmra.mxu0 %vm721_vm2, %v2390_v17 }
 0x20a   : > { %3911 = vmatmul.msk.f32.gmra.mxu3 %vm721_vm2, %v4429_v47  ;;  %v2391_v47 = vld [vmem:[#allocation2 + $0x90] sm:$0xff] }
 0x20c   : > { %v1267_v45 = vpop.f32.mrf.mxu2 }
 0x20d   : > { %v1510_v22 = vpop.f32.mrf.mxu3  ;;  %v1055_v62 = vpop.f32.mrf.mxu1 }
 0x20e   : > { %v4944_v51 = vadd.f32 %v1510_v22, %v1265_v36  ;;  %v1420_v24 = vpop.f32.mrf.mxu0  ;;  %v1268_v58 = vadd.f32 %v1267_v45, %v1055_v62  ;;  %v5702_v22 = vld [vmem:[#allocation3_spill] sm:$0xff]  ;;  %v5704_v62 = vld [vmem:[#allocation5_spill] sm:$0xff] }
 0x20f   : > { %v1516_v34 = vadd.f32 %v1420_v24, %v1175_v6 }
 0x210   : > { %3844 = vmatmul.msk.f32.gmra.mxu1 %vm721_vm2, %v4427_v46 }
 0x211   : > { %3879 = vmatmul.msk.f32.gmra.mxu2 %vm721_vm2, %v4462_v8  ;;  %3939 = vmatmul.msk.f32.gmra.mxu0 %vm721_vm2, %v2391_v47 }
 0x212   : > { %3912 = vmatmul.msk.f32.gmra.mxu3 %vm721_vm2, %v4451_v0 }
 0x214   : > { %v1976_v21 = vpop.f32.mrf.mxu2 }
 0x215   : > { %v1513_v61 = vpop.f32.mrf.mxu3  ;;  %v1698_v26 = vpop.f32.mrf.mxu1 }
 0x216   : > { %v4955_v9 = vadd.f32 %v1513_v61, %v1268_v58  ;;  %v1794_v46 = vadd.f32 %v1698_v26, %v1516_v34  ;;  %v1423_v16 = vpop.f32.mrf.mxu0  ;;  %v5705_v26 = vld [vmem:[#allocation4_spill] sm:$0xff] }
 0x217   : > { %v1517_v8 = vadd.f32 %v1423_v16, %v1178_v15  ;;  %v5706_v15 = vld [vmem:[#allocation9_spill] sm:$0xff]  ;;  %v5707_v16 = vld [vmem:[#allocation8_spill] sm:$0xff] }
 0x218   : > { %3845 = vmatmul.msk.f32.gmra.mxu1 %vm721_vm2, %v4444_v59  ;;  %v2072_v0 = vadd.f32 %v1976_v21, %v1794_v46 }
 0x219   : > { %3880 = vmatmul.msk.f32.gmra.mxu2 %vm721_vm2, %v4482_v27  ;;  %3940 = vmatmul.msk.f32.gmra.mxu0 %vm721_vm2, %v2392_v39  ;;  %v2393_v27 = vld [vmem:[#allocation2 + $0xa8] sm:$0xff] }
 0x21a   : > { %3913 = vmatmul.msk.f32.gmra.mxu3 %vm721_vm2, %v4466_v11  ;;  %v1181_v11 = vadd.f32 %v4874_v1, %v4769_v23  ;;  %v1184_v23 = vadd.f32 %v4886_v12, %v4779_v18  ;;  %v2394_v1 = vld [vmem:[#allocation2 + $0xb0] sm:$0xff]  ;;  %v1187_v18 = vadd.f32 %v4898_v30, %v4792_v14  ;;  %v2395_v12 = vld [vmem:[#allocation2 + $0xc0] sm:$0xff]  ;;  %v1190_v14 = vadd.f32 %v4909_v33, %v4810_v42  ;;  %v2396_v30 = vld [vmem:[#allocation2 + $0xc8] sm:$0xff] }
 0x21b   : > { %v1193_v42 = vadd.f32 %v4924_v7, %v4824_v2  ;;  %v2397_v33 = vld [vmem:[#allocation2 + $0xd8] sm:$0xff]  ;;  %v1196_v2 = vadd.f32 %v4935_v60, %v4838_v56  ;;  %v2398_v7 = vld [vmem:[#allocation2 + $0xe0] sm:$0xff]  ;;  %v2399_v56 = vld [vmem:[#allocation2 + $0xf0] sm:$0xff] }
 0x21c   : > { %v1979_v31 = vpop.f32.mrf.mxu2 }
 0x21d   : > { %v2254_v41 = vpop.f32.mrf.mxu3  ;;  %v1701_v29 = vpop.f32.mrf.mxu1 }
 0x21e   : > { %v4966_v19 = vadd.f32 %v2254_v41, %v2072_v0  ;;  %v1795_v20 = vadd.f32 %v1701_v29, %v1517_v8  ;;  %v1426_v32 = vpop.f32.mrf.mxu0 }
 0x21f   : > { %v1518_v63 = vadd.f32 %v1426_v32, %v1181_v11  ;;  %v5708_v32 = vld [vmem:[#allocation7_spill] sm:$0xff] }
 0x220   : > { %3846 = vmatmul.msk.f32.gmra.mxu1 %vm721_vm2, %v4464_v10  ;;  %v2073_v59 = vadd.f32 %v1979_v31, %v1795_v20 }
 0x221   : > { %3881 = vmatmul.msk.f32.gmra.mxu2 %vm721_vm2, %v4502_v48  ;;  %3941 = vmatmul.msk.f32.gmra.mxu0 %vm721_vm2, %v2393_v27  ;;  %v5703_v48 = vld [vmem:[#allocation6_spill] sm:$0xff]  ;;  %v5710_v27 = vld [vmem:[#allocation11_spill] sm:$0xff] }
 0x222   : > { %3914 = vmatmul.msk.f32.gmra.mxu3 %vm721_vm2, %v4491_v35 }
 0x224   : > { %v1982_v50 = vpop.f32.mrf.mxu2 }
 0x225   : > { %v2257_v54 = vpop.f32.mrf.mxu3  ;;  %v1704_v36 = vpop.f32.mrf.mxu1 }
 0x226   : > { %v4977_v17 = vadd.f32 %v2257_v54, %v2073_v59  ;;  %v1796_v10 = vadd.f32 %v1704_v36, %v1518_v63  ;;  %v1429_v45 = vpop.f32.mrf.mxu0  ;;  %v5709_v59 = vld [vmem:[#allocation12_spill] sm:$0xff] }
 0x227   : > { %v1519_v24 = vadd.f32 %v1429_v45, %v1184_v23  ;;  %v5713_v23 = vld [vmem:[#allocation14_spill] sm:$0xff] }
 0x228   : > { %3847 = vmatmul.msk.f32.gmra.mxu1 %vm721_vm2, %v5702_v22  ;;  %v2074_v35 = vadd.f32 %v1982_v50, %v1796_v10 }
 0x229   : > { %3882 = vmatmul.msk.f32.gmra.mxu2 %vm721_vm2, %v5703_v48  ;;  %3942 = vmatmul.msk.f32.gmra.mxu0 %vm721_vm2, %v2394_v1  ;;  %v5711_v48 = vld [vmem:[#allocation10_spill] sm:$0xff] }
 0x22a   : > { %3915 = vmatmul.msk.f32.gmra.mxu3 %vm721_vm2, %v5704_v62 }
 0x22c   : > { %v1985_v6 = vpop.f32.mrf.mxu2 }
 0x22d   : > { %v2260_v34 = vpop.f32.mrf.mxu3  ;;  %v1707_v58 = vpop.f32.mrf.mxu1 }
 0x22e   : > { %v4988_v47 = vadd.f32 %v2260_v34, %v2074_v35  ;;  %v1797_v21 = vadd.f32 %v1707_v58, %v1519_v24  ;;  %v1432_v61 = vpop.f32.mrf.mxu0  ;;  %v5712_v35 = vld [vmem:[#allocation15_spill] sm:$0xff] }
 0x22f   : > { %v1520_v8 = vadd.f32 %v1432_v61, %v1187_v18  ;;  %v5714_v61 = vld [vmem:[#allocation13_spill] sm:$0xff] }
 0x230   : > { %3848 = vmatmul.msk.f32.gmra.mxu1 %vm721_vm2, %v5705_v26  ;;  %v2075_v46 = vadd.f32 %v1985_v6, %v1797_v21  ;;  %v5715_v26 = vld [vmem:[#allocation19_spill] sm:$0xff] }
 0x231   : > { %3883 = vmatmul.msk.f32.gmra.mxu2 %vm721_vm2, %v5706_v15  ;;  %3943 = vmatmul.msk.f32.gmra.mxu0 %vm721_vm2, %v2395_v12 }
 0x232   : > { %3916 = vmatmul.msk.f32.gmra.mxu3 %vm721_vm2, %v5707_v16  ;;  %v5716_v16 = vld [vmem:[#allocation17_spill] sm:$0xff] }
 0x234   : > { %v1988_v0 = vpop.f32.mrf.mxu2 }
 0x235   : > { %v2263_v39 = vpop.f32.mrf.mxu3  ;;  %v1710_v41 = vpop.f32.mrf.mxu1 }
 0x236   : > { %v4999_v31 = vadd.f32 %v2263_v39, %v2075_v46  ;;  %v1798_v29 = vadd.f32 %v1710_v41, %v1520_v8  ;;  %v1435_v20 = vpop.f32.mrf.mxu0 }
 0x237   : > { %v1521_v63 = vadd.f32 %v1435_v20, %v1190_v14  ;;  %v5718_v20 = vld [vmem:[#allocation23_spill] sm:$0xff] }
 0x238   : > { %3849 = vmatmul.msk.f32.gmra.mxu1 %vm721_vm2, %v5708_v32  ;;  %v2076_v11 = vadd.f32 %v1988_v0, %v1798_v29  ;;  %v5717_v29 = vld [vmem:[#allocation16_spill] sm:$0xff] }
 0x239   : > { %3884 = vmatmul.msk.f32.gmra.mxu2 %vm721_vm2, %v5709_v59  ;;  %3944 = vmatmul.msk.f32.gmra.mxu0 %vm721_vm2, %v2396_v30  ;;  %v5719_v59 = vld [vmem:[#allocation21_spill] sm:$0xff]  ;;  %v5720_v30 = vld [vmem:[#allocation18_spill] sm:$0xff] }
 0x23a   : > { %3917 = vmatmul.msk.f32.gmra.mxu3 %vm721_vm2, %v5710_v27 }
 0x23c   : > { %v1991_v50 = vpop.f32.mrf.mxu2 }
 0x23d   : > { %v2266_v54 = vpop.f32.mrf.mxu3  ;;  %v1713_v10 = vpop.f32.mrf.mxu1 }
 0x23e   : > { %v5010_v36 = vadd.f32 %v2266_v54, %v2076_v11  ;;  %v1799_v45 = vadd.f32 %v1713_v10, %v1521_v63  ;;  %v1438_v22 = vpop.f32.mrf.mxu0  ;;  %v5721_v63 = vld [vmem:[#allocation20_spill] sm:$0xff]  ;;  %v5722_v54 = vld [vmem:[#allocation27_spill] sm:$0xff] }
 0x23f   : > { %v1522_v6 = vadd.f32 %v1438_v22, %v1193_v42  ;;  %v2400_v22 = vld [vmem:[#allocation2 + $0xf8] sm:$0xff] }
 0x240   : > { %3850 = vmatmul.msk.f32.gmra.mxu1 %vm721_vm2, %v5711_v48  ;;  %v2077_v62 = vadd.f32 %v1991_v50, %v1799_v45  ;;  %v5723_v45 = vld [vmem:[#allocation25_spill] sm:$0xff]  ;;  %v5725_v42 = vld [vmem:[#allocation24_spill] sm:$0xff] }
 0x241   : > { %3885 = vmatmul.msk.f32.gmra.mxu2 %vm721_vm2, %v5712_v35  ;;  %3945 = vmatmul.msk.f32.gmra.mxu0 %vm721_vm2, %v2397_v33  ;;  %v5726_v33 = vld [vmem:[#allocation31_spill] sm:$0xff] }
 0x242   : > { %3918 = vmatmul.msk.f32.gmra.mxu3 %vm721_vm2, %v5713_v23 }
 0x244   : > { %v1994_v1 = vpop.f32.mrf.mxu2 }
 0x245   : > { %v2269_v24 = vpop.f32.mrf.mxu3  ;;  %v1716_v58 = vpop.f32.mrf.mxu1 }
 0x246   : > { %v5021_v34 = vadd.f32 %v2269_v24, %v2077_v62  ;;  %v1800_v21 = vadd.f32 %v1716_v58, %v1522_v6  ;;  %v1441_v46 = vpop.f32.mrf.mxu0  ;;  %v5724_v62 = vld [vmem:[#allocation22_spill] sm:$0xff]  ;;  %v5727_v6 = vld [vmem:[#allocation29_spill] sm:$0xff] }
 0x247   : > { %v1523_v12 = vadd.f32 %v1441_v46, %v1196_v2  ;;  %v2401_v24 = vld [vmem:[#allocation2 + $0x108] sm:$0xff]  ;;  %v5730_v46 = vld [vmem:[#allocation35_spill] sm:$0xff]  ;;  %v5731_v2 = vld [vmem:[#allocation33_spill] sm:$0xff] }
 0x248   : > { %3851 = vmatmul.msk.f32.gmra.mxu1 %vm721_vm2, %v5714_v61  ;;  %v2078_v15 = vadd.f32 %v1994_v1, %v1800_v21  ;;  %v5728_v61 = vld [vmem:[#allocation26_spill] sm:$0xff] }
 0x249   : > { %3886 = vmatmul.msk.f32.gmra.mxu2 %vm721_vm2, %v5715_v26  ;;  %3946 = vmatmul.msk.f32.gmra.mxu0 %vm721_vm2, %v2398_v7  ;;  %v2402_v7 = vld [vmem:[#allocation2 + $0x110] sm:$0xff] }
 0x24a   : > { %3919 = vmatmul.msk.f32.gmra.mxu3 %vm721_vm2, %v5716_v16 }
 0x24c   : > { %v1997_v18 = vpop.f32.mrf.mxu2 }
 0x24d   : > { %v2272_v0 = vpop.f32.mrf.mxu3  ;;  %v1719_v39 = vpop.f32.mrf.mxu1 }
 0x24e   : > { %v5032_v8 = vadd.f32 %v2272_v0, %v2078_v15  ;;  %v1801_v41 = vadd.f32 %v1719_v39, %v1523_v12  ;;  %v5729_v15 = vld [vmem:[#allocation28_spill] sm:$0xff]  ;;  %v5732_v0 = vld [vmem:[#allocation30_spill] sm:$0xff] }
 0x250   : > { %3852 = vmatmul.msk.f32.gmra.mxu1 %vm721_vm2, %v5717_v29  ;;  %v2079_v32 = vadd.f32 %v1997_v18, %v1801_v41  ;;  %v5733_v41 = vld [vmem:[#allocation32_spill] sm:$0xff]  ;;  %v5734_v29 = vld [vmem:[#allocation39_spill] sm:$0xff] }
 0x251   : > { %3887 = vmatmul.msk.f32.gmra.mxu2 %vm721_vm2, %v5718_v20  ;;  %3947 = vmatmul.msk.f32.gmra.mxu0 %vm721_vm2, %v2399_v56 }
 0x252   : > { %3920 = vmatmul.msk.f32.gmra.mxu3 %vm721_vm2, %v5719_v59  ;;  %v2403_v59 = vld [vmem:[#allocation2 + $0x120] sm:$0xff] }
 0x254   : > { %v2000_v60 = vpop.f32.mrf.mxu2 }
 0x255   : > { %v2275_v11 = vpop.f32.mrf.mxu3  ;;  %v1722_v14 = vpop.f32.mrf.mxu1 }
 0x256   : > { %v5041_v27 = vadd.f32 %v2275_v11, %v2079_v32  ;;  %v1802_v50 = vadd.f32 %v1722_v14, %v5720_v30  ;;  %v5735_v32 = vld [vmem:[#allocation37_spill] sm:$0xff]  ;;  %v5736_v11 = vld [vmem:[#allocation34_spill] sm:$0xff]  ;;  %v5737_v30 = vld [vmem:[#allocation36_spill] sm:$0xff] }
 0x258   : > { %3853 = vmatmul.msk.f32.gmra.mxu1 %vm721_vm2, %v5721_v63  ;;  %v5048_v10 = vadd.f32 %v2000_v60, %v1802_v50  ;;  %v5738_v63 = vld [vmem:[#allocation41_spill] sm:$0xff] }
 0x259   : > { %3888 = vmatmul.msk.f32.gmra.mxu2 %vm721_vm2, %v5722_v54  ;;  %3948 = vmatmul.msk.f32.gmra.mxu0 %vm721_vm2, %v2400_v22  ;;  %v2404_v54 = vld [vmem:[#allocation2 + $0x128] sm:$0xff] }
 0x25a   : > { %3921 = vmatmul.msk.f32.gmra.mxu3 %vm721_vm2, %v5723_v45 }
 0x25c   : > { %v2003_v48 = vpop.f32.mrf.mxu2 }
 0x25d   : > { %v1725_v35 = vpop.f32.mrf.mxu1 }
 0x25e   : > { %v1803_v23 = vadd.f32 %v1725_v35, %v5724_v62  ;;  %v5094_v62 = vld [vmem:[#allocation2 + $0x181] sm:$0xff] }
 0x260   : > { %3854 = vmatmul.msk.f32.gmra.mxu1 %vm721_vm2, %v5725_v42  ;;  %v5058_v1 = vadd.f32 %v2003_v48, %v1803_v23  ;;  %v5739_v48 = vld [vmem:[#allocation38_spill] sm:$0xff]  ;;  %v5740_v23 = vld [vmem:[#allocation40_spill] sm:$0xff] }
 0x261   : > { %3889 = vmatmul.msk.f32.gmra.mxu2 %vm721_vm2, %v5726_v33  ;;  %3949 = vmatmul.msk.f32.gmra.mxu0 %vm721_vm2, %v2401_v24  ;;  %v2405_v42 = vld [vmem:[#allocation2 + $0x138] sm:$0xff] }
 0x262   : > { %3922 = vmatmul.msk.f32.gmra.mxu3 %vm721_vm2, %v5727_v6  ;;  %v5105_v6 = vpop.f32.mrf.mxu0 }
 0x264   : > { %v2006_v58 = vpop.f32.mrf.mxu2 }
 0x265   : > { %v1728_v21 = vpop.f32.mrf.mxu1 }
 0x266   : > { %v1804_v26 = vadd.f32 %v1728_v21, %v5728_v61  ;;  %v1578_v21 = vld [vmem:[#allocation2 + $0x180] sm:$0xff]  ;;  %v5108_v61 = vld [vmem:[#allocation2 + $0x189] sm:$0xff] }
 0x268   : > { %3855 = vmatmul.msk.f32.gmra.mxu1 %vm721_vm2, %v5729_v15  ;;  %v5068_v16 = vadd.f32 %v2006_v58, %v1804_v26  ;;  %v5113_v26 = vld [vmem:[#allocation2 + $0x182] sm:$0xff] }
 0x269   : > { %3890 = vmatmul.msk.f32.gmra.mxu2 %vm721_vm2, %v5730_v46  ;;  %3950 = vmatmul.msk.f32.gmra.mxu0 %vm721_vm2, %v2402_v7  ;;  %v2406_v15 = vld [vmem:[#allocation2 + $0x140] sm:$0xff] }
 0x26a   : > { %3923 = vmatmul.msk.f32.gmra.mxu3 %vm721_vm2, %v5731_v2  ;;  %v5121_v7 = vpop.f32.mrf.mxu0 }
 0x26c   : > { %v2009_v18 = vpop.f32.mrf.mxu2 }
 0x26d   : > { %v1731_v12 = vpop.f32.mrf.mxu1 }
 0x26e   : > { %v1805_v39 = vadd.f32 %v1731_v12, %v5732_v0  ;;  %v5124_v12 = vld [vmem:[#allocation2 + $0x18a] sm:$0xff] }
 0x270   : > { %3856 = vmatmul.msk.f32.gmra.mxu1 %vm721_vm2, %v5733_v41  ;;  %v5078_v20 = vadd.f32 %v2009_v18, %v1805_v39  ;;  %v1579_v18 = vld [vmem:[#allocation2 + $0x188] sm:$0xff]  ;;  %v2407_v39 = vld [vmem:[#allocation2 + $0x150] sm:$0xff] }
 0x271   : > { %3891 = vmatmul.msk.f32.gmra.mxu2 %vm721_vm2, %v5734_v29  ;;  %3951 = vmatmul.msk.f32.gmra.mxu0 %vm721_vm2, %v2403_v59  ;;  %v5741_v59 = vld [vmem:[#allocation44_spill] sm:$0xff] }
 0x272   : > { %3924 = vmatmul.msk.f32.gmra.mxu3 %vm721_vm2, %v5735_v32  ;;  %v2661_v32 = vld [vmem:[#allocation2 + $0x31] sm:$0xff] }
 0x274   : > { %v2012_v56 = vpop.f32.mrf.mxu2 }
 0x275   : > { %v1734_v60 = vpop.f32.mrf.mxu1 }
 0x276   : > { %v1806_v14 = vadd.f32 %v1734_v60, %v5736_v11  ;;  %v2408_v60 = vld [vmem:[#allocation2 + $0x158] sm:$0xff] }
 0x278   : > { %3857 = vmatmul.msk.f32.gmra.mxu1 %vm721_vm2, %v5737_v30  ;;  %v5088_v50 = vadd.f32 %v2012_v56, %v1806_v14  ;;  %v5742_v30 = vld [vmem:[#allocation42_spill] sm:$0xff] }
 0x279   : > { %3892 = vmatmul.msk.f32.gmra.mxu2 %vm721_vm2, %v4742_v49  ;;  %3952 = vmatmul.msk.f32.gmra.mxu0 %vm721_vm2, %v2404_v54  ;;  %v2662_v54 = vld [vmem:[#allocation2 + $0x39] sm:$0xff] }
 0x27a   : > { %3925 = vmatmul.msk.f32.gmra.mxu3 %vm721_vm2, %v5738_v63 }
 0x27c   : > { %v2015_v45 = vpop.f32.mrf.mxu2 }
 0x27d   : > { %v1737_v22 = vpop.f32.mrf.mxu1 }
 0x27e   : > { %v1807_v35 = vadd.f32 %v1737_v22, %v5739_v48 }
 0x280   : > { %3858 = vmatmul.msk.f32.gmra.mxu1 %vm721_vm2, %v5740_v23  ;;  %v5100_v49 = vadd.f32 %v2015_v45, %v1807_v35  ;;  %v2409_v45 = vld [vmem:[#allocation2 + $0x168] sm:$0xff]  ;;  %v5743_v23 = vld [vmem:[#allocation43_spill] sm:$0xff] }
 0x281   : > { %3893 = vmatmul.msk.f32.gmra.mxu2 %vm721_vm2, %v5094_v62  ;;  %3953 = vmatmul.msk.f32.gmra.mxu0 %vm721_vm2, %v2405_v42 }
 0x282   : > { %3926 = vmatmul.msk.f32.gmra.mxu3 %vm721_vm2, %v4749_v28 }
 0x284   : > { %v2018_v33 = vpop.f32.mrf.mxu2 }
 0x285   : > { %v1740_v24 = vpop.f32.mrf.mxu1 }
 0x286   : > { %v1808_v58 = vadd.f32 %v1740_v24, %v4738_v4 }
 0x288   : > { %3859 = vmatmul.msk.f32.gmra.mxu1 %vm721_vm2, %v1578_v21  ;;  %v5115_v28 = vadd.f32 %v2018_v33, %v1808_v58  ;;  %v2663_v33 = vld [vmem:[#allocation2 + $0x49] sm:$0xff] }
 0x289   : > { %3894 = vmatmul.msk.f32.gmra.mxu2 %vm721_vm2, %v5108_v61  ;;  %3954 = vmatmul.msk.f32.gmra.mxu0 %vm721_vm2, %v2406_v15 }
 0x28a   : > { %3927 = vmatmul.msk.f32.gmra.mxu3 %vm721_vm2, %v5113_v26 }
 0x28c   : > { %v2021_v46 = vpop.f32.mrf.mxu2 }
 0x28d   : > { %v1743_v4 = vpop.f32.mrf.mxu1 }
 0x28e   : > { %v1809_v2 = vadd.f32 %v1743_v4, %v4757_v5  ;;  %v5744_v4 = vld [vmem:[#allocation45_spill] sm:$0xff] }
 0x290   : > { %3860 = vmatmul.msk.f32.gmra.mxu1 %vm721_vm2, %v1579_v18  ;;  %v5128_v0 = vadd.f32 %v2021_v46, %v1809_v2 }
 0x291   : > { %3999 = vmatmul.msk.f32.vlgmr.msra.gmra.mxu2 %vm721_vm2, %v4785_v38  ;;  %3955 = vmatmul.msk.f32.gmra.mxu0 %vm721_vm2, %v2407_v39  ;;  %v5139_v38 = vpop.f32.mrf.mxu0  ;;  %v2664_v39 = vld [vmem:[#allocation2 + $0x51] sm:$0xff] }
 0x292   : > { %3928 = vmatmul.msk.f32.gmra.mxu3 %vm721_vm2, %v5124_v12 }
 0x294   : > { %v2024_v41 = vpop.f32.mrf.mxu2 }
 0x295   : > { %v1746_v5 = vpop.f32.mrf.mxu1 }
 0x296   : > { %v1810_v29 = vadd.f32 %v1746_v5, %v4767_v37 }
 0x298   : > { %3965 = vmatmul.msk.f32.vlgmr.msra.gmra.mxu1 %vm721_vm2, %v2661_v32  ;;  %v5137_v56 = vadd.f32 %v2024_v41, %v1810_v29  ;;  %v2943_v41 = vld [vmem:[#allocation2 + $0x62] sm:$0xff] }
 0x299   : > { %4000 = vmatmul.msk.f32.gmra.mxu2 %vm721_vm2, %v5741_v59  ;;  %3956 = vmatmul.msk.f32.gmra.mxu0 %vm721_vm2, %v2408_v60  ;;  %v5148_v22 = vpop.f32.mrf.mxu0  ;;  %v5745_v59 = vld [vmem:[#allocation46_spill] sm:$0xff] }
 0x29c   : > { %v2027_v11 = vpop.f32.mrf.mxu2 }
 0x29d   : > { %v1749_v14 = vpop.f32.mrf.mxu1 }
 0x29e   : > { %v1811_v63 = vadd.f32 %v1749_v14, %v5742_v30  ;;  %v2665_v14 = vld [vmem:[#allocation2 + $0x61] sm:$0xff]  ;;  %v2944_v30 = vld [vmem:[#allocation2 + $0x6a] sm:$0xff] }
 0x2a0   : > { %3966 = vmatmul.msk.f32.gmra.mxu1 %vm721_vm2, %v2662_v54  ;;  %v5146_v37 = vadd.f32 %v2027_v11, %v1811_v63 }
 0x2a1   : > { %4001 = vmatmul.msk.f32.gmra.mxu2 %vm721_vm2, %v4816_v53  ;;  %3957 = vmatmul.msk.f32.gmra.mxu0 %vm721_vm2, %v2409_v45  ;;  %v2410_v53 = vld [vmem:[#allocation2 + $0x170] sm:$0xff]  ;;  %v5158_v15 = vpop.f32.mrf.mxu0 }
 0x2a4   : > { %v2030_v48 = vpop.f32.mrf.mxu2 }
 0x2a5   : > { %v1752_v35 = vpop.f32.mrf.mxu1 }
 0x2a6   : > { %v1812_v42 = vadd.f32 %v1752_v35, %v5743_v23  ;;  %v2666_v23 = vld [vmem:[#allocation2 + $0x69] sm:$0xff] }
 0x2a8   : > { %3967 = vmatmul.msk.f32.gmra.mxu1 %vm721_vm2, %v2663_v33  ;;  %v5155_v24 = vadd.f32 %v2030_v48, %v1812_v42  ;;  %v2945_v42 = vld [vmem:[#allocation2 + $0x7a] sm:$0xff] }
 0x2a9   : > { %4002 = vmatmul.msk.f32.gmra.mxu2 %vm721_vm2, %v4830_v57  ;;  %3958 = vmatmul.msk.f32.gmra.mxu0 %vm721_vm2, %v2410_v53  ;;  %v5165_v57 = vpop.f32.mrf.mxu3  ;;  %v5169_v11 = vpop.f32.mrf.mxu0  ;;  %v2413_v53 = vld [vmem:[#allocation2 + $0x198] sm:$0xff] }
 0x2ac   : > { %v2033_v58 = vpop.f32.mrf.mxu2 }
 0x2ad   : > { %v1755_v46 = vpop.f32.mrf.mxu1 }
 0x2ae   : > { %v1813_v2 = vadd.f32 %v1755_v46, %v5744_v4 }
 0x2b0   : > { %3968 = vmatmul.msk.f32.gmra.mxu1 %vm721_vm2, %v2664_v39  ;;  %v5163_v5 = vadd.f32 %v2033_v58, %v1813_v2  ;;  %v2667_v39 = vld [vmem:[#allocation2 + $0x79] sm:$0xff] }
 0x2b1   : > { %4003 = vmatmul.msk.f32.gmra.mxu2 %vm721_vm2, %v2943_v41  ;;  %3959 = vmatmul.msk.f32.gmra.mxu0 %vm721_vm2, %v1578_v21  ;;  %v5176_v45 = vpop.f32.mrf.mxu3  ;;  %v5746_v21 = vld [vmem:[#allocation47_spill] sm:$0xff]  ;;  %v5183_v58 = vpop.f32.mrf.mxu0  ;;  %v2946_v41 = vld [vmem:[#allocation2 + $0x82] sm:$0xff] }
 0x2b4   : > { %v2036_v29 = vpop.f32.mrf.mxu2 }
 0x2b5   : > { %v1758_v32 = vpop.f32.mrf.mxu1 }
 0x2b6   : > { %v1814_v60 = vadd.f32 %v1758_v32, %v5745_v59  ;;  %v2414_v32 = vld [vmem:[#allocation2 + $0x1a0] sm:$0xff] }
 0x2b8   : > { %3969 = vmatmul.msk.f32.gmra.mxu1 %vm721_vm2, %v2665_v14  ;;  %v5173_v63 = vadd.f32 %v2036_v29, %v1814_v60 }
 0x2b9   : > { %4004 = vmatmul.msk.f32.gmra.mxu2 %vm721_vm2, %v2944_v30  ;;  %3960 = vmatmul.msk.f32.gmra.mxu0 %vm721_vm2, %v1579_v18  ;;  %v5187_v2 = vpop.f32.mrf.mxu3  ;;  %v5193_v59 = vpop.f32.mrf.mxu0 }
 0x2bc   : > { %v2039_v54 = vpop.f32.mrf.mxu2 }
 0x2bd   : > { %v1761_v48 = vpop.f32.mrf.mxu1 }
 0x2be   : > { %v1815_v35 = vadd.f32 %v1761_v48, %v5746_v21 }
 0x2c0   : > { %3970 = vmatmul.msk.f32.gmra.mxu1 %vm721_vm2, %v2666_v23  ;;  %v5181_v33 = vadd.f32 %v2039_v54, %v1815_v35  ;;  %v2947_v54 = vld [vmem:[#allocation2 + $0x92] sm:$0xff] }
 0x2c1   : > { %4005 = vmatmul.msk.f32.gmra.mxu2 %vm721_vm2, %v2945_v42  ;;  %3961 = vmatmul.msk.f32.gmra.mxu0 %vm721_vm2, %v2413_v53  ;;  %v5201_v21 = vpop.f32.mrf.mxu3  ;;  %v2669_v53 = vld [vmem:[#allocation2 + $0x91] sm:$0xff] }
 0x2c4   : > { %v2042_v46 = vpop.f32.mrf.mxu2 }
 0x2c5   : > { %v1764_v18 = vpop.f32.mrf.mxu1 }
 0x2c6   : > { %v1816_v4 = vadd.f32 %v1764_v18, %v4848_v55  ;;  %v2668_v55 = vld [vmem:[#allocation2 + $0x81] sm:$0xff] }
 0x2c8   : > { %3971 = vmatmul.msk.f32.gmra.mxu1 %vm721_vm2, %v2667_v39  ;;  %v5191_v29 = vadd.f32 %v2042_v46, %v1816_v4  ;;  %v2948_v46 = vld [vmem:[#allocation2 + $0x9a] sm:$0xff] }
 0x2c9   : > { %4006 = vmatmul.msk.f32.gmra.mxu2 %vm721_vm2, %v2946_v41  ;;  %3962 = vmatmul.msk.f32.gmra.mxu0 %vm721_vm2, %v2414_v32  ;;  %v5208_v18 = vpop.f32.mrf.mxu3  ;;  %v2670_v32 = vld [vmem:[#allocation2 + $0x99] sm:$0xff] }
 0x2cc   : > { %v2045_v60 = vpop.f32.mrf.mxu2 }
 0x2cd   : > { %v1767_v14 = vpop.f32.mrf.mxu1 }
 0x2ce   : > { %v1817_v30 = vadd.f32 %v1767_v14, %v4860_v13 }
 0x2d0   : > { %3972 = vmatmul.msk.f32.gmra.mxu1 %vm721_vm2, %v2668_v55  ;;  %v5199_v48 = vadd.f32 %v2045_v60, %v1817_v30  ;;  %v2949_v60 = vld [vmem:[#allocation2 + $0xaa] sm:$0xff] }
 0x2d1   : > { %4007 = vmatmul.msk.f32.gmra.mxu2 %vm721_vm2, %v2947_v54  ;;  %v5215_v30 = vpop.f32.mrf.mxu3 }
 0x2d4   : > { %v2048_v35 = vpop.f32.mrf.mxu2 }
 0x2d5   : > { %v1770_v23 = vpop.f32.mrf.mxu1 }
 0x2d6   : > { %v1818_v42 = vadd.f32 %v1770_v23, %v4872_v43  ;;  %v2950_v23 = vld [vmem:[#allocation2 + $0xb2] sm:$0xff] }
 0x2d8   : > { %3973 = vmatmul.msk.f32.gmra.mxu1 %vm721_vm2, %v2669_v53  ;;  %v5206_v13 = vadd.f32 %v2048_v35, %v1818_v42  ;;  %v2671_v35 = vld [vmem:[#allocation2 + $0xa9] sm:$0xff] }
 0x2d9   : > { %4008 = vmatmul.msk.f32.gmra.mxu2 %vm721_vm2, %v2948_v46 }
 0x2dc   : > { %v2051_v4 = vpop.f32.mrf.mxu2 }
 0x2dd   : > { %v1773_v39 = vpop.f32.mrf.mxu1 }
 0x2de   : > { %v1819_v41 = vadd.f32 %v1773_v39, %v4884_v44  ;;  %v2672_v39 = vld [vmem:[#allocation2 + $0xb1] sm:$0xff] }
 0x2e0   : > { %3974 = vmatmul.msk.f32.gmra.mxu1 %vm721_vm2, %v2670_v32  ;;  %v5213_v43 = vadd.f32 %v2051_v4, %v1819_v41  ;;  %v5223_v4 = vpop.f32.mrf.mxu3  ;;  %v2951_v41 = vld [vmem:[#allocation2 + $0xc2] sm:$0xff] }
 0x2e1   : > { %4009 = vmatmul.msk.f32.gmra.mxu2 %vm721_vm2, %v2949_v60 }
 0x2e4   : > { %v2054_v14 = vpop.f32.mrf.mxu2 }
 0x2e5   : > { %v1776_v55 = vpop.f32.mrf.mxu1 }
 0x2e6   : > { %v1820_v54 = vadd.f32 %v1776_v55, %v4896_v52 }
 0x2e8   : > { %3975 = vmatmul.msk.f32.gmra.mxu1 %vm721_vm2, %v2671_v35  ;;  %v5220_v44 = vadd.f32 %v2054_v14, %v1820_v54  ;;  %v2673_v14 = vld [vmem:[#allocation2 + $0xc1] sm:$0xff]  ;;  %v2952_v54 = vld [vmem:[#allocation2 + $0xca] sm:$0xff]  ;;  %v5234_v35 = vpop.f32.mrf.mxu3 }
 0x2e9   : > { %4010 = vmatmul.msk.f32.gmra.mxu2 %vm721_vm2, %v2950_v23 }
 0x2ec   : > { %v2057_v42 = vpop.f32.mrf.mxu2 }
 0x2ed   : > { %v1779_v53 = vpop.f32.mrf.mxu1 }
 0x2ee   : > { %v1821_v46 = vadd.f32 %v1779_v53, %v4907_v25 }
 0x2f0   : > { %3976 = vmatmul.msk.f32.gmra.mxu1 %vm721_vm2, %v2672_v39  ;;  %v5227_v52 = vadd.f32 %v2057_v42, %v1821_v46  ;;  %v2674_v42 = vld [vmem:[#allocation2 + $0xc9] sm:$0xff]  ;;  %v2953_v46 = vld [vmem:[#allocation2 + $0xda] sm:$0xff] }
 0x2f1   : > { %4011 = vmatmul.msk.f32.gmra.mxu2 %vm721_vm2, %v2951_v41  ;;  %v5241_v41 = vpop.f32.mrf.mxu3 }
 0x2f4   : > { %v2060_v32 = vpop.f32.mrf.mxu2 }
 0x2f5   : > { %v1782_v60 = vpop.f32.mrf.mxu1 }
 0x2f6   : > { %v1822_v55 = vadd.f32 %v1782_v60, %v4918_v3 }
 0x2f8   : > { %3977 = vmatmul.msk.f32.gmra.mxu1 %vm721_vm2, %v2673_v14  ;;  %v5232_v25 = vadd.f32 %v2060_v32, %v1822_v55  ;;  %v2675_v55 = vld [vmem:[#allocation2 + $0xd9] sm:$0xff] }
 0x2f9   : > { %4012 = vmatmul.msk.f32.gmra.mxu2 %vm721_vm2, %v2952_v54  ;;  %v2954_v54 = vld [vmem:[#allocation2 + $0xe2] sm:$0xff] }
 0x2fa   : > { %5747 = vst [vmem:[#allocation3_spill] sm:$0xff] %v5232_v25 }
 0x2fc   : > { %v2063_v23 = vpop.f32.mrf.mxu2 }
 0x2fd   : > { %v1785_v53 = vpop.f32.mrf.mxu1 }
 0x2fe   : > { %v1823_v39 = vadd.f32 %v1785_v53, %v4933_v40 }
 0x300   : > { %3978 = vmatmul.msk.f32.gmra.mxu1 %vm721_vm2, %v2674_v42  ;;  %v5239_v3 = vadd.f32 %v2063_v23, %v1823_v39  ;;  %v5248_v42 = vpop.f32.mrf.mxu3  ;;  %v2676_v39 = vld [vmem:[#allocation2 + $0xe1] sm:$0xff] }
 0x301   : > { %4013 = vmatmul.msk.f32.gmra.mxu2 %vm721_vm2, %v2953_v46 }
 0x302   : > { %5748 = vst [vmem:[#allocation6_spill] sm:$0xff] %v5239_v3  ;;  %v2955_v3 = vld [vmem:[#allocation2 + $0xf2] sm:$0xff] }
 0x304   : > { %v2066_v60 = vpop.f32.mrf.mxu2 }
 0x305   : > { %v1788_v14 = vpop.f32.mrf.mxu1 }
 0x306   : > { %v1824_v32 = vadd.f32 %v1788_v14, %v4944_v51 }
 0x308   : > { %3979 = vmatmul.msk.f32.gmra.mxu1 %vm721_vm2, %v2675_v55  ;;  %v5246_v40 = vadd.f32 %v2066_v60, %v1824_v32  ;;  %v2629_v55 = vadd.f32 %v5105_v6, %v4966_v19  ;;  %v2630_v19 = vadd.f32 %v5121_v7, %v4977_v17  ;;  %v2631_v17 = vadd.f32 %v5139_v38, %v4988_v47 }
 0x309   : > { %4014 = vmatmul.msk.f32.gmra.mxu2 %vm721_vm2, %v2954_v54  ;;  %v5260_v54 = vld [vmem:[%s5619_s4] ss:$0 sm:$0xff]  ;;  %v2632_v47 = vadd.f32 %v5148_v22, %v4999_v31  ;;  %v2633_v31 = vadd.f32 %v5158_v15, %v5010_v36  ;;  %v2634_v36 = vadd.f32 %v5169_v11, %v5021_v34  ;;  %v2635_v34 = vadd.f32 %v5183_v58, %v5032_v8 }
 0x30a   : > { %5749 = vst [vmem:[#allocation5_spill] sm:$0xff] %v5246_v40  ;;  %v2956_v40 = vld [vmem:[#allocation2 + $0xfa] sm:$0xff]  ;;  %v2636_v8 = vadd.f32 %v5193_v59, %v5041_v27 }
 0x30c   : > { %v2069_v53 = vpop.f32.mrf.mxu2 }
 0x30d   : > { %v1791_v46 = vpop.f32.mrf.mxu1 }
 0x30e   : > { %v1825_v23 = vadd.f32 %v1791_v46, %v4955_v9  ;;  %v5262_v9 = vpop.f32.mrf.mxu3  ;;  %v2677_v46 = vld [vmem:[#allocation2 + $0xf1] sm:$0xff] }
 0x310   : > { %3980 = vmatmul.msk.f32.gmra.mxu1 %vm721_vm2, %v2676_v39  ;;  %v5253_v51 = vadd.f32 %v2069_v53, %v1825_v23 }
 0x311   : > { %4015 = vmatmul.msk.f32.gmra.mxu2 %vm721_vm2, %v2955_v3 }
 0x312   : > { %5750 = vst [vmem:[#allocation4_spill] sm:$0xff] %v5253_v51  ;;  %v2957_v51 = vld [vmem:[#allocation2 + $0x10a] sm:$0xff] }
 0x314   : > { %v3089_v14 = vpop.f32.mrf.mxu2 }
 0x315   : > { %v2811_v60 = vpop.f32.mrf.mxu1 }
 0x316   : > { %v2907_v32 = vadd.f32 %v2811_v60, %v2629_v55  ;;  %v2678_v60 = vld [vmem:[#allocation2 + $0xf9] sm:$0xff] }
 0x318   : > { %v3185_v39 = vadd.f32 %v3089_v14, %v2907_v32  ;;  %3981 = vmatmul.msk.f32.gmra.mxu1 %vm721_vm2, %v2677_v46  ;;  %v5272_v14 = vpop.f32.mrf.mxu3  ;;  %v5275_v32 = vpop.f32.mrf.mxu0 }
 0x319   : > { %4016 = vmatmul.msk.f32.gmra.mxu2 %vm721_vm2, %v2956_v40 }
 0x31a   : > { %v3221_v3 = vadd.f32 %v5260_v54, %v3185_v39 }
 0x31c   : > { %v3092_v53 = vpop.f32.mrf.mxu2  ;;  %v3253_v6 = vmax.f32 %v3221_v3, 0.0 }
 0x31d   : > { %v2814_v23 = vpop.f32.mrf.mxu1 }
 0x31e   : > { %v2908_v55 = vadd.f32 %v2814_v23, %v2630_v19  ;;  %4032 = vmatmul.msk.f32.vlgmr.msra.gmra.mxu3 %vm721_vm2, %v3253_v6  ;;  %v2958_v19 = vld [vmem:[#allocation2 + $0x112] sm:$0xff] }
 0x320   : > { %v3186_v25 = vadd.f32 %v3092_v53, %v2908_v55  ;;  %3982 = vmatmul.msk.f32.gmra.mxu1 %vm721_vm2, %v2678_v60  ;;  %v2679_v53 = vld [vmem:[#allocation2 + $0x109] sm:$0xff]  ;;  %v5287_v55 = vpop.f32.mrf.mxu0 }
 0x321   : > { %4017 = vmatmul.msk.f32.gmra.mxu2 %vm721_vm2, %v2957_v51  ;;  %v5283_v51 = vpop.f32.mrf.mxu3 }
 0x322   : > { %v3222_v40 = vadd.f32 %v5260_v54, %v3186_v25 }
 0x324   : > { %v3095_v46 = vpop.f32.mrf.mxu2  ;;  %v3254_v7 = vmax.f32 %v3222_v40, 0.0 }
 0x325   : > { %v2817_v39 = vpop.f32.mrf.mxu1 }
 0x326   : > { %v2909_v3 = vadd.f32 %v2817_v39, %v2631_v17  ;;  %4033 = vmatmul.msk.f32.gmra.mxu3 %vm721_vm2, %v3254_v7  ;;  %v2959_v17 = vld [vmem:[#allocation2 + $0x122] sm:$0xff] }
 0x328   : > { %v3187_v6 = vadd.f32 %v3095_v46, %v2909_v3  ;;  %3983 = vmatmul.msk.f32.gmra.mxu1 %vm721_vm2, %v2679_v53  ;;  %v2680_v46 = vld [vmem:[#allocation2 + $0x111] sm:$0xff] }
 0x329   : > { %4018 = vmatmul.msk.f32.gmra.mxu2 %vm721_vm2, %v2958_v19  ;;  %v5295_v53 = vpop.f32.mrf.mxu3 }
 0x32a   : > { %v3223_v25 = vadd.f32 %v5260_v54, %v3187_v6 }
 0x32c   : > { %v3098_v23 = vpop.f32.mrf.mxu2  ;;  %v3255_v38 = vmax.f32 %v3223_v25, 0.0  ;;  %v5298_v25 = vpop.f32.mrf.mxu0 }
 0x32d   : > { %v2820_v60 = vpop.f32.mrf.mxu1 }
 0x32e   : > { %v2910_v40 = vadd.f32 %v2820_v60, %v2632_v47  ;;  %4034 = vmatmul.msk.f32.gmra.mxu3 %vm721_vm2, %v3255_v38  ;;  %v2960_v47 = vld [vmem:[#allocation2 + $0x12a] sm:$0xff] }
 0x330   : > { %v3188_v7 = vadd.f32 %v3098_v23, %v2910_v40  ;;  %3984 = vmatmul.msk.f32.gmra.mxu1 %vm721_vm2, %v2680_v46  ;;  %v2681_v23 = vld [vmem:[#allocation2 + $0x121] sm:$0xff] }
 0x331   : > { %4019 = vmatmul.msk.f32.gmra.mxu2 %vm721_vm2, %v2959_v17 }
 0x332   : > { %v3224_v39 = vadd.f32 %v5260_v54, %v3188_v7  ;;  %v5306_v7 = vpop.f32.mrf.mxu3 }
 0x334   : > { %v3101_v3 = vpop.f32.mrf.mxu2  ;;  %v3256_v22 = vmax.f32 %v3224_v39, 0.0  ;;  %v2682_v39 = vld [vmem:[#allocation2 + $0x129] sm:$0xff] }
 0x335   : > { %v2823_v19 = vpop.f32.mrf.mxu1 }
 0x336   : > { %v2911_v6 = vadd.f32 %v2823_v19, %v2633_v31  ;;  %4035 = vmatmul.msk.f32.gmra.mxu3 %vm721_vm2, %v3256_v22  ;;  %v2961_v31 = vld [vmem:[#allocation2 + $0x13a] sm:$0xff]  ;;  %v5310_v22 = vpop.f32.mrf.mxu0 }
 0x338   : > { %v3189_v38 = vadd.f32 %v3101_v3, %v2911_v6  ;;  %3985 = vmatmul.msk.f32.gmra.mxu1 %vm721_vm2, %v2681_v23 }
 0x339   : > { %4020 = vmatmul.msk.f32.gmra.mxu2 %vm721_vm2, %v2960_v47 }
 0x33a   : > { %v3225_v60 = vadd.f32 %v5260_v54, %v3189_v38  ;;  %v2683_v38 = vld [vmem:[#allocation2 + $0x139] sm:$0xff] }
 0x33c   : > { %v3104_v40 = vpop.f32.mrf.mxu2  ;;  %v3257_v15 = vmax.f32 %v3225_v60, 0.0  ;;  %v2962_v60 = vld [vmem:[#allocation2 + $0x142] sm:$0xff] }
 0x33d   : > { %v2826_v46 = vpop.f32.mrf.mxu1 }
 0x33e   : > { %v2912_v17 = vadd.f32 %v2826_v46, %v2634_v36  ;;  %4036 = vmatmul.msk.f32.gmra.mxu3 %vm721_vm2, %v3257_v15  ;;  %v5318_v36 = vpop.f32.mrf.mxu3  ;;  %v5321_v46 = vpop.f32.mrf.mxu0 }
 0x340   : > { %v3190_v3 = vadd.f32 %v3104_v40, %v2912_v17  ;;  %3986 = vmatmul.msk.f32.gmra.mxu1 %vm721_vm2, %v2682_v39 }
 0x341   : > { %4021 = vmatmul.msk.f32.gmra.mxu2 %vm721_vm2, %v2961_v31 }
 0x342   : > { %v3226_v19 = vadd.f32 %v5260_v54, %v3190_v3  ;;  %v2684_v3 = vld [vmem:[#allocation2 + $0x141] sm:$0xff] }
 0x344   : > { %v3107_v6 = vpop.f32.mrf.mxu2  ;;  %v3258_v11 = vmax.f32 %v3226_v19, 0.0  ;;  %v2963_v19 = vld [vmem:[#allocation2 + $0x152] sm:$0xff] }
 0x345   : > { %v2829_v23 = vpop.f32.mrf.mxu1 }
 0x346   : > { %v2913_v47 = vadd.f32 %v2829_v23, %v2635_v34  ;;  %4037 = vmatmul.msk.f32.gmra.mxu3 %vm721_vm2, %v3258_v11  ;;  %v2358_v34 = vadd.f32 %v5165_v57, %v5048_v10  ;;  %v5331_v23 = vpop.f32.mrf.mxu3  ;;  %v2359_v10 = vadd.f32 %v5176_v45, %v5058_v1  ;;  %v2360_v1 = vadd.f32 %v5187_v2, %v5068_v16 }
 0x347   : > { %v2361_v2 = vadd.f32 %v5201_v21, %v5078_v20  ;;  %v2362_v20 = vadd.f32 %v5208_v18, %v5088_v50  ;;  %v2363_v50 = vadd.f32 %v5215_v30, %v5100_v49  ;;  %v2364_v49 = vadd.f32 %v5223_v4, %v5115_v28 }
 0x348   : > { %v3191_v40 = vadd.f32 %v3107_v6, %v2913_v47  ;;  %3987 = vmatmul.msk.f32.gmra.mxu1 %vm721_vm2, %v2683_v38  ;;  %v2637_v59 = vadd.f32 %v5275_v32, %v2358_v34  ;;  %v5334_v38 = vpop.f32.mrf.mxu0  ;;  %v2686_v34 = vld [vmem:[#allocation2 + $0x159] sm:$0xff]  ;;  %v2365_v28 = vadd.f32 %v5234_v35, %v5128_v0 }
 0x349   : > { %4022 = vmatmul.msk.f32.gmra.mxu2 %vm721_vm2, %v2962_v60 }
 0x34a   : > { %v3227_v15 = vadd.f32 %v5260_v54, %v3191_v40 }
 0x34c   : > { %v3110_v17 = vpop.f32.mrf.mxu2  ;;  %v3259_v58 = vmax.f32 %v3227_v15, 0.0  ;;  %v2685_v15 = vld [vmem:[#allocation2 + $0x151] sm:$0xff] }
 0x34d   : > { %v2832_v39 = vpop.f32.mrf.mxu1 }
 0x34e   : > { %v2914_v31 = vadd.f32 %v2832_v39, %v2636_v8  ;;  %4038 = vmatmul.msk.f32.gmra.mxu3 %vm721_vm2, %v3259_v58  ;;  %v2638_v58 = vadd.f32 %v5287_v55, %v2359_v10 }
 0x350   : > { %v3192_v6 = vadd.f32 %v3110_v17, %v2914_v31  ;;  %3988 = vmatmul.msk.f32.gmra.mxu1 %vm721_vm2, %v2684_v3  ;;  %v2964_v17 = vld [vmem:[#allocation2 + $0x15a] sm:$0xff]  ;;  %v5343_v31 = vpop.f32.mrf.mxu3 }
 0x351   : > { %4023 = vmatmul.msk.f32.gmra.mxu2 %vm721_vm2, %v2963_v19 }
 0x352   : > { %v3228_v11 = vadd.f32 %v5260_v54, %v3192_v6  ;;  %v5346_v6 = vpop.f32.mrf.mxu0 }
 0x354   : > { %v3113_v27 = vpop.f32.mrf.mxu2  ;;  %v3260_v47 = vmax.f32 %v3228_v11, 0.0  ;;  %v2965_v11 = vld [vmem:[#allocation2 + $0x16a] sm:$0xff] }
 0x355   : > { %v2835_v60 = vpop.f32.mrf.mxu1 }
 0x356   : > { %v2915_v40 = vadd.f32 %v2835_v60, %v2637_v59  ;;  %4039 = vmatmul.msk.f32.gmra.mxu3 %vm721_vm2, %v3260_v47  ;;  %v2639_v59 = vadd.f32 %v5298_v25, %v2360_v1  ;;  %v2641_v1 = vadd.f32 %v5321_v46, %v2362_v20 }
 0x358   : > { %v3193_v8 = vadd.f32 %v3113_v27, %v2915_v40  ;;  %3989 = vmatmul.msk.f32.gmra.mxu1 %vm721_vm2, %v2685_v15  ;;  %v5355_v15 = vpop.f32.mrf.mxu3 }
 0x359   : > { %4024 = vmatmul.msk.f32.gmra.mxu2 %vm721_vm2, %v2964_v17  ;;  %v2687_v17 = vld [vmem:[#allocation2 + $0x169] sm:$0xff] }
 0x35a   : > { %v3229_v57 = vadd.f32 %v5260_v54, %v3193_v8  ;;  %v2966_v8 = vld [vmem:[#allocation2 + $0x172] sm:$0xff]  ;;  %v2578_v16 = vpop.f32.mrf.mxu0 }
 0x35c   : > { %v3116_v32 = vpop.f32.mrf.mxu2  ;;  %v3261_v39 = vmax.f32 %v3229_v57, 0.0 }
 0x35d   : > { %v2838_v3 = vpop.f32.mrf.mxu1 }
 0x35e   : > { %v2916_v19 = vadd.f32 %v2838_v3, %v2638_v58  ;;  %4040 = vmatmul.msk.f32.gmra.mxu3 %vm721_vm2, %v3261_v39 }
 0x360   : > { %v3194_v27 = vadd.f32 %v3116_v32, %v2916_v19  ;;  %3990 = vmatmul.msk.f32.gmra.mxu1 %vm721_vm2, %v2686_v34  ;;  %v2640_v32 = vadd.f32 %v5310_v22, %v2361_v2  ;;  %v2688_v19 = vld [vmem:[#allocation2 + $0x171] sm:$0xff] }
 0x361   : > { %4025 = vmatmul.msk.f32.gmra.mxu2 %vm721_vm2, %v2965_v11  ;;  %v5367_v11 = vpop.f32.mrf.mxu3 }
 0x362   : > { %v3230_v45 = vadd.f32 %v5260_v54, %v3194_v27  ;;  %v2581_v22 = vpop.f32.mrf.mxu0 }
 0x364   : > { %v3119_v55 = vpop.f32.mrf.mxu2  ;;  %v3262_v47 = vmax.f32 %v3230_v45, 0.0 }
 0x365   : > { %v2841_v60 = vpop.f32.mrf.mxu1 }
 0x366   : > { %v2917_v40 = vadd.f32 %v2841_v60, %v2639_v59  ;;  %4041 = vmatmul.msk.f32.gmra.mxu3 %vm721_vm2, %v3262_v47  ;;  %v2642_v60 = vadd.f32 %v5334_v38, %v2363_v50  ;;  %v2643_v38 = vadd.f32 %v5346_v6, %v2364_v49 }
 0x368   : > { %v3195_v10 = vadd.f32 %v3119_v55, %v2917_v40  ;;  %3991 = vmatmul.msk.f32.gmra.mxu1 %vm721_vm2, %v2687_v17 }
 0x369   : > { %4026 = vmatmul.msk.f32.gmra.mxu2 %vm721_vm2, %v2966_v8  ;;  %v5381_v18 = vpop.f32.mrf.mxu3 }
 0x36a   : > { %v3231_v25 = vadd.f32 %v5260_v54, %v3195_v10  ;;  %v2584_v17 = vpop.f32.mrf.mxu0  ;;  %v2969_v10 = vld [vmem:[#allocation2 + $0x19a] sm:$0xff] }
 0x36c   : > { %v3122_v57 = vpop.f32.mrf.mxu2  ;;  %v3263_v58 = vmax.f32 %v3231_v25, 0.0 }
 0x36d   : > { %v2844_v39 = vpop.f32.mrf.mxu1 }
 0x36e   : > { %v2918_v3 = vadd.f32 %v2844_v39, %v2640_v32  ;;  %4042 = vmatmul.msk.f32.gmra.mxu3 %vm721_vm2, %v3263_v58  ;;  %v2691_v58 = vld [vmem:[#allocation2 + $0x199] sm:$0xff]  ;;  %v2970_v39 = vld [vmem:[#allocation2 + $0x1a2] sm:$0xff] }
 0x370   : > { %v3196_v34 = vadd.f32 %v3122_v57, %v2918_v3  ;;  %3992 = vmatmul.msk.f32.gmra.mxu1 %vm721_vm2, %v2688_v19 }
 0x371   : > { %4027 = vmatmul.msk.f32.gmra.mxu2 %vm721_vm2, %v5113_v26  ;;  %v5392_v57 = vpop.f32.mrf.mxu3 }
 0x372   : > { %v3232_v21 = vadd.f32 %v5260_v54, %v3196_v34  ;;  %v2644_v34 = vadd.f32 %v2578_v16, %v2365_v28 }
 0x374   : > { %v3125_v27 = vpop.f32.mrf.mxu2  ;;  %v3264_v45 = vmax.f32 %v3232_v21, 0.0 }
 0x375   : > { %v2847_v55 = vpop.f32.mrf.mxu1 }
 0x376   : > { %v2919_v59 = vadd.f32 %v2847_v55, %v2641_v1  ;;  %4043 = vmatmul.msk.f32.gmra.mxu3 %vm721_vm2, %v3264_v45 }
 0x378   : > { %v3197_v47 = vadd.f32 %v3125_v27, %v2919_v59  ;;  %3993 = vmatmul.msk.f32.gmra.mxu1 %vm721_vm2, %v5094_v62  ;;  %v2692_v27 = vld [vmem:[#allocation2 + $0x1a1] sm:$0xff] }
 0x379   : > { %4028 = vmatmul.msk.f32.gmra.mxu2 %vm721_vm2, %v5124_v12  ;;  %v5401_v45 = vpop.f32.mrf.mxu3 }
 0x37a   : > { %v3233_v26 = vadd.f32 %v5260_v54, %v3197_v47  ;;  %v2366_v47 = vadd.f32 %v5241_v41, %v5137_v56 }
 0x37c   : > { %v3128_v46 = vpop.f32.mrf.mxu2  ;;  %v3265_v40 = vmax.f32 %v3233_v26, 0.0  ;;  %v2645_v50 = vadd.f32 %v2581_v22, %v2366_v47 }
 0x37d   : > { %v2850_v8 = vpop.f32.mrf.mxu1 }
 0x37e   : > { %v2920_v2 = vadd.f32 %v2850_v8, %v2642_v60  ;;  %4044 = vmatmul.msk.f32.gmra.mxu3 %vm721_vm2, %v3265_v40  ;;  %v2367_v8 = vadd.f32 %v5248_v42, %v5146_v37  ;;  %v2368_v37 = vadd.f32 %v5262_v9, %v5155_v24 }
 0x380   : > { %v3198_v62 = vadd.f32 %v3128_v46, %v2920_v2  ;;  %3994 = vmatmul.msk.f32.gmra.mxu1 %vm721_vm2, %v5108_v61  ;;  %v2587_v61 = vpop.f32.mrf.mxu0  ;;  %v2646_v41 = vadd.f32 %v2584_v17, %v2367_v8 }
 0x381   : > { %4029 = vmatmul.msk.f32.gmra.mxu2 %vm721_vm2, %v2969_v10  ;;  %v5408_v40 = vpop.f32.mrf.mxu3 }
 0x382   : > { %v3234_v12 = vadd.f32 %v5260_v54, %v3198_v62 }
 0x384   : > { %v3131_v30 = vpop.f32.mrf.mxu2  ;;  %v3266_v25 = vmax.f32 %v3234_v12, 0.0  ;;  %v5417_v12 = vld [vmem:[%s5621_s6] ss:$0 sm:$0xff] }
 0x385   : > { %v2853_v32 = vpop.f32.mrf.mxu1 }
 0x386   : > { %v2921_v3 = vadd.f32 %v2853_v32, %v2643_v38  ;;  %4045 = vmatmul.msk.f32.gmra.mxu3 %vm721_vm2, %v3266_v25  ;;  %v3502_v25 = vld [vmem:[%s4154_s10] sm:$0xff] }
 0x388   : > { %v3199_v19 = vadd.f32 %v3131_v30, %v2921_v3  ;;  %3995 = vmatmul.msk.f32.gmra.mxu1 %vm721_vm2, %v2691_v58  ;;  %v2590_v59 = vpop.f32.mrf.mxu0  ;;  %v2647_v58 = vadd.f32 %v2587_v61, %v2368_v37 }
 0x389   : > { %4030 = vmatmul.msk.f32.gmra.mxu2 %vm721_vm2, %v2970_v39 }
 0x38a   : > { %v3235_v4 = vadd.f32 %v5260_v54, %v3199_v19 }
 0x38c   : > { %v3134_v6 = vpop.f32.mrf.mxu2  ;;  %v3267_v20 = vmax.f32 %v3235_v4, 0.0 }
 0x38d   : > { %v2856_v21 = vpop.f32.mrf.mxu1 }
 0x38e   : > { %v2922_v1 = vadd.f32 %v2856_v21, %v2644_v34  ;;  %4046 = vmatmul.msk.f32.gmra.mxu3 %vm721_vm2, %v3267_v20  ;;  %v2369_v34 = vadd.f32 %v5272_v14, %v5163_v5  ;;  %v3504_v5 = vld [vmem:[%s4154_s10 + $0x10] sm:$0xff]  ;;  %v2370_v14 = vadd.f32 %v5283_v51, %v5173_v63  ;;  %v3505_v63 = vld [vmem:[%s4154_s10 + $0x18] sm:$0xff]  ;;  %v2371_v51 = vadd.f32 %v5295_v53, %v5181_v33 }
 0x38f   : > { %v2372_v33 = vadd.f32 %v5306_v7, %v5191_v29  ;;  %v3507_v29 = vld [vmem:[%s4154_s10 + $0x28] sm:$0xff]  ;;  %v2373_v7 = vadd.f32 %v5318_v36, %v5199_v48  ;;  %v3508_v48 = vld [vmem:[%s4154_s10 + $0x30] sm:$0xff]  ;;  %v2374_v36 = vadd.f32 %v5331_v23, %v5206_v13  ;;  %v3509_v13 = vld [vmem:[%s4154_s10 + $0x38] sm:$0xff]  ;;  %v2375_v23 = vadd.f32 %v5343_v31, %v5213_v43 }
 0x390   : > { %v3200_v55 = vadd.f32 %v3134_v6, %v2922_v1  ;;  %3996 = vmatmul.msk.f32.gmra.mxu1 %vm721_vm2, %v2692_v27  ;;  %v2593_v2 = vpop.f32.mrf.mxu0  ;;  %v3503_v6 = vld [vmem:[%s4154_s10 + $0x8] sm:$0xff]  ;;  %v2648_v1 = vadd.f32 %v2590_v59, %v2369_v34  ;;  %v3510_v43 = vld [vmem:[%s4154_s10 + $0x40] sm:$0xff]  ;;  %v2376_v31 = vadd.f32 %v5355_v15, %v5220_v44  ;;  %v2377_v44 = vadd.f32 %v5367_v11, %v5227_v52  ;;  %v3512_v52 = vld [vmem:[%s4154_s10 + $0x50] sm:$0xff] }
 0x391   : > { %v5751_v11 = vld [vmem:[#allocation3_spill] sm:$0xff] }
 0x392   : > { %v3236_v0 = vadd.f32 %v5260_v54, %v3200_v55 }
 0x394   : > { %v3137_v35 = vpop.f32.mrf.mxu2  ;;  %v3268_v16 = vmax.f32 %v3236_v0, 0.0 }
 0x395   : > { %v2859_v26 = vpop.f32.mrf.mxu1 }
 0x396   : > { %v2923_v46 = vadd.f32 %v2859_v26, %v2645_v50  ;;  %4047 = vmatmul.msk.f32.gmra.mxu3 %vm721_vm2, %v3268_v16 }
 0x398   : > { %v3201_v60 = vadd.f32 %v3137_v35, %v2923_v46  ;;  %v2596_v19 = vpop.f32.mrf.mxu0 }
 0x39a   : > { %v3237_v10 = vadd.f32 %v5260_v54, %v3201_v60 }
 0x39c   : > { %v3140_v56 = vpop.f32.mrf.mxu2  ;;  %v3269_v62 = vmax.f32 %v3237_v10, 0.0  ;;  %v2649_v10 = vadd.f32 %v2593_v2, %v2370_v14 }
 0x39d   : > { %v2862_v22 = vpop.f32.mrf.mxu1 }
 0x39e   : > { %v2924_v49 = vadd.f32 %v2862_v22, %v2646_v41  ;;  %4048 = vmatmul.msk.f32.gmra.mxu3 %vm721_vm2, %v3269_v62 }
 0x3a0   : > { %v3202_v30 = vadd.f32 %v3140_v56, %v2924_v49  ;;  %v2599_v16 = vpop.f32.mrf.mxu0 }
 0x3a1   : > { %v3406_v38 = vpop.f32.mrf.mxu3  ;;  %v2651_v34 = vadd.f32 %v2599_v16, %v2372_v33 }
 0x3a2   : > { %v3238_v42 = vadd.f32 %v5260_v54, %v3202_v30  ;;  %v3407_v17 = vadd.f32 %v5417_v12, %v3406_v38 }
 0x3a4   : > { %v3143_v32 = vpop.f32.mrf.mxu2  ;;  %v3270_v39 = vmax.f32 %v3238_v42, 0.0  ;;  %v3534_v3 = vadd.f32 %v3502_v25, %v3407_v17  ;;  %v2650_v17 = vadd.f32 %v2596_v19, %v2371_v51 }
 0x3a5   : > { %v2865_v28 = vpop.f32.mrf.mxu1 }
 0x3a6   : > { %v3566_v4 = vmax.f32 %v3534_v3, 0.0  ;;  %v2925_v24 = vadd.f32 %v2865_v28, %v2647_v58  ;;  %4049 = vmatmul.msk.f32.gmra.mxu3 %vm721_vm2, %v3270_v39 }
 0x3a8   : > { %3598 = vst.msk [vmem:[%s5429_s20] sm:$0xff] %vm317_vm0, %v3566_v4  ;;  %v3203_v9 = vadd.f32 %v3143_v32, %v2925_v24  ;;  %v2602_v38 = vpop.f32.mrf.mxu0 }
 0x3a9   : > { %v3409_v61 = vpop.f32.mrf.mxu3 }
 0x3aa   : > { %v3239_v20 = vadd.f32 %v5260_v54, %v3203_v9  ;;  %v3410_v21 = vadd.f32 %v5417_v12, %v3409_v61  ;;  %v3506_v9 = vld [vmem:[%s4154_s10 + $0x20] sm:$0xff] }
 0x3ac   : > { %v3146_v27 = vpop.f32.mrf.mxu2  ;;  %v3271_v55 = vmax.f32 %v3239_v20, 0.0  ;;  %v3535_v47 = vadd.f32 %v3503_v6, %v3410_v21 }
 0x3ad   : > { %v2868_v0 = vpop.f32.mrf.mxu1 }
 0x3ae   : > { %v3567_v35 = vmax.f32 %v3535_v47, 0.0  ;;  %v2926_v50 = vadd.f32 %v2868_v0, %v2648_v1  ;;  %4050 = vmatmul.msk.f32.gmra.mxu3 %vm721_vm2, %v3271_v55 }
 0x3b0   : > { %3599 = vst.msk [vmem:[%s5429_s20 + $0x8] sm:$0xff] %vm317_vm0, %v3567_v35  ;;  %v3204_v26 = vadd.f32 %v3146_v27, %v2926_v50  ;;  %v2605_v61 = vpop.f32.mrf.mxu0 }
 0x3b1   : > { %v3412_v46 = vpop.f32.mrf.mxu3 }
 0x3b2   : > { %v3240_v59 = vadd.f32 %v5260_v54, %v3204_v26  ;;  %v3413_v60 = vadd.f32 %v5417_v12, %v3412_v46  ;;  %v2652_v26 = vadd.f32 %v2602_v38, %v2373_v7  ;;  %v3511_v7 = vld [vmem:[%s4154_s10 + $0x48] sm:$0xff] }
 0x3b4   : > { %v3149_v8 = vpop.f32.mrf.mxu2  ;;  %v3272_v56 = vmax.f32 %v3240_v59, 0.0  ;;  %v3536_v41 = vadd.f32 %v3504_v5, %v3413_v60 }
 0x3b5   : > { %v2871_v62 = vpop.f32.mrf.mxu1 }
 0x3b6   : > { %v3568_v22 = vmax.f32 %v3536_v41, 0.0  ;;  %v2927_v49 = vadd.f32 %v2871_v62, %v2649_v10  ;;  %4051 = vmatmul.msk.f32.gmra.mxu3 %vm721_vm2, %v3272_v56 }
 0x3b8   : > { %3600 = vst.msk [vmem:[%s5429_s20 + $0x10] sm:$0xff] %vm317_vm0, %v3568_v22  ;;  %v3205_v30 = vadd.f32 %v3149_v8, %v2927_v49  ;;  %v2608_v14 = vpop.f32.mrf.mxu0  ;;  %v2653_v49 = vadd.f32 %v2605_v61, %v2374_v36 }
 0x3b9   : > { %v3415_v25 = vpop.f32.mrf.mxu3 }
 0x3ba   : > { %v3241_v2 = vadd.f32 %v5260_v54, %v3205_v30  ;;  %v3416_v37 = vadd.f32 %v5417_v12, %v3415_v25 }
 0x3bc   : > { %v3152_v42 = vpop.f32.mrf.mxu2  ;;  %v3273_v32 = vmax.f32 %v3241_v2, 0.0  ;;  %v3537_v58 = vadd.f32 %v3505_v63, %v3416_v37 }
 0x3bd   : > { %v2874_v39 = vpop.f32.mrf.mxu1 }
 0x3be   : > { %v3569_v3 = vmax.f32 %v3537_v58, 0.0  ;;  %v2928_v28 = vadd.f32 %v2874_v39, %v2650_v17  ;;  %4052 = vmatmul.msk.f32.gmra.mxu3 %vm721_vm2, %v3273_v32  ;;  %v2654_v39 = vadd.f32 %v2608_v14, %v2375_v23 }
 0x3c0   : > { %3601 = vst.msk [vmem:[%s5429_s20 + $0x18] sm:$0xff] %vm317_vm0, %v3569_v3  ;;  %v3206_v4 = vadd.f32 %v3152_v42, %v2928_v28  ;;  %v2611_v2 = vpop.f32.mrf.mxu0 }
 0x3c1   : > { %v3418_v24 = vpop.f32.mrf.mxu3 }
 0x3c2   : > { %v3242_v53 = vadd.f32 %v5260_v54, %v3206_v4  ;;  %v3419_v19 = vadd.f32 %v5417_v12, %v3418_v24 }
 0x3c4   : > { %v3155_v6 = vpop.f32.mrf.mxu2  ;;  %v3274_v20 = vmax.f32 %v3242_v53, 0.0  ;;  %v3538_v21 = vadd.f32 %v3506_v9, %v3419_v19 }
 0x3c5   : > { %v2877_v27 = vpop.f32.mrf.mxu1 }
 0x3c6   : > { %v3570_v1 = vmax.f32 %v3538_v21, 0.0  ;;  %v2929_v55 = vadd.f32 %v2877_v27, %v2651_v34  ;;  %4053 = vmatmul.msk.f32.gmra.mxu3 %vm721_vm2, %v3274_v20  ;;  %v2655_v20 = vadd.f32 %v2611_v2, %v2376_v31 }
 0x3c8   : > { %3602 = vst.msk [vmem:[%s5429_s20 + $0x20] sm:$0xff] %vm317_vm0, %v3570_v1  ;;  %v3207_v47 = vadd.f32 %v3155_v6, %v2929_v55  ;;  %v2614_v53 = vpop.f32.mrf.mxu0 }
 0x3c9   : > { %v3421_v0 = vpop.f32.mrf.mxu3 }
 0x3ca   : > { %v3243_v35 = vadd.f32 %v5260_v54, %v3207_v47  ;;  %v3422_v50 = vadd.f32 %v5417_v12, %v3421_v0 }
 0x3cc   : > { %v3158_v16 = vpop.f32.mrf.mxu2  ;;  %v3275_v46 = vmax.f32 %v3243_v35, 0.0  ;;  %v3539_v5 = vadd.f32 %v3507_v29, %v3422_v50 }
 0x3cd   : > { %v2880_v59 = vpop.f32.mrf.mxu1 }
 0x3ce   : > { %v3571_v60 = vmax.f32 %v3539_v5, 0.0  ;;  %v2930_v8 = vadd.f32 %v2880_v59, %v2652_v26  ;;  %4054 = vmatmul.msk.f32.gmra.mxu3 %vm721_vm2, %v3275_v46  ;;  %v2656_v26 = vadd.f32 %v2614_v53, %v2377_v44  ;;  %v5753_v53 = vld [vmem:[#allocation5_spill] sm:$0xff] }
 0x3d0   : > { %3603 = vst.msk [vmem:[%s5429_s20 + $0x28] sm:$0xff] %vm317_vm0, %v3571_v60  ;;  %v3208_v10 = vadd.f32 %v3158_v16, %v2930_v8  ;;  %v2617_v50 = vpop.f32.mrf.mxu0 }
 0x3d1   : > { %v3424_v56 = vpop.f32.mrf.mxu3 }
 0x3d2   : > { %v3244_v41 = vadd.f32 %v5260_v54, %v3208_v10  ;;  %v3425_v62 = vadd.f32 %v5417_v12, %v3424_v56  ;;  %v2378_v56 = vadd.f32 %v5381_v18, %v5751_v11  ;;  %v3513_v18 = vld [vmem:[%s4154_s10 + $0x58] sm:$0xff] }
 0x3d4   : > { %v3161_v22 = vpop.f32.mrf.mxu2  ;;  %v3276_v30 = vmax.f32 %v3244_v41, 0.0  ;;  %v3540_v38 = vadd.f32 %v3508_v48, %v3425_v62  ;;  %v2657_v62 = vadd.f32 %v2617_v50, %v2378_v56 }
 0x3d5   : > { %v2883_v25 = vpop.f32.mrf.mxu1 }
 0x3d6   : > { %v3572_v63 = vmax.f32 %v3540_v38, 0.0  ;;  %v2931_v51 = vadd.f32 %v2883_v25, %v2653_v49  ;;  %4055 = vmatmul.msk.f32.gmra.mxu3 %vm721_vm2, %v3276_v30 }
 0x3d8   : > { %3604 = vst.msk [vmem:[%s5429_s20 + $0x30] sm:$0xff] %vm317_vm0, %v3572_v63  ;;  %v3209_v37 = vadd.f32 %v3161_v22, %v2931_v51  ;;  %v2620_v30 = vpop.f32.mrf.mxu0 }
 0x3d9   : > { %v3427_v42 = vpop.f32.mrf.mxu3 }
 0x3da   : > { %v3245_v17 = vadd.f32 %v5260_v54, %v3209_v37  ;;  %v3428_v32 = vadd.f32 %v5417_v12, %v3427_v42  ;;  %v5752_v37 = vld [vmem:[#allocation6_spill] sm:$0xff] }
 0x3db   : > { %v2379_v42 = vadd.f32 %v5392_v57, %v5752_v37  ;;  %v3514_v57 = vld [vmem:[%s4154_s10 + $0x60] sm:$0xff] }
 0x3dc   : > { %v3164_v58 = vpop.f32.mrf.mxu2  ;;  %v3277_v3 = vmax.f32 %v3245_v17, 0.0  ;;  %v3541_v28 = vadd.f32 %v3509_v13, %v3428_v32 }
 0x3dd   : > { %v2886_v4 = vpop.f32.mrf.mxu1  ;;  %v2658_v32 = vadd.f32 %v2620_v30, %v2379_v42 }
 0x3de   : > { %v3573_v24 = vmax.f32 %v3541_v28, 0.0  ;;  %v2932_v9 = vadd.f32 %v2886_v4, %v2654_v39  ;;  %4056 = vmatmul.msk.f32.gmra.mxu3 %vm721_vm2, %v3277_v3 }
 0x3e0   : > { %3605 = vst.msk [vmem:[%s5429_s20 + $0x38] sm:$0xff] %vm317_vm0, %v3573_v24  ;;  %v3210_v33 = vadd.f32 %v3164_v58, %v2932_v9  ;;  %v2623_v24 = vpop.f32.mrf.mxu0 }
 0x3e1   : > { %v3430_v19 = vpop.f32.mrf.mxu3 }
 0x3e2   : > { %v3246_v61 = vadd.f32 %v5260_v54, %v3210_v33  ;;  %v3431_v6 = vadd.f32 %v5417_v12, %v3430_v19  ;;  %v2380_v19 = vadd.f32 %v5401_v45, %v5753_v53  ;;  %v3515_v45 = vld [vmem:[%s4154_s10 + $0x68] sm:$0xff] }
 0x3e4   : > { %v3167_v34 = vpop.f32.mrf.mxu2  ;;  %v3278_v21 = vmax.f32 %v3246_v61, 0.0  ;;  %v3542_v27 = vadd.f32 %v3510_v43, %v3431_v6  ;;  %v2659_v6 = vadd.f32 %v2623_v24, %v2380_v19 }
 0x3e5   : > { %v2889_v1 = vpop.f32.mrf.mxu1 }
 0x3e6   : > { %v3574_v55 = vmax.f32 %v3542_v27, 0.0  ;;  %v2933_v47 = vadd.f32 %v2889_v1, %v2655_v20  ;;  %4057 = vmatmul.msk.f32.gmra.mxu3 %vm721_vm2, %v3278_v21 }
 0x3e8   : > { %3606 = vst.msk [vmem:[%s5429_s20 + $0x40] sm:$0xff] %vm317_vm0, %v3574_v55  ;;  %v3211_v0 = vadd.f32 %v3167_v34, %v2933_v47  ;;  %v2626_v47 = vpop.f32.mrf.mxu0 }
 0x3e9   : > { %v3433_v29 = vpop.f32.mrf.mxu3 }
 0x3ea   : > { %v3247_v15 = vadd.f32 %v5260_v54, %v3211_v0  ;;  %v3434_v35 = vadd.f32 %v5417_v12, %v3433_v29  ;;  %v5754_v29 = vld [vmem:[#allocation4_spill] sm:$0xff] }
 0x3ec   : > { %v3170_v16 = vpop.f32.mrf.mxu2  ;;  %v3279_v46 = vmax.f32 %v3247_v15, 0.0  ;;  %v3543_v5 = vadd.f32 %v3511_v7, %v3434_v35  ;;  %v2381_v7 = vadd.f32 %v5408_v40, %v5754_v29 }
 0x3ed   : > { %v2892_v14 = vpop.f32.mrf.mxu1 }
 0x3ee   : > { %v3575_v59 = vmax.f32 %v3543_v5, 0.0  ;;  %v2934_v60 = vadd.f32 %v2892_v14, %v2656_v26  ;;  %4058 = vmatmul.msk.f32.gmra.mxu3 %vm721_vm2, %v3279_v46  ;;  %v2660_v35 = vadd.f32 %v2626_v47, %v2381_v7  ;;  %v3525_v47 = vld [vmem:[%s4154_s10 + $0xb8] sm:$0xff] }
 0x3f0   : > { %3607 = vst.msk [vmem:[%s5429_s20 + $0x48] sm:$0xff] %vm317_vm0, %v3575_v59  ;;  %v3212_v8 = vadd.f32 %v3170_v16, %v2934_v60  ;;  %v3516_v60 = vld [vmem:[%s4154_s10 + $0x70] sm:$0xff] }
 0x3f1   : > { %v3436_v10 = vpop.f32.mrf.mxu3 }
 0x3f2   : > { %v3248_v48 = vadd.f32 %v5260_v54, %v3212_v8  ;;  %v3437_v36 = vadd.f32 %v5417_v12, %v3436_v10 }
 0x3f4   : > { %v3173_v41 = vpop.f32.mrf.mxu2  ;;  %v3280_v22 = vmax.f32 %v3248_v48, 0.0  ;;  %v3544_v49 = vadd.f32 %v3512_v52, %v3437_v36  ;;  %v3517_v36 = vld [vmem:[%s4154_s10 + $0x78] sm:$0xff] }
 0x3f5   : > { %v2895_v38 = vpop.f32.mrf.mxu1 }
 0x3f6   : > { %v3576_v25 = vmax.f32 %v3544_v49, 0.0  ;;  %v2935_v63 = vadd.f32 %v2895_v38, %v2657_v62  ;;  %4059 = vmatmul.msk.f32.gmra.mxu3 %vm721_vm2, %v3280_v22  ;;  %v3518_v49 = vld [vmem:[%s4154_s10 + $0x80] sm:$0xff] }
 0x3f8   : > { %3608 = vst.msk [vmem:[%s5429_s20 + $0x50] sm:$0xff] %vm317_vm0, %v3576_v25  ;;  %v3213_v51 = vadd.f32 %v3173_v41, %v2935_v63 }
 0x3f9   : > { %v3439_v2 = vpop.f32.mrf.mxu3 }
 0x3fa   : > { %v3249_v13 = vadd.f32 %v5260_v54, %v3213_v51  ;;  %v3440_v23 = vadd.f32 %v5417_v12, %v3439_v2  ;;  %v3519_v51 = vld [vmem:[%s4154_s10 + $0x88] sm:$0xff] }
 0x3fc   : > { %v3176_v17 = vpop.f32.mrf.mxu2  ;;  %v3281_v58 = vmax.f32 %v3249_v13, 0.0  ;;  %v3545_v39 = vadd.f32 %v3513_v18, %v3440_v23  ;;  %v3520_v13 = vld [vmem:[%s4154_s10 + $0x90] sm:$0xff] }
 0x3fd   : > { %v2898_v3 = vpop.f32.mrf.mxu1 }
 0x3fe   : > { %v3577_v28 = vmax.f32 %v3545_v39, 0.0  ;;  %v2936_v4 = vadd.f32 %v2898_v3, %v2658_v32  ;;  %4060 = vmatmul.msk.f32.gmra.mxu3 %vm721_vm2, %v3281_v58  ;;  %v3521_v39 = vld [vmem:[%s4154_s10 + $0x98] sm:$0xff] }
 0x400   : > { %3609 = vst.msk [vmem:[%s5429_s20 + $0x58] sm:$0xff] %vm317_vm0, %v3577_v28  ;;  %v3214_v9 = vadd.f32 %v3176_v17, %v2936_v4 }
 0x401   : > { %v3442_v33 = vpop.f32.mrf.mxu3 }
 0x402   : > { %v3250_v43 = vadd.f32 %v5260_v54, %v3214_v9  ;;  %v3443_v31 = vadd.f32 %v5417_v12, %v3442_v33  ;;  %v3522_v9 = vld [vmem:[%s4154_s10 + $0xa0] sm:$0xff] }
 0x404   : > { %v3179_v61 = vpop.f32.mrf.mxu2  ;;  %v3282_v34 = vmax.f32 %v3250_v43, 0.0  ;;  %v3546_v20 = vadd.f32 %v3514_v57, %v3443_v31  ;;  %v3523_v43 = vld [vmem:[%s4154_s10 + $0xa8] sm:$0xff] }
 0x405   : > { %v2901_v21 = vpop.f32.mrf.mxu1 }
 0x406   : > { %v3578_v27 = vmax.f32 %v3546_v20, 0.0  ;;  %v2937_v1 = vadd.f32 %v2901_v21, %v2659_v6  ;;  %4061 = vmatmul.msk.f32.gmra.mxu3 %vm721_vm2, %v3282_v34  ;;  %v3524_v20 = vld [vmem:[%s4154_s10 + $0xb0] sm:$0xff] }
 0x408   : > { %3610 = vst.msk [vmem:[%s5429_s20 + $0x60] sm:$0xff] %vm317_vm0, %v3578_v27  ;;  %v3215_v55 = vadd.f32 %v3179_v61, %v2937_v1 }
 0x409   : > { %v3445_v0 = vpop.f32.mrf.mxu3 }
 0x40a   : > { %v3251_v44 = vadd.f32 %v5260_v54, %v3215_v55  ;;  %v3446_v15 = vadd.f32 %v5417_v12, %v3445_v0 }
 0x40c   : > { %v3283_v50 = vmax.f32 %v3251_v44, 0.0  ;;  %v3547_v16 = vadd.f32 %v3515_v45, %v3446_v15  ;;  %v3182_v46 = vpop.f32.mrf.mxu2  ;;  %v3526_v44 = vld [vmem:[%s4154_s10 + $0xc0] sm:$0xff] }
 0x40d   : > { %v2904_v26 = vpop.f32.mrf.mxu1 }
 0x40e   : > { %v3579_v5 = vmax.f32 %v3547_v16, 0.0  ;;  %v2938_v14 = vadd.f32 %v2904_v26, %v2660_v35  ;;  %4062 = vmatmul.msk.f32.gmra.mxu3 %vm721_vm2, %v3283_v50  ;;  %v3527_v26 = vld [vmem:[%s4154_s10 + $0xc8] sm:$0xff] }
 0x410   : > { %3611 = vst.msk [vmem:[%s5429_s20 + $0x68] sm:$0xff] %vm317_vm0, %v3579_v5  ;;  %v3216_v59 = vadd.f32 %v3182_v46, %v2938_v14 }
 0x411   : > { %v3448_v40 = vpop.f32.mrf.mxu3 }
 0x412   : > { %v3252_v8 = vadd.f32 %v5260_v54, %v3216_v59  ;;  %v3449_v10 = vadd.f32 %v5417_v12, %v3448_v40  ;;  %v3528_v40 = vld [vmem:[%s4154_s10 + $0xd0] sm:$0xff] }
 0x414   : > { %v3284_v52 = vmax.f32 %v3252_v8, 0.0  ;;  %v3548_v11 = vadd.f32 %v3516_v60, %v3449_v10 }
 0x416   : > { %v3580_v56 = vmax.f32 %v3548_v11, 0.0  ;;  %4063 = vmatmul.msk.f32.gmra.mxu3 %vm721_vm2, %v3284_v52  ;;  %v3529_v11 = vld [vmem:[%s4154_s10 + $0xd8] sm:$0xff] }
 0x418   : > { %3612 = vst.msk [vmem:[%s5429_s20 + $0x70] sm:$0xff] %vm317_vm0, %v3580_v56 }
 0x419   : > { %v3451_v48 = vpop.f32.mrf.mxu3 }
 0x41a   : > { %v3452_v41 = vadd.f32 %v5417_v12, %v3451_v48 }
 0x41c   : > { %v3549_v62 = vadd.f32 %v3517_v36, %v3452_v41 }
 0x41e   : > { %v3581_v22 = vmax.f32 %v3549_v62, 0.0  ;;  %v3530_v62 = vld [vmem:[%s4154_s10 + $0xe0] sm:$0xff] }
 0x420   : > { %3613 = vst.msk [vmem:[%s5429_s20 + $0x78] sm:$0xff] %vm317_vm0, %v3581_v22 }
 0x421   : > { %v3454_v54 = vpop.f32.mrf.mxu3 }
 0x422   : > { %v3455_v30 = vadd.f32 %v5417_v12, %v3454_v54 }
 0x424   : > { %v3550_v38 = vadd.f32 %v3518_v49, %v3455_v30 }
 0x426   : > { %v3582_v25 = vmax.f32 %v3550_v38, 0.0  ;;  %v3531_v38 = vld [vmem:[%s4154_s10 + $0xe8] sm:$0xff] }
 0x428   : > { %3614 = vst.msk [vmem:[%s5429_s20 + $0x80] sm:$0xff] %vm317_vm0, %v3582_v25 }
 0x429   : > { %v3457_v63 = vpop.f32.mrf.mxu3 }
 0x42a   : > { %v3458_v2 = vadd.f32 %v5417_v12, %v3457_v63 }
 0x42c   : > { %v3551_v18 = vadd.f32 %v3519_v51, %v3458_v2 }
 0x42e   : > { %v3583_v37 = vmax.f32 %v3551_v18, 0.0  ;;  %v3532_v18 = vld [vmem:[%s4154_s10 + $0xf0] sm:$0xff] }
 0x430   : > { %3615 = vst.msk [vmem:[%s5429_s20 + $0x88] sm:$0xff] %vm317_vm0, %v3583_v37 }
 0x431   : > { %v3460_v42 = vpop.f32.mrf.mxu3 }
 0x432   : > { %v3461_v23 = vadd.f32 %v5417_v12, %v3460_v42 }
 0x434   : > { %v3552_v17 = vadd.f32 %v3520_v13, %v3461_v23 }
 0x436   : > { %v3584_v32 = vmax.f32 %v3552_v17, 0.0  ;;  %v3533_v17 = vld [vmem:[%s4154_s10 + $0xf8] sm:$0xff] }
 0x438   : > { %3616 = vst.msk [vmem:[%s5429_s20 + $0x90] sm:$0xff] %vm317_vm0, %v3584_v32 }
 0x439   : > { %v3463_v58 = vpop.f32.mrf.mxu3 }
 0x43a   : > { %v3464_v3 = vadd.f32 %v5417_v12, %v3463_v58 }
 0x43c   : > { %v3553_v28 = vadd.f32 %v3521_v39, %v3464_v3 }
 0x43e   : > { %v3585_v4 = vmax.f32 %v3553_v28, 0.0 }
 0x440   : > { %3617 = vst.msk [vmem:[%s5429_s20 + $0x98] sm:$0xff] %vm317_vm0, %v3585_v4 }
 0x441   : > { %v3466_v24 = vpop.f32.mrf.mxu3 }
 0x442   : > { %v3467_v33 = vadd.f32 %v5417_v12, %v3466_v24 }
 0x444   : > { %v3554_v57 = vadd.f32 %v3522_v9, %v3467_v33 }
 0x446   : > { %v3586_v53 = vmax.f32 %v3554_v57, 0.0 }
 0x448   : > { %3618 = vst.msk [vmem:[%s5429_s20 + $0xa0] sm:$0xff] %vm317_vm0, %v3586_v53 }
 0x449   : > { %v3469_v19 = vpop.f32.mrf.mxu3 }
 0x44a   : > { %v3470_v31 = vadd.f32 %v5417_v12, %v3469_v19 }
 0x44c   : > { %v3555_v61 = vadd.f32 %v3523_v43, %v3470_v31 }
 0x44e   : > { %v3587_v6 = vmax.f32 %v3555_v61, 0.0 }
 0x450   : > { %3619 = vst.msk [vmem:[%s5429_s20 + $0xa8] sm:$0xff] %vm317_vm0, %v3587_v6 }
 0x451   : > { %v3472_v34 = vpop.f32.mrf.mxu3 }
 0x452   : > { %v3473_v21 = vadd.f32 %v5417_v12, %v3472_v34 }
 0x454   : > { %v3556_v27 = vadd.f32 %v3524_v20, %v3473_v21 }
 0x456   : > { %v3588_v1 = vmax.f32 %v3556_v27, 0.0 }
 0x458   : > { %3620 = vst.msk [vmem:[%s5429_s20 + $0xb0] sm:$0xff] %vm317_vm0, %v3588_v1 }
 0x459   : > { %v3475_v55 = vpop.f32.mrf.mxu3 }
 0x45a   : > { %v3476_v0 = vadd.f32 %v5417_v12, %v3475_v55 }
 0x45c   : > { %v3557_v45 = vadd.f32 %v3525_v47, %v3476_v0 }
 0x45e   : > { %v3589_v29 = vmax.f32 %v3557_v45, 0.0 }
 0x460   : > { %3621 = vst.msk [vmem:[%s5429_s20 + $0xb8] sm:$0xff] %vm317_vm0, %v3589_v29 }
 0x461   : > { %v3478_v7 = vpop.f32.mrf.mxu3 }
 0x462   : > { %v3479_v15 = vadd.f32 %v5417_v12, %v3478_v7 }
 0x464   : > { %v3558_v35 = vadd.f32 %v3526_v44, %v3479_v15 }
 0x466   : > { %v3590_v50 = vmax.f32 %v3558_v35, 0.0 }
 0x468   : > { %3622 = vst.msk [vmem:[%s5429_s20 + $0xc0] sm:$0xff] %vm317_vm0, %v3590_v50 }
 0x469   : > { %v3481_v16 = vpop.f32.mrf.mxu3 }
 0x46a   : > { %v3482_v46 = vadd.f32 %v5417_v12, %v3481_v16 }
 0x46c   : > { %v3559_v5 = vadd.f32 %v3527_v26, %v3482_v46 }
 0x46e   : > { %v3591_v14 = vmax.f32 %v3559_v5, 0.0 }
 0x470   : > { %3623 = vst.msk [vmem:[%s5429_s20 + $0xc8] sm:$0xff] %vm317_vm0, %v3591_v14 }
 0x471   : > { %v3484_v59 = vpop.f32.mrf.mxu3 }
 0x472   : > { %v3485_v60 = vadd.f32 %v5417_v12, %v3484_v59 }
 0x474   : > { %v3560_v8 = vadd.f32 %v3528_v40, %v3485_v60 }
 0x476   : > { %v3592_v10 = vmax.f32 %v3560_v8, 0.0 }
 0x478   : > { %3624 = vst.msk [vmem:[%s5429_s20 + $0xd0] sm:$0xff] %vm317_vm0, %v3592_v10 }
 0x479   : > { %v3487_v52 = vpop.f32.mrf.mxu3 }
 0x47a   : > { %v3488_v56 = vadd.f32 %v5417_v12, %v3487_v52 }
 0x47c   : > { %v3561_v48 = vadd.f32 %v3529_v11, %v3488_v56 }
 0x47e   : > { %v3593_v36 = vmax.f32 %v3561_v48, 0.0 }
 0x480   : > { %3625 = vst.msk [vmem:[%s5429_s20 + $0xd8] sm:$0xff] %vm317_vm0, %v3593_v36 }
 0x481   : > { %v3490_v41 = vpop.f32.mrf.mxu3 }
 0x482   : > { %v3491_v22 = vadd.f32 %v5417_v12, %v3490_v41 }
 0x484   : > { %v3562_v54 = vadd.f32 %v3530_v62, %v3491_v22 }
 0x486   : > { %v3594_v49 = vmax.f32 %v3562_v54, 0.0 }
 0x488   : > { %3626 = vst.msk [vmem:[%s5429_s20 + $0xe0] sm:$0xff] %vm317_vm0, %v3594_v49 }
 0x489   : > { %v3493_v30 = vpop.f32.mrf.mxu3 }
 0x48a   : > { %v3494_v25 = vadd.f32 %v5417_v12, %v3493_v30 }
 0x48c   : > { %v3563_v63 = vadd.f32 %v3531_v38, %v3494_v25 }
 0x48e   : > { %v3595_v51 = vmax.f32 %v3563_v63, 0.0 }
 0x490   : > { %3627 = vst.msk [vmem:[%s5429_s20 + $0xe8] sm:$0xff] %vm317_vm0, %v3595_v51 }
 0x491   : > { %v3496_v2 = vpop.f32.mrf.mxu3 }
 0x492   : > { %v3497_v37 = vadd.f32 %v5417_v12, %v3496_v2 }
 0x494   : > { %v3564_v42 = vadd.f32 %v3532_v18, %v3497_v37 }
 0x496   : > { %v3596_v13 = vmax.f32 %v3564_v42, 0.0 }
 0x498   : > { %3628 = vst.msk [vmem:[%s5429_s20 + $0xf0] sm:$0xff] %vm317_vm0, %v3596_v13 }
 0x499   : > { %v3499_v23 = vpop.f32.mrf.mxu3 }
 0x49a   : > { %v3500_v32 = vadd.f32 %v5417_v12, %v3499_v23 }
 0x49c   : > { %v3565_v58 = vadd.f32 %v3533_v17, %v3500_v32 }
 0x49e   : > { %v3597_v39 = vmax.f32 %v3565_v58, 0.0 }
 0x4a0   : > { %3629 = vst.msk [vmem:[%s5429_s20 + $0xf8] sm:$0xff] %vm317_vm0, %v3597_v39 }
 0x4a1 PF: > { %s17_s24 = sadd.s32 1, %s4089_s24  }
 0x4a2   : > { %p14_p4 = scmp.ge.s32.totalorder %s17_s24, 4  }
 0x4a4   :  { %16 = sbr.rel (!%p14_p4) target bundleno = 1 (0x1), region = 89 }

</bundles_post_ra>
